<compile_context>
chip_gen: v7x
topology: tpu7x:2x2x1
jax: 0.10.0
libtpu: 0.0.40
codegen_flags: <defaults>
</compile_context>

<pallas_src>
import functools

import jax
import jax.numpy as jnp
from jax.experimental import pallas as pl
from jax.experimental.pallas import tpu as pltpu

BN_EPS = 1e-5
LANE = 128


def _round_up(x, m):
    return ((x + m - 1) // m) * m


# ---------------------------------------------------------------------------
# Kernel 1: conv1 (1x1x1) + BN1 + ReLU, writing straight into the zero-padded
# halo layout (N, D+2, H+2, W+2, C_mid) that conv2 consumes.
# ---------------------------------------------------------------------------
def _conv1_bn_relu_halo_kernel(x_ref, w_ref, b_ref, o_ref, *, H, W, D):
    j = pl.program_id(1)
    # conv2 has padding=1, i.e. it pads conv1's OUTPUT with zeros: zero-fill the
    # whole block (covers the depth-halo slices and the spatial halo ring).
    o_ref[...] = jnp.zeros_like(o_ref)

    @pl.when(jnp.logical_and(j >= 1, j <= D))
    def _():
        cin = x_ref.shape[-1]
        a = x_ref[0, 0].reshape(H * W, cin).astype(jnp.bfloat16)
        y = jnp.dot(a, w_ref[...], preferred_element_type=jnp.float32) + b_ref[...]
        y = jnp.maximum(y, 0.0).astype(o_ref.dtype)
        o_ref[0, 0, pl.ds(1, H), pl.ds(1, W), :] = y.reshape(H, W, -1)


def conv1_bn_relu_halo(x, w1, b1, *, out_dtype=jnp.bfloat16):
    """x:(N,D,H,W,Cin) f32, w1:(Cin,Cmid) bf16, b1:(1,Cmid) f32
       -> (N,D+2,H+2,W+2,Cmid) bf16 (halo-padded with zeros)."""
    n, d, h, w, cin = x.shape
    c_mid = w1.shape[1]
    kernel = functools.partial(_conv1_bn_relu_halo_kernel, H=h, W=w, D=d)
    return pl.pallas_call(
        kernel,
        out_shape=jax.ShapeDtypeStruct((n, d + 2, h + 2, w + 2, c_mid), out_dtype),
        grid_spec=pltpu.PrefetchScalarGridSpec(
            num_scalar_prefetch=0,
            grid=(n, d + 2),
            in_specs=[
                pl.BlockSpec((1, 1, h, w, cin),
                             lambda i, j: (i, jnp.clip(j - 1, 0, d - 1), 0, 0, 0)),
                pl.BlockSpec((cin, c_mid), lambda i, j: (0, 0)),
                pl.BlockSpec((1, c_mid), lambda i, j: (0, 0)),
            ],
            out_specs=pl.BlockSpec((1, 1, h + 2, w + 2, c_mid),
                                   lambda i, j: (i, j, 0, 0, 0)),
        ),
        compiler_params=pltpu.CompilerParams(
            dimension_semantics=("parallel", "parallel"),
            vmem_limit_bytes=32 * 1024 * 1024,
        ),
    )(x, w1, b1)


# ---------------------------------------------------------------------------
# Kernel 2: fused conv2(3x3x3)+BN2+ReLU -> conv3(1x1x1)+BN3 -> +residual -> ReLU
# Grid is (N, D): one output depth-slice per step.  The 3 depth taps arrive as
# three depth-shifted blocks of the halo-padded conv1 output; the 9 spatial taps
# are static slices of the loaded (H+2, W+2, C) block.
# ---------------------------------------------------------------------------
def _conv2_conv3_kernel(x0_ref, x1_ref, x2_ref, res_ref,
                        w2_ref, b2_ref, w3_ref, b3_ref, o_ref,
                        *, H, W, C_mid, C_out):
    acc = jnp.zeros((H * W, C_mid), jnp.float32)
    x_refs = (x0_ref, x1_ref, x2_ref)
    for kd in range(3):
        x = x_refs[kd][0, 0]                              # (H+2, W+2, C_mid) bf16
        for kh in range(3):
            for kw in range(3):
                a = x[kh:kh + H, kw:kw + W, :].reshape(H * W, C_mid)
                acc = acc + jnp.dot(a, w2_ref[kd, kh, kw],
                                    preferred_element_type=jnp.float32)
    # BN2 (scale folded into w2) + ReLU
    y2 = jnp.maximum(acc + b2_ref[...], 0.0)
    # conv3 (1x1x1) + BN3 (scale folded into w3) + residual + ReLU
    y3 = jnp.dot(y2.astype(jnp.bfloat16), w3_ref[...],
                 preferred_element_type=jnp.float32)
    y3 = y3 + b3_ref[...] + res_ref[0, 0].reshape(H * W, C_out)
    o_ref[...] = jnp.maximum(y3, 0.0).reshape(1, 1, H, W, C_out).astype(o_ref.dtype)


def conv2_conv3_fused(x_halo, residual, w2, b2, w3, b3):
    """x_halo:(N,D+2,H+2,W+2,Cm) bf16, residual:(N,D,H,W,Co) f32 -> (N,D,H,W,Co) f32."""
    n, dp2, hp2, wp2, c_mid = x_halo.shape
    d, h, w = dp2 - 2, hp2 - 2, wp2 - 2
    c_out = w3.shape[1]
    kernel = functools.partial(_conv2_conv3_kernel, H=h, W=w, C_mid=c_mid, C_out=c_out)
    return pl.pallas_call(
        kernel,
        out_shape=jax.ShapeDtypeStruct((n, d, h, w, c_out), jnp.float32),
        grid_spec=pltpu.PrefetchScalarGridSpec(
            num_scalar_prefetch=0,
            grid=(n, d),
            in_specs=[
                pl.BlockSpec((1, 1, hp2, wp2, c_mid), lambda i, j: (i, j, 0, 0, 0)),
                pl.BlockSpec((1, 1, hp2, wp2, c_mid), lambda i, j: (i, j + 1, 0, 0, 0)),
                pl.BlockSpec((1, 1, hp2, wp2, c_mid), lambda i, j: (i, j + 2, 0, 0, 0)),
                pl.BlockSpec((1, 1, h, w, c_out), lambda i, j: (i, j, 0, 0, 0)),
                pl.BlockSpec((3, 3, 3, c_mid, c_mid), lambda i, j: (0, 0, 0, 0, 0)),
                pl.BlockSpec((1, c_mid), lambda i, j: (0, 0)),
                pl.BlockSpec((c_mid, c_out), lambda i, j: (0, 0)),
                pl.BlockSpec((1, c_out), lambda i, j: (0, 0)),
            ],
            out_specs=pl.BlockSpec((1, 1, h, w, c_out), lambda i, j: (i, j, 0, 0, 0)),
        ),
        compiler_params=pltpu.CompilerParams(
            dimension_semantics=("parallel", "parallel"),
            vmem_limit_bytes=32 * 1024 * 1024,
        ),
    )(x_halo, x_halo, x_halo, residual, w2, b2, w3, b3)


# ---------------------------------------------------------------------------
# Parameter helpers (BN folding, padding to lane-dense channel counts)
# ---------------------------------------------------------------------------
def fold_bn(gamma, beta, mean, var):
    scale = gamma / jnp.sqrt(var + BN_EPS)
    bias = beta - mean * scale
    return scale, bias


def init_params(key, inplanes, planes):
    ks = jax.random.split(key, 12)
    exp = 4

    def conv_w(k, shape):
        fan_in = shape[1] * shape[2] * shape[3] * shape[4]
        return (jax.random.normal(k, shape, jnp.float32) / jnp.sqrt(fan_in)).astype(jnp.float32)

    def bn_p(kg, kb, km, kv, c):
        gamma = 1.0 + 0.1 * jax.random.normal(kg, (c,), jnp.float32)
        beta = 0.1 * jax.random.normal(kb, (c,), jnp.float32)
        mean = 0.1 * jax.random.normal(km, (c,), jnp.float32)
        var = 1.0 + 0.1 * jnp.abs(jax.random.normal(kv, (c,), jnp.float32))
        return gamma, beta, mean, var

    params = {
        "w1": conv_w(ks[0], (planes, inplanes, 1, 1, 1)),
        "bn1": bn_p(ks[1], ks[2], ks[3], ks[4], planes),
        "w2": conv_w(ks[5], (planes, planes, 3, 3, 3)),
        "bn2": bn_p(ks[6], ks[7], ks[8], ks[9], planes),
        "w3": conv_w(ks[10], (planes * exp, planes, 1, 1, 1)),
        "bn3": bn_p(*jax.random.split(ks[11], 4), planes * exp),
    }
    return params


# ---------------------------------------------------------------------------
# Forward pass
# ---------------------------------------------------------------------------
@jax.jit
def bottleneck_forward(x, params):
    """x: (N, C, D, H, W) float32 (PyTorch NCDHW). stride=1, downsample=None."""
    n, cin, d, h, w = x.shape
    planes = params["w1"].shape[0]
    cout = params["w3"].shape[0]
    # identity residual without downsample requires inplanes == planes*4, stride=1
    assert cin == cout == planes * 4, "identity residual needs inplanes == planes*4"

    cp_in = _round_up(cin, LANE)
    cp_mid = _round_up(planes, LANE)
    cp_out = _round_up(cout, LANE)
    assert cp_in == cp_out

    # channels-last, channel-padded to a lane-dense width (f32; kernels cast to bf16)
    xl = jnp.transpose(x, (0, 2, 3, 4, 1))                       # (N, D, H, W, Cin)
    xl_p = jnp.pad(xl, ((0, 0),) * 4 + ((0, cp_in - cin),))      # (N, D, H, W, Cp) f32

    # ---- conv1 (1x1x1) + bn1 + relu : writes halo-padded bf16 output directly
    s1, b1 = fold_bn(*params["bn1"])
    w1_mat = params["w1"].reshape(planes, cin).T * s1[None, :]   # (Cin, planes)
    w1_p = (jnp.zeros((cp_in, cp_mid), jnp.float32)
            .at[:cin, :planes].set(w1_mat).astype(jnp.bfloat16))
    b1_p = jnp.zeros((1, cp_mid), jnp.float32).at[0, :planes].set(b1)

    o1_halo = conv1_bn_relu_halo(xl_p, w1_p, b1_p)               # (N,D+2,H+2,W+2,Cm) bf16

    # ---- conv2 (3x3x3) + bn2 + relu  +  conv3 (1x1x1) + bn3 + residual + relu (fused)
    s2, b2 = fold_bn(*params["bn2"])
    w2_t = jnp.transpose(params["w2"], (2, 3, 4, 1, 0))          # (3,3,3,in,out)
    w2_t = w2_t * s2[None, None, None, None, :]
    w2_p = (jnp.zeros((3, 3, 3, cp_mid, cp_mid), jnp.float32)
            .at[:, :, :, :planes, :planes].set(w2_t).astype(jnp.bfloat16))
    b2_p = jnp.zeros((1, cp_mid), jnp.float32).at[0, :planes].set(b2)

    s3, b3 = fold_bn(*params["bn3"])
    w3_mat = params["w3"].reshape(cout, planes).T * s3[None, :]  # (planes, Cout)
    w3_p = (jnp.zeros((cp_mid, cp_out), jnp.float32)
            .at[:planes, :cout].set(w3_mat).astype(jnp.bfloat16))
    b3_p = jnp.zeros((1, cp_out), jnp.float32).at[0, :cout].set(b3)

    residual = xl_p                                              # identity branch, exact f32

    out = conv2_conv3_fused(o1_halo, residual, w2_p, b2_p, w3_p, b3_p)  # (N,D,H,W,Cp) f32

    y = out[..., :cout]
    return jnp.transpose(y, (0, 4, 1, 2, 3))                     # back to NCDHW


# ---------------------------------------------------------------------------
# Pure-JAX reference (eval-mode BN, f32) for correctness check
# ---------------------------------------------------------------------------
def reference_forward(x, params):
    def conv3d(x, w, pad):
        return jax.lax.conv_general_dilated(
            x, w, (1, 1, 1), [(pad, pad)] * 3,
            dimension_numbers=("NCDHW", "OIDHW", "NCDHW"))

    def bn(x, p):
        gamma, beta, mean, var = p
        sh = (1, -1, 1, 1, 1)
        return (x - mean.reshape(sh)) / jnp.sqrt(var.reshape(sh) + BN_EPS) \
            * gamma.reshape(sh) + beta.reshape(sh)

    residual = x
    out = jax.nn.relu(bn(conv3d(x, params["w1"], 0), params["bn1"]))
    out = jax.nn.relu(bn(conv3d(out, params["w2"], 1), params["bn2"]))
    out = bn(conv3d(out, params["w3"], 0), params["bn3"])
    return jax.nn.relu(out + residual)


if __name__ == "__main__":
    key = jax.random.PRNGKey(0)
    k_x, k_p = jax.random.split(key)

    N, planes = 2, 4
    inplanes = planes * 4        # 16: identity residual works without downsample
    D = H = W = 8

    x = jax.random.normal(k_x, (N, inplanes, D, H, W), jnp.float32)
    params = init_params(k_p, inplanes, planes)

    out = jax.block_until_ready(bottleneck_forward(x, params))
    ref = jax.block_until_ready(reference_forward(x, params))

    assert out.shape == (N, inplanes, D, H, W)
    # bf16 MXU operands with f32 accumulation -> loosened tolerance vs f32 reference
    assert jnp.allclose(out, ref, rtol=5e-2, atol=1e-1), \
        f"max abs err {jnp.max(jnp.abs(out - ref))}"

    print("KERNEL_OK")
</pallas_src>

<mosaic_0001>
module attributes {stable_mosaic.version = 11 : i64} {
  func.func @_conv2_conv3_kernel(%arg0: i32, %arg1: i32, %arg2: memref<1x1x10x10x128xbf16, #tpu.memory_space<vmem>>, %arg3: memref<1x1x10x10x128xbf16, #tpu.memory_space<vmem>>, %arg4: memref<1x1x10x10x128xbf16, #tpu.memory_space<vmem>>, %arg5: memref<1x1x8x8x128xf32, #tpu.memory_space<vmem>>, %arg6: memref<3x3x3x128x128xbf16, #tpu.memory_space<vmem>>, %arg7: memref<1x128xf32, #tpu.memory_space<vmem>>, %arg8: memref<128x128xbf16, #tpu.memory_space<vmem>>, %arg9: memref<1x128xf32, #tpu.memory_space<vmem>>, %arg10: memref<1x1x8x8x128xf32, #tpu.memory_space<vmem>>) attributes {dimension_semantics = [#tpu.dimension_semantics<parallel>, #tpu.dimension_semantics<parallel>], iteration_bounds = array<i64: 2, 8>, scalar_prefetch = 0 : i64, scratch_operands = 0 : i64, tpu.core_type = #tpu.core_type<tc>, window_params = [{transform_indices = @transform_0, window_bounds = array<i64: 1, 1, 10, 10, 128>}, {transform_indices = @transform_1, window_bounds = array<i64: 1, 1, 10, 10, 128>}, {transform_indices = @transform_2, window_bounds = array<i64: 1, 1, 10, 10, 128>}, {transform_indices = @transform_3, window_bounds = array<i64: 1, 1, 8, 8, 128>}, {pipeline_mode = #tpu.pipeline_mode<synchronous>, transform_indices = @transform_4, window_bounds = array<i64: 3, 3, 3, 128, 128>}, {pipeline_mode = #tpu.pipeline_mode<synchronous>, transform_indices = @transform_5, window_bounds = array<i64: 1, 128>}, {pipeline_mode = #tpu.pipeline_mode<synchronous>, transform_indices = @transform_6, window_bounds = array<i64: 128, 128>}, {pipeline_mode = #tpu.pipeline_mode<synchronous>, transform_indices = @transform_7, window_bounds = array<i64: 1, 128>}, {transform_indices = @transform_8, window_bounds = array<i64: 1, 1, 8, 8, 128>}]} {
    %cst = arith.constant 0.000000e+00 : f32
    %0 = vector.broadcast %cst : f32 to vector<64x128xf32>
    %c0 = arith.constant 0 : index
    %c0_0 = arith.constant 0 : index
    %c0_1 = arith.constant 0 : index
    %c0_2 = arith.constant 0 : index
    %c0_3 = arith.constant 0 : index
    %1 = vector.load %arg2[%c0, %c0_0, %c0_1, %c0_2, %c0_3] : memref<1x1x10x10x128xbf16, #tpu.memory_space<vmem>>, vector<1x1x10x10x128xbf16>
    %2 = vector.shape_cast %1 : vector<1x1x10x10x128xbf16> to vector<10x10x128xbf16>
    %3 = vector.extract_strided_slice %2 {offsets = [0, 0, 0], sizes = [8, 8, 128], strides = [1, 1, 1]} : vector<10x10x128xbf16> to vector<8x8x128xbf16>
    %4 = vector.shape_cast %3 : vector<8x8x128xbf16> to vector<64x128xbf16>
    %c0_4 = arith.constant 0 : index
    %c0_5 = arith.constant 0 : index
    %c0_6 = arith.constant 0 : index
    %c0_7 = arith.constant 0 : index
    %c0_8 = arith.constant 0 : index
    %5 = vector.load %arg6[%c0_4, %c0_5, %c0_6, %c0_7, %c0_8] : memref<3x3x3x128x128xbf16, #tpu.memory_space<vmem>>, vector<1x1x1x128x128xbf16>
    %6 = vector.shape_cast %5 : vector<1x1x1x128x128xbf16> to vector<128x128xbf16>
    %cst_9 = arith.constant dense<0.000000e+00> : vector<64x128xf32>
    %7 = tpu.matmul %4, %6, %cst_9 {dimension_numbers = #tpu.dot_dimension_numbers<[1], [0], [0], [1], [0, 0, 1, 1], [], []>} : vector<64x128xbf16>, vector<128x128xbf16>, vector<64x128xf32> -> vector<64x128xf32>
    %8 = arith.addf %0, %7 : vector<64x128xf32>
    %9 = vector.extract_strided_slice %2 {offsets = [0, 1, 0], sizes = [8, 8, 128], strides = [1, 1, 1]} : vector<10x10x128xbf16> to vector<8x8x128xbf16>
    %10 = vector.shape_cast %9 : vector<8x8x128xbf16> to vector<64x128xbf16>
    %c0_10 = arith.constant 0 : index
    %c0_11 = arith.constant 0 : index
    %c1 = arith.constant 1 : index
    %c0_12 = arith.constant 0 : index
    %c0_13 = arith.constant 0 : index
    %11 = vector.load %arg6[%c0_10, %c0_11, %c1, %c0_12, %c0_13] : memref<3x3x3x128x128xbf16, #tpu.memory_space<vmem>>, vector<1x1x1x128x128xbf16>
    %12 = vector.shape_cast %11 : vector<1x1x1x128x128xbf16> to vector<128x128xbf16>
    %cst_14 = arith.constant dense<0.000000e+00> : vector<64x128xf32>
    %13 = tpu.matmul %10, %12, %cst_14 {dimension_numbers = #tpu.dot_dimension_numbers<[1], [0], [0], [1], [0, 0, 1, 1], [], []>} : vector<64x128xbf16>, vector<128x128xbf16>, vector<64x128xf32> -> vector<64x128xf32>
    %14 = arith.addf %8, %13 : vector<64x128xf32>
    %15 = vector.extract_strided_slice %2 {offsets = [0, 2, 0], sizes = [8, 8, 128], strides = [1, 1, 1]} : vector<10x10x128xbf16> to vector<8x8x128xbf16>
    %16 = vector.shape_cast %15 : vector<8x8x128xbf16> to vector<64x128xbf16>
    %c0_15 = arith.constant 0 : index
    %c0_16 = arith.constant 0 : index
    %c2 = arith.constant 2 : index
    %c0_17 = arith.constant 0 : index
    %c0_18 = arith.constant 0 : index
    %17 = vector.load %arg6[%c0_15, %c0_16, %c2, %c0_17, %c0_18] : memref<3x3x3x128x128xbf16, #tpu.memory_space<vmem>>, vector<1x1x1x128x128xbf16>
    %18 = vector.shape_cast %17 : vector<1x1x1x128x128xbf16> to vector<128x128xbf16>
    %cst_19 = arith.constant dense<0.000000e+00> : vector<64x128xf32>
    %19 = tpu.matmul %16, %18, %cst_19 {dimension_numbers = #tpu.dot_dimension_numbers<[1], [0], [0], [1], [0, 0, 1, 1], [], []>} : vector<64x128xbf16>, vector<128x128xbf16>, vector<64x128xf32> -> vector<64x128xf32>
    %20 = arith.addf %14, %19 : vector<64x128xf32>
    %21 = vector.extract_strided_slice %2 {offsets = [1, 0, 0], sizes = [8, 8, 128], strides = [1, 1, 1]} : vector<10x10x128xbf16> to vector<8x8x128xbf16>
    %22 = vector.shape_cast %21 : vector<8x8x128xbf16> to vector<64x128xbf16>
    %c0_20 = arith.constant 0 : index
    %c1_21 = arith.constant 1 : index
    %c0_22 = arith.constant 0 : index
    %c0_23 = arith.constant 0 : index
    %c0_24 = arith.constant 0 : index
    %23 = vector.load %arg6[%c0_20, %c1_21, %c0_22, %c0_23, %c0_24] : memref<3x3x3x128x128xbf16, #tpu.memory_space<vmem>>, vector<1x1x1x128x128xbf16>
    %24 = vector.shape_cast %23 : vector<1x1x1x128x128xbf16> to vector<128x128xbf16>
    %cst_25 = arith.constant dense<0.000000e+00> : vector<64x128xf32>
    %25 = tpu.matmul %22, %24, %cst_25 {dimension_numbers = #tpu.dot_dimension_numbers<[1], [0], [0], [1], [0, 0, 1, 1], [], []>} : vector<64x128xbf16>, vector<128x128xbf16>, vector<64x128xf32> -> vector<64x128xf32>
    %26 = arith.addf %20, %25 : vector<64x128xf32>
    %27 = vector.extract_strided_slice %2 {offsets = [1, 1, 0], sizes = [8, 8, 128], strides = [1, 1, 1]} : vector<10x10x128xbf16> to vector<8x8x128xbf16>
    %28 = vector.shape_cast %27 : vector<8x8x128xbf16> to vector<64x128xbf16>
    %c0_26 = arith.constant 0 : index
    %c1_27 = arith.constant 1 : index
    %c1_28 = arith.constant 1 : index
    %c0_29 = arith.constant 0 : index
    %c0_30 = arith.constant 0 : index
    %29 = vector.load %arg6[%c0_26, %c1_27, %c1_28, %c0_29, %c0_30] : memref<3x3x3x128x128xbf16, #tpu.memory_space<vmem>>, vector<1x1x1x128x128xbf16>
    %30 = vector.shape_cast %29 : vector<1x1x1x128x128xbf16> to vector<128x128xbf16>
    %cst_31 = arith.constant dense<0.000000e+00> : vector<64x128xf32>
    %31 = tpu.matmul %28, %30, %cst_31 {dimension_numbers = #tpu.dot_dimension_numbers<[1], [0], [0], [1], [0, 0, 1, 1], [], []>} : vector<64x128xbf16>, vector<128x128xbf16>, vector<64x128xf32> -> vector<64x128xf32>
    %32 = arith.addf %26, %31 : vector<64x128xf32>
    %33 = vector.extract_strided_slice %2 {offsets = [1, 2, 0], sizes = [8, 8, 128], strides = [1, 1, 1]} : vector<10x10x128xbf16> to vector<8x8x128xbf16>
    %34 = vector.shape_cast %33 : vector<8x8x128xbf16> to vector<64x128xbf16>
    %c0_32 = arith.constant 0 : index
    %c1_33 = arith.constant 1 : index
    %c2_34 = arith.constant 2 : index
    %c0_35 = arith.constant 0 : index
    %c0_36 = arith.constant 0 : index
    %35 = vector.load %arg6[%c0_32, %c1_33, %c2_34, %c0_35, %c0_36] : memref<3x3x3x128x128xbf16, #tpu.memory_space<vmem>>, vector<1x1x1x128x128xbf16>
    %36 = vector.shape_cast %35 : vector<1x1x1x128x128xbf16> to vector<128x128xbf16>
    %cst_37 = arith.constant dense<0.000000e+00> : vector<64x128xf32>
    %37 = tpu.matmul %34, %36, %cst_37 {dimension_numbers = #tpu.dot_dimension_numbers<[1], [0], [0], [1], [0, 0, 1, 1], [], []>} : vector<64x128xbf16>, vector<128x128xbf16>, vector<64x128xf32> -> vector<64x128xf32>
    %38 = arith.addf %32, %37 : vector<64x128xf32>
    %39 = vector.extract_strided_slice %2 {offsets = [2, 0, 0], sizes = [8, 8, 128], strides = [1, 1, 1]} : vector<10x10x128xbf16> to vector<8x8x128xbf16>
    %40 = vector.shape_cast %39 : vector<8x8x128xbf16> to vector<64x128xbf16>
    %c0_38 = arith.constant 0 : index
    %c2_39 = arith.constant 2 : index
    %c0_40 = arith.constant 0 : index
    %c0_41 = arith.constant 0 : index
    %c0_42 = arith.constant 0 : index
    %41 = vector.load %arg6[%c0_38, %c2_39, %c0_40, %c0_41, %c0_42] : memref<3x3x3x128x128xbf16, #tpu.memory_space<vmem>>, vector<1x1x1x128x128xbf16>
    %42 = vector.shape_cast %41 : vector<1x1x1x128x128xbf16> to vector<128x128xbf16>
    %cst_43 = arith.constant dense<0.000000e+00> : vector<64x128xf32>
    %43 = tpu.matmul %40, %42, %cst_43 {dimension_numbers = #tpu.dot_dimension_numbers<[1], [0], [0], [1], [0, 0, 1, 1], [], []>} : vector<64x128xbf16>, vector<128x128xbf16>, vector<64x128xf32> -> vector<64x128xf32>
    %44 = arith.addf %38, %43 : vector<64x128xf32>
    %45 = vector.extract_strided_slice %2 {offsets = [2, 1, 0], sizes = [8, 8, 128], strides = [1, 1, 1]} : vector<10x10x128xbf16> to vector<8x8x128xbf16>
    %46 = vector.shape_cast %45 : vector<8x8x128xbf16> to vector<64x128xbf16>
    %c0_44 = arith.constant 0 : index
    %c2_45 = arith.constant 2 : index
    %c1_46 = arith.constant 1 : index
    %c0_47 = arith.constant 0 : index
    %c0_48 = arith.constant 0 : index
    %47 = vector.load %arg6[%c0_44, %c2_45, %c1_46, %c0_47, %c0_48] : memref<3x3x3x128x128xbf16, #tpu.memory_space<vmem>>, vector<1x1x1x128x128xbf16>
    %48 = vector.shape_cast %47 : vector<1x1x1x128x128xbf16> to vector<128x128xbf16>
    %cst_49 = arith.constant dense<0.000000e+00> : vector<64x128xf32>
    %49 = tpu.matmul %46, %48, %cst_49 {dimension_numbers = #tpu.dot_dimension_numbers<[1], [0], [0], [1], [0, 0, 1, 1], [], []>} : vector<64x128xbf16>, vector<128x128xbf16>, vector<64x128xf32> -> vector<64x128xf32>
    %50 = arith.addf %44, %49 : vector<64x128xf32>
    %51 = vector.extract_strided_slice %2 {offsets = [2, 2, 0], sizes = [8, 8, 128], strides = [1, 1, 1]} : vector<10x10x128xbf16> to vector<8x8x128xbf16>
    %52 = vector.shape_cast %51 : vector<8x8x128xbf16> to vector<64x128xbf16>
    %c0_50 = arith.constant 0 : index
    %c2_51 = arith.constant 2 : index
    %c2_52 = arith.constant 2 : index
    %c0_53 = arith.constant 0 : index
    %c0_54 = arith.constant 0 : index
    %53 = vector.load %arg6[%c0_50, %c2_51, %c2_52, %c0_53, %c0_54] : memref<3x3x3x128x128xbf16, #tpu.memory_space<vmem>>, vector<1x1x1x128x128xbf16>
    %54 = vector.shape_cast %53 : vector<1x1x1x128x128xbf16> to vector<128x128xbf16>
    %cst_55 = arith.constant dense<0.000000e+00> : vector<64x128xf32>
    %55 = tpu.matmul %52, %54, %cst_55 {dimension_numbers = #tpu.dot_dimension_numbers<[1], [0], [0], [1], [0, 0, 1, 1], [], []>} : vector<64x128xbf16>, vector<128x128xbf16>, vector<64x128xf32> -> vector<64x128xf32>
    %56 = arith.addf %50, %55 : vector<64x128xf32>
    %c0_56 = arith.constant 0 : index
    %c0_57 = arith.constant 0 : index
    %c0_58 = arith.constant 0 : index
    %c0_59 = arith.constant 0 : index
    %c0_60 = arith.constant 0 : index
    %57 = vector.load %arg3[%c0_56, %c0_57, %c0_58, %c0_59, %c0_60] : memref<1x1x10x10x128xbf16, #tpu.memory_space<vmem>>, vector<1x1x10x10x128xbf16>
    %58 = vector.shape_cast %57 : vector<1x1x10x10x128xbf16> to vector<10x10x128xbf16>
    %59 = vector.extract_strided_slice %58 {offsets = [0, 0, 0], sizes = [8, 8, 128], strides = [1, 1, 1]} : vector<10x10x128xbf16> to vector<8x8x128xbf16>
    %60 = vector.shape_cast %59 : vector<8x8x128xbf16> to vector<64x128xbf16>
    %c1_61 = arith.constant 1 : index
    %c0_62 = arith.constant 0 : index
    %c0_63 = arith.constant 0 : index
    %c0_64 = arith.constant 0 : index
    %c0_65 = arith.constant 0 : index
    %61 = vector.load %arg6[%c1_61, %c0_62, %c0_63, %c0_64, %c0_65] : memref<3x3x3x128x128xbf16, #tpu.memory_space<vmem>>, vector<1x1x1x128x128xbf16>
    %62 = vector.shape_cast %61 : vector<1x1x1x128x128xbf16> to vector<128x128xbf16>
    %cst_66 = arith.constant dense<0.000000e+00> : vector<64x128xf32>
    %63 = tpu.matmul %60, %62, %cst_66 {dimension_numbers = #tpu.dot_dimension_numbers<[1], [0], [0], [1], [0, 0, 1, 1], [], []>} : vector<64x128xbf16>, vector<128x128xbf16>, vector<64x128xf32> -> vector<64x128xf32>
    %64 = arith.addf %56, %63 : vector<64x128xf32>
    %65 = vector.extract_strided_slice %58 {offsets = [0, 1, 0], sizes = [8, 8, 128], strides = [1, 1, 1]} : vector<10x10x128xbf16> to vector<8x8x128xbf16>
    %66 = vector.shape_cast %65 : vector<8x8x128xbf16> to vector<64x128xbf16>
    %c1_67 = arith.constant 1 : index
    %c0_68 = arith.constant 0 : index
    %c1_69 = arith.constant 1 : index
    %c0_70 = arith.constant 0 : index
    %c0_71 = arith.constant 0 : index
    %67 = vector.load %arg6[%c1_67, %c0_68, %c1_69, %c0_70, %c0_71] : memref<3x3x3x128x128xbf16, #tpu.memory_space<vmem>>, vector<1x1x1x128x128xbf16>
    %68 = vector.shape_cast %67 : vector<1x1x1x128x128xbf16> to vector<128x128xbf16>
    %cst_72 = arith.constant dense<0.000000e+00> : vector<64x128xf32>
    %69 = tpu.matmul %66, %68, %cst_72 {dimension_numbers = #tpu.dot_dimension_numbers<[1], [0], [0], [1], [0, 0, 1, 1], [], []>} : vector<64x128xbf16>, vector<128x128xbf16>, vector<64x128xf32> -> vector<64x128xf32>
    %70 = arith.addf %64, %69 : vector<64x128xf32>
    %71 = vector.extract_strided_slice %58 {offsets = [0, 2, 0], sizes = [8, 8, 128], strides = [1, 1, 1]} : vector<10x10x128xbf16> to vector<8x8x128xbf16>
    %72 = vector.shape_cast %71 : vector<8x8x128xbf16> to vector<64x128xbf16>
    %c1_73 = arith.constant 1 : index
    %c0_74 = arith.constant 0 : index
    %c2_75 = arith.constant 2 : index
    %c0_76 = arith.constant 0 : index
    %c0_77 = arith.constant 0 : index
    %73 = vector.load %arg6[%c1_73, %c0_74, %c2_75, %c0_76, %c0_77] : memref<3x3x3x128x128xbf16, #tpu.memory_space<vmem>>, vector<1x1x1x128x128xbf16>
    %74 = vector.shape_cast %73 : vector<1x1x1x128x128xbf16> to vector<128x128xbf16>
    %cst_78 = arith.constant dense<0.000000e+00> : vector<64x128xf32>
    %75 = tpu.matmul %72, %74, %cst_78 {dimension_numbers = #tpu.dot_dimension_numbers<[1], [0], [0], [1], [0, 0, 1, 1], [], []>} : vector<64x128xbf16>, vector<128x128xbf16>, vector<64x128xf32> -> vector<64x128xf32>
    %76 = arith.addf %70, %75 : vector<64x128xf32>
    %77 = vector.extract_strided_slice %58 {offsets = [1, 0, 0], sizes = [8, 8, 128], strides = [1, 1, 1]} : vector<10x10x128xbf16> to vector<8x8x128xbf16>
    %78 = vector.shape_cast %77 : vector<8x8x128xbf16> to vector<64x128xbf16>
    %c1_79 = arith.constant 1 : index
    %c1_80 = arith.constant 1 : index
    %c0_81 = arith.constant 0 : index
    %c0_82 = arith.constant 0 : index
    %c0_83 = arith.constant 0 : index
    %79 = vector.load %arg6[%c1_79, %c1_80, %c0_81, %c0_82, %c0_83] : memref<3x3x3x128x128xbf16, #tpu.memory_space<vmem>>, vector<1x1x1x128x128xbf16>
    %80 = vector.shape_cast %79 : vector<1x1x1x128x128xbf16> to vector<128x128xbf16>
    %cst_84 = arith.constant dense<0.000000e+00> : vector<64x128xf32>
    %81 = tpu.matmul %78, %80, %cst_84 {dimension_numbers = #tpu.dot_dimension_numbers<[1], [0], [0], [1], [0, 0, 1, 1], [], []>} : vector<64x128xbf16>, vector<128x128xbf16>, vector<64x128xf32> -> vector<64x128xf32>
    %82 = arith.addf %76, %81 : vector<64x128xf32>
    %83 = vector.extract_strided_slice %58 {offsets = [1, 1, 0], sizes = [8, 8, 128], strides = [1, 1, 1]} : vector<10x10x128xbf16> to vector<8x8x128xbf16>
    %84 = vector.shape_cast %83 : vector<8x8x128xbf16> to vector<64x128xbf16>
    %c1_85 = arith.constant 1 : index
    %c1_86 = arith.constant 1 : index
    %c1_87 = arith.constant 1 : index
    %c0_88 = arith.constant 0 : index
    %c0_89 = arith.constant 0 : index
    %85 = vector.load %arg6[%c1_85, %c1_86, %c1_87, %c0_88, %c0_89] : memref<3x3x3x128x128xbf16, #tpu.memory_space<vmem>>, vector<1x1x1x128x128xbf16>
    %86 = vector.shape_cast %85 : vector<1x1x1x128x128xbf16> to vector<128x128xbf16>
    %cst_90 = arith.constant dense<0.000000e+00> : vector<64x128xf32>
    %87 = tpu.matmul %84, %86, %cst_90 {dimension_numbers = #tpu.dot_dimension_numbers<[1], [0], [0], [1], [0, 0, 1, 1], [], []>} : vector<64x128xbf16>, vector<128x128xbf16>, vector<64x128xf32> -> vector<64x128xf32>
    %88 = arith.addf %82, %87 : vector<64x128xf32>
    %89 = vector.extract_strided_slice %58 {offsets = [1, 2, 0], sizes = [8, 8, 128], strides = [1, 1, 1]} : vector<10x10x128xbf16> to vector<8x8x128xbf16>
    %90 = vector.shape_cast %89 : vector<8x8x128xbf16> to vector<64x128xbf16>
    %c1_91 = arith.constant 1 : index
    %c1_92 = arith.constant 1 : index
    %c2_93 = arith.constant 2 : index
    %c0_94 = arith.constant 0 : index
    %c0_95 = arith.constant 0 : index
    %91 = vector.load %arg6[%c1_91, %c1_92, %c2_93, %c0_94, %c0_95] : memref<3x3x3x128x128xbf16, #tpu.memory_space<vmem>>, vector<1x1x1x128x128xbf16>
    %92 = vector.shape_cast %91 : vector<1x1x1x128x128xbf16> to vector<128x128xbf16>
    %cst_96 = arith.constant dense<0.000000e+00> : vector<64x128xf32>
    %93 = tpu.matmul %90, %92, %cst_96 {dimension_numbers = #tpu.dot_dimension_numbers<[1], [0], [0], [1], [0, 0, 1, 1], [], []>} : vector<64x128xbf16>, vector<128x128xbf16>, vector<64x128xf32> -> vector<64x128xf32>
    %94 = arith.addf %88, %93 : vector<64x128xf32>
    %95 = vector.extract_strided_slice %58 {offsets = [2, 0, 0], sizes = [8, 8, 128], strides = [1, 1, 1]} : vector<10x10x128xbf16> to vector<8x8x128xbf16>
    %96 = vector.shape_cast %95 : vector<8x8x128xbf16> to vector<64x128xbf16>
    %c1_97 = arith.constant 1 : index
    %c2_98 = arith.constant 2 : index
    %c0_99 = arith.constant 0 : index
    %c0_100 = arith.constant 0 : index
    %c0_101 = arith.constant 0 : index
    %97 = vector.load %arg6[%c1_97, %c2_98, %c0_99, %c0_100, %c0_101] : memref<3x3x3x128x128xbf16, #tpu.memory_space<vmem>>, vector<1x1x1x128x128xbf16>
    %98 = vector.shape_cast %97 : vector<1x1x1x128x128xbf16> to vector<128x128xbf16>
    %cst_102 = arith.constant dense<0.000000e+00> : vector<64x128xf32>
    %99 = tpu.matmul %96, %98, %cst_102 {dimension_numbers = #tpu.dot_dimension_numbers<[1], [0], [0], [1], [0, 0, 1, 1], [], []>} : vector<64x128xbf16>, vector<128x128xbf16>, vector<64x128xf32> -> vector<64x128xf32>
    %100 = arith.addf %94, %99 : vector<64x128xf32>
    %101 = vector.extract_strided_slice %58 {offsets = [2, 1, 0], sizes = [8, 8, 128], strides = [1, 1, 1]} : vector<10x10x128xbf16> to vector<8x8x128xbf16>
    %102 = vector.shape_cast %101 : vector<8x8x128xbf16> to vector<64x128xbf16>
    %c1_103 = arith.constant 1 : index
    %c2_104 = arith.constant 2 : index
    %c1_105 = arith.constant 1 : index
    %c0_106 = arith.constant 0 : index
    %c0_107 = arith.constant 0 : index
    %103 = vector.load %arg6[%c1_103, %c2_104, %c1_105, %c0_106, %c0_107] : memref<3x3x3x128x128xbf16, #tpu.memory_space<vmem>>, vector<1x1x1x128x128xbf16>
    %104 = vector.shape_cast %103 : vector<1x1x1x128x128xbf16> to vector<128x128xbf16>
    %cst_108 = arith.constant dense<0.000000e+00> : vector<64x128xf32>
    %105 = tpu.matmul %102, %104, %cst_108 {dimension_numbers = #tpu.dot_dimension_numbers<[1], [0], [0], [1], [0, 0, 1, 1], [], []>} : vector<64x128xbf16>, vector<128x128xbf16>, vector<64x128xf32> -> vector<64x128xf32>
    %106 = arith.addf %100, %105 : vector<64x128xf32>
    %107 = vector.extract_strided_slice %58 {offsets = [2, 2, 0], sizes = [8, 8, 128], strides = [1, 1, 1]} : vector<10x10x128xbf16> to vector<8x8x128xbf16>
    %108 = vector.shape_cast %107 : vector<8x8x128xbf16> to vector<64x128xbf16>
    %c1_109 = arith.constant 1 : index
    %c2_110 = arith.constant 2 : index
    %c2_111 = arith.constant 2 : index
    %c0_112 = arith.constant 0 : index
    %c0_113 = arith.constant 0 : index
    %109 = vector.load %arg6[%c1_109, %c2_110, %c2_111, %c0_112, %c0_113] : memref<3x3x3x128x128xbf16, #tpu.memory_space<vmem>>, vector<1x1x1x128x128xbf16>
    %110 = vector.shape_cast %109 : vector<1x1x1x128x128xbf16> to vector<128x128xbf16>
    %cst_114 = arith.constant dense<0.000000e+00> : vector<64x128xf32>
    %111 = tpu.matmul %108, %110, %cst_114 {dimension_numbers = #tpu.dot_dimension_numbers<[1], [0], [0], [1], [0, 0, 1, 1], [], []>} : vector<64x128xbf16>, vector<128x128xbf16>, vector<64x128xf32> -> vector<64x128xf32>
    %112 = arith.addf %106, %111 : vector<64x128xf32>
    %c0_115 = arith.constant 0 : index
    %c0_116 = arith.constant 0 : index
    %c0_117 = arith.constant 0 : index
    %c0_118 = arith.constant 0 : index
    %c0_119 = arith.constant 0 : index
    %113 = vector.load %arg4[%c0_115, %c0_116, %c0_117, %c0_118, %c0_119] : memref<1x1x10x10x128xbf16, #tpu.memory_space<vmem>>, vector<1x1x10x10x128xbf16>
    %114 = vector.shape_cast %113 : vector<1x1x10x10x128xbf16> to vector<10x10x128xbf16>
    %115 = vector.extract_strided_slice %114 {offsets = [0, 0, 0], sizes = [8, 8, 128], strides = [1, 1, 1]} : vector<10x10x128xbf16> to vector<8x8x128xbf16>
    %116 = vector.shape_cast %115 : vector<8x8x128xbf16> to vector<64x128xbf16>
    %c2_120 = arith.constant 2 : index
    %c0_121 = arith.constant 0 : index
    %c0_122 = arith.constant 0 : index
    %c0_123 = arith.constant 0 : index
    %c0_124 = arith.constant 0 : index
    %117 = vector.load %arg6[%c2_120, %c0_121, %c0_122, %c0_123, %c0_124] : memref<3x3x3x128x128xbf16, #tpu.memory_space<vmem>>, vector<1x1x1x128x128xbf16>
    %118 = vector.shape_cast %117 : vector<1x1x1x128x128xbf16> to vector<128x128xbf16>
    %cst_125 = arith.constant dense<0.000000e+00> : vector<64x128xf32>
    %119 = tpu.matmul %116, %118, %cst_125 {dimension_numbers = #tpu.dot_dimension_numbers<[1], [0], [0], [1], [0, 0, 1, 1], [], []>} : vector<64x128xbf16>, vector<128x128xbf16>, vector<64x128xf32> -> vector<64x128xf32>
    %120 = arith.addf %112, %119 : vector<64x128xf32>
    %121 = vector.extract_strided_slice %114 {offsets = [0, 1, 0], sizes = [8, 8, 128], strides = [1, 1, 1]} : vector<10x10x128xbf16> to vector<8x8x128xbf16>
    %122 = vector.shape_cast %121 : vector<8x8x128xbf16> to vector<64x128xbf16>
    %c2_126 = arith.constant 2 : index
    %c0_127 = arith.constant 0 : index
    %c1_128 = arith.constant 1 : index
    %c0_129 = arith.constant 0 : index
    %c0_130 = arith.constant 0 : index
    %123 = vector.load %arg6[%c2_126, %c0_127, %c1_128, %c0_129, %c0_130] : memref<3x3x3x128x128xbf16, #tpu.memory_space<vmem>>, vector<1x1x1x128x128xbf16>
    %124 = vector.shape_cast %123 : vector<1x1x1x128x128xbf16> to vector<128x128xbf16>
    %cst_131 = arith.constant dense<0.000000e+00> : vector<64x128xf32>
    %125 = tpu.matmul %122, %124, %cst_131 {dimension_numbers = #tpu.dot_dimension_numbers<[1], [0], [0], [1], [0, 0, 1, 1], [], []>} : vector<64x128xbf16>, vector<128x128xbf16>, vector<64x128xf32> -> vector<64x128xf32>
    %126 = arith.addf %120, %125 : vector<64x128xf32>
    %127 = vector.extract_strided_slice %114 {offsets = [0, 2, 0], sizes = [8, 8, 128], strides = [1, 1, 1]} : vector<10x10x128xbf16> to vector<8x8x128xbf16>
    %128 = vector.shape_cast %127 : vector<8x8x128xbf16> to vector<64x128xbf16>
    %c2_132 = arith.constant 2 : index
    %c0_133 = arith.constant 0 : index
    %c2_134 = arith.constant 2 : index
    %c0_135 = arith.constant 0 : index
    %c0_136 = arith.constant 0 : index
    %129 = vector.load %arg6[%c2_132, %c0_133, %c2_134, %c0_135, %c0_136] : memref<3x3x3x128x128xbf16, #tpu.memory_space<vmem>>, vector<1x1x1x128x128xbf16>
    %130 = vector.shape_cast %129 : vector<1x1x1x128x128xbf16> to vector<128x128xbf16>
    %cst_137 = arith.constant dense<0.000000e+00> : vector<64x128xf32>
    %131 = tpu.matmul %128, %130, %cst_137 {dimension_numbers = #tpu.dot_dimension_numbers<[1], [0], [0], [1], [0, 0, 1, 1], [], []>} : vector<64x128xbf16>, vector<128x128xbf16>, vector<64x128xf32> -> vector<64x128xf32>
    %132 = arith.addf %126, %131 : vector<64x128xf32>
    %133 = vector.extract_strided_slice %114 {offsets = [1, 0, 0], sizes = [8, 8, 128], strides = [1, 1, 1]} : vector<10x10x128xbf16> to vector<8x8x128xbf16>
    %134 = vector.shape_cast %133 : vector<8x8x128xbf16> to vector<64x128xbf16>
    %c2_138 = arith.constant 2 : index
    %c1_139 = arith.constant 1 : index
    %c0_140 = arith.constant 0 : index
    %c0_141 = arith.constant 0 : index
    %c0_142 = arith.constant 0 : index
    %135 = vector.load %arg6[%c2_138, %c1_139, %c0_140, %c0_141, %c0_142] : memref<3x3x3x128x128xbf16, #tpu.memory_space<vmem>>, vector<1x1x1x128x128xbf16>
    %136 = vector.shape_cast %135 : vector<1x1x1x128x128xbf16> to vector<128x128xbf16>
    %cst_143 = arith.constant dense<0.000000e+00> : vector<64x128xf32>
    %137 = tpu.matmul %134, %136, %cst_143 {dimension_numbers = #tpu.dot_dimension_numbers<[1], [0], [0], [1], [0, 0, 1, 1], [], []>} : vector<64x128xbf16>, vector<128x128xbf16>, vector<64x128xf32> -> vector<64x128xf32>
    %138 = arith.addf %132, %137 : vector<64x128xf32>
    %139 = vector.extract_strided_slice %114 {offsets = [1, 1, 0], sizes = [8, 8, 128], strides = [1, 1, 1]} : vector<10x10x128xbf16> to vector<8x8x128xbf16>
    %140 = vector.shape_cast %139 : vector<8x8x128xbf16> to vector<64x128xbf16>
    %c2_144 = arith.constant 2 : index
    %c1_145 = arith.constant 1 : index
    %c1_146 = arith.constant 1 : index
    %c0_147 = arith.constant 0 : index
    %c0_148 = arith.constant 0 : index
    %141 = vector.load %arg6[%c2_144, %c1_145, %c1_146, %c0_147, %c0_148] : memref<3x3x3x128x128xbf16, #tpu.memory_space<vmem>>, vector<1x1x1x128x128xbf16>
    %142 = vector.shape_cast %141 : vector<1x1x1x128x128xbf16> to vector<128x128xbf16>
    %cst_149 = arith.constant dense<0.000000e+00> : vector<64x128xf32>
    %143 = tpu.matmul %140, %142, %cst_149 {dimension_numbers = #tpu.dot_dimension_numbers<[1], [0], [0], [1], [0, 0, 1, 1], [], []>} : vector<64x128xbf16>, vector<128x128xbf16>, vector<64x128xf32> -> vector<64x128xf32>
    %144 = arith.addf %138, %143 : vector<64x128xf32>
    %145 = vector.extract_strided_slice %114 {offsets = [1, 2, 0], sizes = [8, 8, 128], strides = [1, 1, 1]} : vector<10x10x128xbf16> to vector<8x8x128xbf16>
    %146 = vector.shape_cast %145 : vector<8x8x128xbf16> to vector<64x128xbf16>
    %c2_150 = arith.constant 2 : index
    %c1_151 = arith.constant 1 : index
    %c2_152 = arith.constant 2 : index
    %c0_153 = arith.constant 0 : index
    %c0_154 = arith.constant 0 : index
    %147 = vector.load %arg6[%c2_150, %c1_151, %c2_152, %c0_153, %c0_154] : memref<3x3x3x128x128xbf16, #tpu.memory_space<vmem>>, vector<1x1x1x128x128xbf16>
    %148 = vector.shape_cast %147 : vector<1x1x1x128x128xbf16> to vector<128x128xbf16>
    %cst_155 = arith.constant dense<0.000000e+00> : vector<64x128xf32>
    %149 = tpu.matmul %146, %148, %cst_155 {dimension_numbers = #tpu.dot_dimension_numbers<[1], [0], [0], [1], [0, 0, 1, 1], [], []>} : vector<64x128xbf16>, vector<128x128xbf16>, vector<64x128xf32> -> vector<64x128xf32>
    %150 = arith.addf %144, %149 : vector<64x128xf32>
    %151 = vector.extract_strided_slice %114 {offsets = [2, 0, 0], sizes = [8, 8, 128], strides = [1, 1, 1]} : vector<10x10x128xbf16> to vector<8x8x128xbf16>
    %152 = vector.shape_cast %151 : vector<8x8x128xbf16> to vector<64x128xbf16>
    %c2_156 = arith.constant 2 : index
    %c2_157 = arith.constant 2 : index
    %c0_158 = arith.constant 0 : index
    %c0_159 = arith.constant 0 : index
    %c0_160 = arith.constant 0 : index
    %153 = vector.load %arg6[%c2_156, %c2_157, %c0_158, %c0_159, %c0_160] : memref<3x3x3x128x128xbf16, #tpu.memory_space<vmem>>, vector<1x1x1x128x128xbf16>
    %154 = vector.shape_cast %153 : vector<1x1x1x128x128xbf16> to vector<128x128xbf16>
    %cst_161 = arith.constant dense<0.000000e+00> : vector<64x128xf32>
    %155 = tpu.matmul %152, %154, %cst_161 {dimension_numbers = #tpu.dot_dimension_numbers<[1], [0], [0], [1], [0, 0, 1, 1], [], []>} : vector<64x128xbf16>, vector<128x128xbf16>, vector<64x128xf32> -> vector<64x128xf32>
    %156 = arith.addf %150, %155 : vector<64x128xf32>
    %157 = vector.extract_strided_slice %114 {offsets = [2, 1, 0], sizes = [8, 8, 128], strides = [1, 1, 1]} : vector<10x10x128xbf16> to vector<8x8x128xbf16>
    %158 = vector.shape_cast %157 : vector<8x8x128xbf16> to vector<64x128xbf16>
    %c2_162 = arith.constant 2 : index
    %c2_163 = arith.constant 2 : index
    %c1_164 = arith.constant 1 : index
    %c0_165 = arith.constant 0 : index
    %c0_166 = arith.constant 0 : index
    %159 = vector.load %arg6[%c2_162, %c2_163, %c1_164, %c0_165, %c0_166] : memref<3x3x3x128x128xbf16, #tpu.memory_space<vmem>>, vector<1x1x1x128x128xbf16>
    %160 = vector.shape_cast %159 : vector<1x1x1x128x128xbf16> to vector<128x128xbf16>
    %cst_167 = arith.constant dense<0.000000e+00> : vector<64x128xf32>
    %161 = tpu.matmul %158, %160, %cst_167 {dimension_numbers = #tpu.dot_dimension_numbers<[1], [0], [0], [1], [0, 0, 1, 1], [], []>} : vector<64x128xbf16>, vector<128x128xbf16>, vector<64x128xf32> -> vector<64x128xf32>
    %162 = arith.addf %156, %161 : vector<64x128xf32>
    %163 = vector.extract_strided_slice %114 {offsets = [2, 2, 0], sizes = [8, 8, 128], strides = [1, 1, 1]} : vector<10x10x128xbf16> to vector<8x8x128xbf16>
    %164 = vector.shape_cast %163 : vector<8x8x128xbf16> to vector<64x128xbf16>
    %c2_168 = arith.constant 2 : index
    %c2_169 = arith.constant 2 : index
    %c2_170 = arith.constant 2 : index
    %c0_171 = arith.constant 0 : index
    %c0_172 = arith.constant 0 : index
    %165 = vector.load %arg6[%c2_168, %c2_169, %c2_170, %c0_171, %c0_172] : memref<3x3x3x128x128xbf16, #tpu.memory_space<vmem>>, vector<1x1x1x128x128xbf16>
    %166 = vector.shape_cast %165 : vector<1x1x1x128x128xbf16> to vector<128x128xbf16>
    %cst_173 = arith.constant dense<0.000000e+00> : vector<64x128xf32>
    %167 = tpu.matmul %164, %166, %cst_173 {dimension_numbers = #tpu.dot_dimension_numbers<[1], [0], [0], [1], [0, 0, 1, 1], [], []>} : vector<64x128xbf16>, vector<128x128xbf16>, vector<64x128xf32> -> vector<64x128xf32>
    %168 = arith.addf %162, %167 : vector<64x128xf32>
    %c0_174 = arith.constant 0 : index
    %c0_175 = arith.constant 0 : index
    %169 = vector.load %arg7[%c0_174, %c0_175] : memref<1x128xf32, #tpu.memory_space<vmem>>, vector<1x128xf32>
    %170 = vector.broadcast %169 : vector<1x128xf32> to vector<64x128xf32>
    %171 = arith.addf %168, %170 : vector<64x128xf32>
    %cst_176 = arith.constant 0.000000e+00 : f32
    %172 = vector.broadcast %cst_176 : f32 to vector<64x128xf32>
    %173 = arith.maximumf %171, %172 : vector<64x128xf32>
    %174 = arith.truncf %173 : vector<64x128xf32> to vector<64x128xbf16>
    %c0_177 = arith.constant 0 : index
    %c0_178 = arith.constant 0 : index
    %175 = vector.load %arg8[%c0_177, %c0_178] : memref<128x128xbf16, #tpu.memory_space<vmem>>, vector<128x128xbf16>
    %cst_179 = arith.constant dense<0.000000e+00> : vector<64x128xf32>
    %176 = tpu.matmul %174, %175, %cst_179 {dimension_numbers = #tpu.dot_dimension_numbers<[1], [0], [0], [1], [0, 0, 1, 1], [], []>} : vector<64x128xbf16>, vector<128x128xbf16>, vector<64x128xf32> -> vector<64x128xf32>
    %c0_180 = arith.constant 0 : index
    %c0_181 = arith.constant 0 : index
    %177 = vector.load %arg9[%c0_180, %c0_181] : memref<1x128xf32, #tpu.memory_space<vmem>>, vector<1x128xf32>
    %178 = vector.broadcast %177 : vector<1x128xf32> to vector<64x128xf32>
    %179 = arith.addf %176, %178 : vector<64x128xf32>
    %c0_182 = arith.constant 0 : index
    %c0_183 = arith.constant 0 : index
    %c0_184 = arith.constant 0 : index
    %c0_185 = arith.constant 0 : index
    %c0_186 = arith.constant 0 : index
    %180 = vector.load %arg5[%c0_182, %c0_183, %c0_184, %c0_185, %c0_186] : memref<1x1x8x8x128xf32, #tpu.memory_space<vmem>>, vector<1x1x8x8x128xf32>
    %181 = vector.shape_cast %180 : vector<1x1x8x8x128xf32> to vector<8x8x128xf32>
    %182 = vector.shape_cast %181 : vector<8x8x128xf32> to vector<64x128xf32>
    %183 = arith.addf %179, %182 : vector<64x128xf32>
    %cst_187 = arith.constant 0.000000e+00 : f32
    %184 = vector.broadcast %cst_187 : f32 to vector<64x128xf32>
    %185 = arith.maximumf %183, %184 : vector<64x128xf32>
    %186 = vector.shape_cast %185 : vector<64x128xf32> to vector<1x1x8x8x128xf32>
    %c0_188 = arith.constant 0 : index
    %c0_189 = arith.constant 0 : index
    %c0_190 = arith.constant 0 : index
    %c0_191 = arith.constant 0 : index
    %c0_192 = arith.constant 0 : index
    %187 = vector.load %arg10[%c0_188, %c0_189, %c0_190, %c0_191, %c0_192] : memref<1x1x8x8x128xf32, #tpu.memory_space<vmem>>, vector<1x1x8x8x128xf32>
    tpu.vector_store %arg10[%c0_188, %c0_189, %c0_190, %c0_191, %c0_192], %186 {strides = array<i32>} : memref<1x1x8x8x128xf32, #tpu.memory_space<vmem>>, vector<1x1x8x8x128xf32>,
    return
  }
  func.func @transform_0(%arg0: i32, %arg1: i32) -> (i32, i32, i32, i32, i32) {
    %c0_i32 = arith.constant 0 : i32
    %c0_i32_0 = arith.constant 0 : i32
    %c0_i32_1 = arith.constant 0 : i32
    %c0_i32_2 = arith.constant 0 : i32
    return %arg0, %arg1, %c0_i32, %c0_i32_0, %c0_i32_1 : i32, i32, i32, i32, i32
  }
  func.func @transform_1(%arg0: i32, %arg1: i32) -> (i32, i32, i32, i32, i32) {
    %c1_i32 = arith.constant 1 : i32
    %0 = arith.addi %arg1, %c1_i32 : i32
    %c0_i32 = arith.constant 0 : i32
    %c0_i32_0 = arith.constant 0 : i32
    %c0_i32_1 = arith.constant 0 : i32
    %c0_i32_2 = arith.constant 0 : i32
    return %arg0, %0, %c0_i32, %c0_i32_0, %c0_i32_1 : i32, i32, i32, i32, i32
  }
  func.func @transform_2(%arg0: i32, %arg1: i32) -> (i32, i32, i32, i32, i32) {
    %c2_i32 = arith.constant 2 : i32
    %0 = arith.addi %arg1, %c2_i32 : i32
    %c0_i32 = arith.constant 0 : i32
    %c0_i32_0 = arith.constant 0 : i32
    %c0_i32_1 = arith.constant 0 : i32
    %c0_i32_2 = arith.constant 0 : i32
    return %arg0, %0, %c0_i32, %c0_i32_0, %c0_i32_1 : i32, i32, i32, i32, i32
  }
  func.func @transform_3(%arg0: i32, %arg1: i32) -> (i32, i32, i32, i32, i32) {
    %c0_i32 = arith.constant 0 : i32
    %c0_i32_0 = arith.constant 0 : i32
    %c0_i32_1 = arith.constant 0 : i32
    %c0_i32_2 = arith.constant 0 : i32
    return %arg0, %arg1, %c0_i32, %c0_i32_0, %c0_i32_1 : i32, i32, i32, i32, i32
  }
  func.func @transform_4(%arg0: i32, %arg1: i32) -> (i32, i32, i32, i32, i32) {
    %c0_i32 = arith.constant 0 : i32
    %c0_i32_0 = arith.constant 0 : i32
    %c0_i32_1 = arith.constant 0 : i32
    %c0_i32_2 = arith.constant 0 : i32
    %c0_i32_3 = arith.constant 0 : i32
    %c0_i32_4 = arith.constant 0 : i32
    return %c0_i32, %c0_i32_0, %c0_i32_1, %c0_i32_2, %c0_i32_3 : i32, i32, i32, i32, i32
  }
  func.func @transform_5(%arg0: i32, %arg1: i32) -> (i32, i32) {
    %c0_i32 = arith.constant 0 : i32
    %c0_i32_0 = arith.constant 0 : i32
    %c0_i32_1 = arith.constant 0 : i32
    return %c0_i32, %c0_i32_0 : i32, i32
  }
  func.func @transform_6(%arg0: i32, %arg1: i32) -> (i32, i32) {
    %c0_i32 = arith.constant 0 : i32
    %c0_i32_0 = arith.constant 0 : i32
    %c0_i32_1 = arith.constant 0 : i32
    return %c0_i32, %c0_i32_0 : i32, i32
  }
  func.func @transform_7(%arg0: i32, %arg1: i32) -> (i32, i32) {
    %c0_i32 = arith.constant 0 : i32
    %c0_i32_0 = arith.constant 0 : i32
    %c0_i32_1 = arith.constant 0 : i32
    return %c0_i32, %c0_i32_0 : i32, i32
  }
  func.func @transform_8(%arg0: i32, %arg1: i32) -> (i32, i32, i32, i32, i32) {
    %c0_i32 = arith.constant 0 : i32
    %c0_i32_0 = arith.constant 0 : i32
    %c0_i32_1 = arith.constant 0 : i32
    %c0_i32_2 = arith.constant 0 : i32
    return %arg0, %arg1, %c0_i32, %c0_i32_0, %c0_i32_1 : i32, i32, i32, i32, i32
  }
}

module attributes {stable_mosaic.version = 11 : i64} {
  func.func @_conv1_bn_relu_halo_kernel(%arg0: i32, %arg1: i32, %arg2: memref<1x1x8x8x128xf32, #tpu.memory_space<vmem>>, %arg3: memref<128x128xbf16, #tpu.memory_space<vmem>>, %arg4: memref<1x128xf32, #tpu.memory_space<vmem>>, %arg5: memref<1x1x10x10x128xbf16, #tpu.memory_space<vmem>>) attributes {dimension_semantics = [#tpu.dimension_semantics<parallel>, #tpu.dimension_semantics<parallel>], iteration_bounds = array<i64: 2, 10>, scalar_prefetch = 0 : i64, scratch_operands = 0 : i64, tpu.core_type = #tpu.core_type<tc>, window_params = [{transform_indices = @transform_0, window_bounds = array<i64: 1, 1, 8, 8, 128>}, {pipeline_mode = #tpu.pipeline_mode<synchronous>, transform_indices = @transform_1, window_bounds = array<i64: 128, 128>}, {pipeline_mode = #tpu.pipeline_mode<synchronous>, transform_indices = @transform_2, window_bounds = array<i64: 1, 128>}, {transform_indices = @transform_3, window_bounds = array<i64: 1, 1, 10, 10, 128>}]} {
    %cst = arith.constant 0.000000e+00 : bf16
    %0 = vector.broadcast %cst : bf16 to vector<1x1x10x10x128xbf16>
    %c0 = arith.constant 0 : index
    %c0_0 = arith.constant 0 : index
    %c0_1 = arith.constant 0 : index
    %c0_2 = arith.constant 0 : index
    %c0_3 = arith.constant 0 : index
    %1 = vector.load %arg5[%c0, %c0_0, %c0_1, %c0_2, %c0_3] : memref<1x1x10x10x128xbf16, #tpu.memory_space<vmem>>, vector<1x1x10x10x128xbf16>
    tpu.vector_store %arg5[%c0, %c0_0, %c0_1, %c0_2, %c0_3], %0 {strides = array<i32>} : memref<1x1x10x10x128xbf16, #tpu.memory_space<vmem>>, vector<1x1x10x10x128xbf16>,
    %c1_i32 = arith.constant 1 : i32
    %2 = arith.cmpi sge, %arg1, %c1_i32 : i32
    %c8_i32 = arith.constant 8 : i32
    %3 = arith.cmpi sle, %arg1, %c8_i32 : i32
    %4 = arith.andi %2, %3 : i1
    %5 = arith.extui %4 : i1 to i32
    %c0_i32 = arith.constant 0 : i32
    %6 = arith.cmpi ne, %5, %c0_i32 : i32
    scf.if %6 {
      %c0_4 = arith.constant 0 : index
      %c0_5 = arith.constant 0 : index
      %c0_6 = arith.constant 0 : index
      %c0_7 = arith.constant 0 : index
      %c0_8 = arith.constant 0 : index
      %7 = vector.load %arg2[%c0_4, %c0_5, %c0_6, %c0_7, %c0_8] : memref<1x1x8x8x128xf32, #tpu.memory_space<vmem>>, vector<1x1x8x8x128xf32>
      %8 = vector.shape_cast %7 : vector<1x1x8x8x128xf32> to vector<8x8x128xf32>
      %9 = vector.shape_cast %8 : vector<8x8x128xf32> to vector<64x128xf32>
      %10 = arith.truncf %9 : vector<64x128xf32> to vector<64x128xbf16>
      %c0_9 = arith.constant 0 : index
      %c0_10 = arith.constant 0 : index
      %11 = vector.load %arg3[%c0_9, %c0_10] : memref<128x128xbf16, #tpu.memory_space<vmem>>, vector<128x128xbf16>
      %cst_11 = arith.constant dense<0.000000e+00> : vector<64x128xf32>
      %12 = tpu.matmul %10, %11, %cst_11 {dimension_numbers = #tpu.dot_dimension_numbers<[1], [0], [0], [1], [0, 0, 1, 1], [], []>} : vector<64x128xbf16>, vector<128x128xbf16>, vector<64x128xf32> -> vector<64x128xf32>
      %c0_12 = arith.constant 0 : index
      %c0_13 = arith.constant 0 : index
      %13 = vector.load %arg4[%c0_12, %c0_13] : memref<1x128xf32, #tpu.memory_space<vmem>>, vector<1x128xf32>
      %14 = vector.broadcast %13 : vector<1x128xf32> to vector<64x128xf32>
      %15 = arith.addf %12, %14 : vector<64x128xf32>
      %cst_14 = arith.constant 0.000000e+00 : f32
      %16 = vector.broadcast %cst_14 : f32 to vector<64x128xf32>
      %17 = arith.maximumf %15, %16 : vector<64x128xf32>
      %18 = arith.truncf %17 : vector<64x128xf32> to vector<64x128xbf16>
      %19 = vector.shape_cast %18 : vector<64x128xbf16> to vector<8x8x128xbf16>
      %c0_15 = arith.constant 0 : index
      %c0_16 = arith.constant 0 : index
      %c1 = arith.constant 1 : index
      %c1_17 = arith.constant 1 : index
      %c0_18 = arith.constant 0 : index
      %20 = vector.load %arg5[%c0_15, %c0_16, %c1, %c1_17, %c0_18] : memref<1x1x10x10x128xbf16, #tpu.memory_space<vmem>>, vector<1x1x8x8x128xbf16>
      %21 = vector.shape_cast %20 : vector<1x1x8x8x128xbf16> to vector<8x8x128xbf16>
      %22 = vector.shape_cast %19 : vector<8x8x128xbf16> to vector<1x1x8x8x128xbf16>
      tpu.vector_store %arg5[%c0_15, %c0_16, %c1, %c1_17, %c0_18], %22 {strides = array<i32>} : memref<1x1x10x10x128xbf16, #tpu.memory_space<vmem>>, vector<1x1x8x8x128xbf16>,
    } else {
    }
    return
  }
  func.func @transform_0(%arg0: i32, %arg1: i32) -> (i32, i32, i32, i32, i32) {
    %c1_i32 = arith.constant 1 : i32
    %0 = arith.subi %arg1, %c1_i32 : i32
    %c0_i32 = arith.constant 0 : i32
    %c7_i32 = arith.constant 7 : i32
    %1 = arith.maxsi %c0_i32, %0 : i32
    %2 = arith.minsi %c7_i32, %1 : i32
    %c0_i32_0 = arith.constant 0 : i32
    %c0_i32_1 = arith.constant 0 : i32
    %c0_i32_2 = arith.constant 0 : i32
    %c0_i32_3 = arith.constant 0 : i32
    return %arg0, %2, %c0_i32_0, %c0_i32_1, %c0_i32_2 : i32, i32, i32, i32, i32
  }
  func.func @transform_1(%arg0: i32, %arg1: i32) -> (i32, i32) {
    %c0_i32 = arith.constant 0 : i32
    %c0_i32_0 = arith.constant 0 : i32
    %c0_i32_1 = arith.constant 0 : i32
    return %c0_i32, %c0_i32_0 : i32, i32
  }
  func.func @transform_2(%arg0: i32, %arg1: i32) -> (i32, i32) {
    %c0_i32 = arith.constant 0 : i32
    %c0_i32_0 = arith.constant 0 : i32
    %c0_i32_1 = arith.constant 0 : i32
    return %c0_i32, %c0_i32_0 : i32, i32
  }
  func.func @transform_3(%arg0: i32, %arg1: i32) -> (i32, i32, i32, i32, i32) {
    %c0_i32 = arith.constant 0 : i32
    %c0_i32_0 = arith.constant 0 : i32
    %c0_i32_1 = arith.constant 0 : i32
    %c0_i32_2 = arith.constant 0 : i32
    return %arg0, %arg1, %c0_i32, %c0_i32_0, %c0_i32_1 : i32, i32, i32, i32, i32
  }
}

</mosaic_0001>

<bundles_post_ra>
// kernel: bottleneck_forward.2
= control target key start
LH: loop header
LB: loop body
LE: loop exit
PB: predicated region body
PF: predicated region fallthrough
CT: control target
= control target key end

     0   :  { %s935_s12 = smov 0   ;;  %s937_s13 = smov 0   ;;  %s1132_s0 = inlined_call_operand.vmem [shape: f32[2,8,8,8,128], index: 0, kind: input, shape index: {}]   ;;  %s1133_s1 = inlined_call_operand.vmem [shape: bf16[128,128], index: 1, kind: input, shape index: {}]   ;;  %s1134_s2 = inlined_call_operand.vmem [shape: f32[1,128], index: 2, kind: input, shape index: {}]   ;;  %s1135_s3 = inlined_call_operand.vmem [shape: bf16[2,10,10,10,128], index: 3, kind: output, shape index: {}]  }
   0x1   :  { %s939_s14 = smov 0   ;;  %s941_s15 = smov 0  }
   0x2   :  { %s943_s16 = smov 0  }
   0x3 LB: > { %s22_s17 = sadd.s32 1, %s904_s14  ;;  %s25_s18 = sadd.s32 1, %s908_s15  ;;  %s912_s16 = sphi %s943_s16, %s13_s16   ;;  %s908_s15 = sphi %s941_s15, %s1143_s15   ;;  %s904_s14 = sphi %s939_s14, %s1142_s14   ;;  %s900_s13 = sphi %s937_s13, %s1141_s13   ;;  %s896_s12 = sphi %s935_s12, %s1140_s12  }
   0x4   : > { %p23_p0 = scmp.ge.s32.totalorder %s22_s17, 10  ;;  %p695_p1 = scmp.ge.s32.totalorder %s912_s16, 1 }
   0x5   : > { %p177_p2 = scmp.lt.s32.totalorder %s912_s16, 21 }
   0x6   : > { %s1145_s17 = smov (%p23_p0, %s22_s17), 0  ;;  %s1147_s18 = smov (!%p23_p0, %s25_s18), %s908_s15 }
   0x7   : > { %p178_p3 = pnand %p695_p1, %p177_p2  ;;  %p27_p4 = scmp.ge.s32.totalorder %s1147_s18, 2 }
   0x8   : > { %s696_s19 = sadd.s32 (!%p178_p3), 4294967295, %s896_s12  ;;  %p219_p5 = scmp.lt.s32.totalorder (!%p178_p3), %s900_s13, 1  ;;  %v914_v0 = vmov (!%p178_p3), 0  }
   0x9   : > { %s1149_s18 = smov (%p27_p4, %s1147_s18), 0  ;;  %181 = sbr.rel (%p178_p3) target bundleno = 288 (0x120), region = 32 }
   0xa   : > { %p215_p6 = scmp.gt.s32.totalorder (!%p178_p3), %s696_s19, 0  ;;  %p697_p7 = scmp.lt.s32.totalorder (!%p178_p3), %s696_s19, 7 }
   0xb   : > { %p235_p8 = scmp.lt.s32.totalorder (!%p178_p3), %s896_s12, 9  ;;  %p263_p10 = scmp.ge.s32.totalorder (!%p178_p3), %s896_s12, 1 }
   0xc   : > { %p264_p11 = scmp.le.s32.totalorder (!%p178_p3), %s896_s12, 8 }
   0xe   : > { %p265_p12 = pnand (!%p178_p3), %p264_p11, %p263_p10 }
  0x10   : > { %s1151_s13 = smov (!%p219_p5, %s900_s13), 1  ;;  %s1153_s19 = smov (!%p215_p6, %s696_s19), 0 }
  0x11   : > { %s703_s20 = sshll.u32 %s1151_s13, 6  ;;  %s1155_s19 = smov (!%p697_p7, %s1153_s19), 7  ;;  %v866_v1 = vld [vmem:[%s1133_s1] sm:$0xff] (!%p265_p12)   ;;  %v867_v2 = vld [vmem:[%s1133_s1 + $0x8] sm:$0xff] (!%p265_p12)   ;;  %v868_v3 = vld [vmem:[%s1133_s1 + $0x10] sm:$0xff] (!%p265_p12)   ;;  %vm530_vm0 = vcmask (!%p265_p12), 1043456  }
  0x12   : > { %s236_s21 = scalar_select %p235_p8, %s896_s12, 9 }
  0x13   : > { %p221_p9 = scmp.lt.s32.totalorder %s1155_s19, 7  ;;  %s824_s22 = smul.u32 200, %s1151_s13  ;;  %783 = vmatprep.subr.bf16.mxu0 (!%p265_p12), %v866_v1  ;;  %807 = vmatprep.subr.bf16.mxu1 (!%p265_p12), %v866_v1  ;;  %v869_v4 = vld [vmem:[%s1133_s1 + $0x18] sm:$0xff] (!%p265_p12)   ;;  %v870_v11 = vld [vmem:[%s1133_s1 + $0x20] sm:$0xff] (!%p265_p12)   ;;  %v871_v12 = vld [vmem:[%s1133_s1 + $0x28] sm:$0xff] (!%p265_p12)   ;;  %vm536_vm2 = vcmask (!%p265_p12), 1040384  }
  0x14   : > { %s823_s23 = smul.u32 20, %s236_s21  ;;  %784 = vmatpush3.bf16.msra.mxu0 (!%p265_p12), %v866_v1  ;;  %815 = vmatpush3.bf16.msra.mxu1 (!%p265_p12), %v866_v1  ;;  %v872_v13 = vld [vmem:[%s1133_s1 + $0x30] sm:$0xff] (!%p265_p12)   ;;  %v873_v14 = vld [vmem:[%s1133_s1 + $0x38] sm:$0xff] (!%p265_p12)   ;;  %v706_v21 = vld [vmem:[%s1134_s2] ss:$0 sm:$0xff] (!%p265_p12) }
  0x15   : > { %s1157_s19 = smov (!%p221_p9, %s1155_s19), 7  ;;  %785 = vmatprep.subr.bf16.mxu0 (!%p265_p12), %v867_v2  ;;  %808 = vmatprep.subr.bf16.mxu1 (!%p265_p12), %v867_v2  ;;  %vm531_vm1 = vsmask.f32 (!%p265_p12), 7938  ;;  %vm537_vm3 = vsmask.f32 (!%p265_p12), 256 }
  0x16   : > { %s239_s24 = sadd.s32 %s824_s22, %s823_s23  ;;  %s702_s25 = sshll.u32 %s1157_s19, 3  ;;  %vm1045_vm4 = vmand (!%p265_p12), %vm530_vm0, %vm531_vm1 }
  0x17   : > { %s705_s26 = sshll.u32 %s239_s24, 2  ;;  %s225_s27 = sadd.s32 %s703_s20, %s702_s25  ;;  %vm1053_vm5 = vmand (!%p265_p12), %vm536_vm2, %vm537_vm3 }
  0x18   : > { %s975_s30 = scalar_lea.vmem %s1135_s3, %s705_s26  ;;  %s704_s4 = sshll.u32 %s225_s27, 3  ;;  %786 = vmatpush3.bf16.msra.mxu0 (!%p265_p12), %v867_v2  ;;  %816 = vmatpush3.bf16.msra.mxu1 (!%p265_p12), %v867_v2 }
  0x19   : > { %243 = vst [vmem:[%s975_s30] sm:$0xf] %v914_v0  ;;  %244 = vst [vmem:[%s975_s30 + $0x4] sm:$0x1] %v914_v0  ;;  %s1004_s7 = scalar_lea.vmem %s1132_s0, %s704_s4  ;;  %787 = vmatprep.subr.bf16.mxu0 (!%p265_p12), %v868_v3  ;;  %809 = vmatprep.subr.bf16.mxu1 (!%p265_p12), %v868_v3 }
  0x1a   : > { %245 = vst [vmem:[%s975_s30 + $0x8] sm:$0xf] %v914_v0  ;;  %246 = vst [vmem:[%s975_s30 + $0xc] sm:$0x1] %v914_v0  ;;  %v269_v5 = vld [vmem:[%s1004_s7] sm:$0xff] (!%p265_p12)  ;;  %v270_v6 = vld [vmem:[%s1004_s7 + $0x8] sm:$0xff] (!%p265_p12) }
  0x1b   : > { %247 = vst [vmem:[%s975_s30 + $0x10] sm:$0xf] %v914_v0  ;;  %248 = vst [vmem:[%s975_s30 + $0x14] sm:$0x1] %v914_v0  ;;  %v273_v7 = vld [vmem:[%s1004_s7 + $0x20] sm:$0xff] (!%p265_p12)  ;;  %v277_v8 = vpack.c.bf16 (!%p265_p12), %v270_v6, %v269_v5  ;;  %v274_v9 = vld [vmem:[%s1004_s7 + $0x28] sm:$0xff] (!%p265_p12) }
  0x1c   : > { %249 = vst [vmem:[%s975_s30 + $0x18] sm:$0xf] %v914_v0  ;;  %250 = vst [vmem:[%s975_s30 + $0x1c] sm:$0x1] %v914_v0  ;;  %268 = sbr.rel (%p265_p12) target bundleno = 288 (0x120), region = 36  ;;  %v279_v10 = vpack.c.bf16 (!%p265_p12), %v274_v9, %v273_v7  ;;  %788 = vmatpush3.bf16.msra.mxu0 (!%p265_p12), %v868_v3  ;;  %817 = vmatpush3.bf16.msra.mxu1 (!%p265_p12), %v868_v3  ;;  %v271_v15 = vld [vmem:[%s1004_s7 + $0x10] sm:$0xff] (!%p265_p12) }
  0x1d   : > { %251 = vst [vmem:[%s975_s30 + $0x20] sm:$0xf] %v914_v0  ;;  %252 = vst [vmem:[%s975_s30 + $0x24] sm:$0x1] %v914_v0  ;;  %789 = vmatprep.subr.bf16.mxu0 (!%p265_p12), %v869_v4  ;;  %810 = vmatprep.subr.bf16.mxu1 (!%p265_p12), %v869_v4  ;;  %v272_v16 = vld [vmem:[%s1004_s7 + $0x18] sm:$0xff] (!%p265_p12)  ;;  %v275_v17 = vld [vmem:[%s1004_s7 + $0x30] sm:$0xff] (!%p265_p12) }
  0x1e   : > { %253 = vst [vmem:[%s975_s30 + $0x28] sm:$0xf] %v914_v0  ;;  %254 = vst [vmem:[%s975_s30 + $0x2c] sm:$0x1] %v914_v0  ;;  %799 = vmatprep.mubr.bf16.mxu0 (!%p265_p12), %v277_v8  ;;  %803 = vmatprep.mubr.bf16.mxu1 (!%p265_p12), %v279_v10  ;;  %v276_v18 = vld [vmem:[%s1004_s7 + $0x38] sm:$0xff] (!%p265_p12)  ;;  %v278_v19 = vpack.c.bf16 (!%p265_p12), %v272_v16, %v271_v15 }
  0x1f   : > { %255 = vst [vmem:[%s975_s30 + $0x30] sm:$0xf] %v914_v0  ;;  %256 = vst [vmem:[%s975_s30 + $0x34] sm:$0x1] %v914_v0  ;;  %v280_v20 = vpack.c.bf16 (!%p265_p12), %v276_v18, %v275_v17 }
  0x20   : > { %257 = vst [vmem:[%s975_s30 + $0x38] sm:$0xf] %v914_v0  ;;  %258 = vst [vmem:[%s975_s30 + $0x3c] sm:$0x1] %v914_v0  ;;  %790 = vmatpush3.bf16.msra.mxu0 (!%p265_p12), %v869_v4  ;;  %818 = vmatpush3.bf16.msra.mxu1 (!%p265_p12), %v869_v4 }
  0x21   : > { %259 = vst [vmem:[%s975_s30 + $0x40] sm:$0xf] %v914_v0  ;;  %260 = vst [vmem:[%s975_s30 + $0x44] sm:$0x1] %v914_v0  ;;  %791 = vmatprep.subr.bf16.mxu0 (!%p265_p12), %v870_v11  ;;  %811 = vmatprep.subr.bf16.mxu1 (!%p265_p12), %v870_v11  ;;  %v723_v5 = vld [vmem:[%s975_s30 + $0x8] sm:$0xf] (!%p265_p12) }
  0x22   : > { %261 = vst [vmem:[%s975_s30 + $0x48] sm:$0xf] %v914_v0  ;;  %262 = vst [vmem:[%s975_s30 + $0x4c] sm:$0x1] %v914_v0  ;;  %v725_v6 = vld [vmem:[%s975_s30 + $0xc] sm:$0x1] (!%p265_p12) }
  0x23   : > { %v731_v54 = vld [vmem:[%s975_s30 + $0x18] sm:$0xf]  ;;  %v733_v55 = vld [vmem:[%s975_s30 + $0x1c] sm:$0x1] }
  0x24   : > { %792 = vmatpush3.bf16.msra.mxu0 %v870_v11  ;;  %819 = vmatpush3.bf16.msra.mxu1 %v870_v11 }
  0x25   : > { %793 = vmatprep.subr.bf16.mxu0 %v871_v12  ;;  %812 = vmatprep.subr.bf16.mxu1 %v871_v12  ;;  %v741_v15 = vld [vmem:[%s975_s30 + $0x2c] sm:$0x1] }
  0x27   : > { %v747_v63 = vld [vmem:[%s975_s30 + $0x38] sm:$0xf]  ;;  %v749_v0 = vld [vmem:[%s975_s30 + $0x3c] sm:$0x1] }
  0x28   : > { %794 = vmatpush3.bf16.msra.mxu0 %v871_v12  ;;  %820 = vmatpush3.bf16.msra.mxu1 %v871_v12 }
  0x29   : > { %795 = vmatprep.subr.bf16.mxu0 %v872_v13  ;;  %813 = vmatprep.subr.bf16.mxu1 %v872_v13 }
  0x2c   : > { %796 = vmatpush3.bf16.msra.mxu0 %v872_v13  ;;  %821 = vmatpush3.bf16.msra.mxu1 %v872_v13 }
  0x2d   : > { %797 = vmatprep.subr.bf16.mxu0 %v873_v14  ;;  %814 = vmatprep.subr.bf16.mxu1 %v873_v14 }
  0x30   : > { %798 = vmatpush3.bf16.msra.mxu0 %v873_v14  ;;  %822 = vmatpush3.bf16.msra.mxu1 %v873_v14  ;;  %v739_v14 = vld [vmem:[%s975_s30 + $0x28] sm:$0xf] }
  0x33   : > { %800 = vmatmul.mubr.bf16.vlgmr.msra.gmra.mrb[0].mxu0 %v278_v19  ;;  %804 = vmatmul.mubr.bf16.vlgmr.msra.gmra.mrb[0].mxu1 %v280_v20 }
 0x106   : > { %v801_v22 = vpop.f32.mrb[0].mxu0  ;;  %v805_v23 = vpop.f32.mrb[0].mxu1 }
 0x107   : > { %v395_v24 = vadd.f32 %v801_v22, %v706_v21  ;;  %v411_v25 = vadd.f32 %v805_v23, %v706_v21  ;;  %v386_v26 = vpop.f32.mrb[1].mxu0  ;;  %v402_v27 = vpop.f32.mrb[1].mxu1 }
 0x108   : > { %v387_v28 = vadd.f32 %v706_v21, %v386_v26  ;;  %v403_v29 = vadd.f32 %v706_v21, %v402_v27  ;;  %v802_v30 = vpop.f32.mrb[2].mxu0  ;;  %v806_v31 = vpop.f32.mrb[2].mxu1 }
 0x109   : > { %v419_v32 = vmax.f32 %v395_v24, 0.0  ;;  %v423_v33 = vmax.f32 %v411_v25, 0.0  ;;  %v398_v34 = vadd.f32 %v802_v30, %v706_v21  ;;  %v414_v35 = vadd.f32 %v806_v31, %v706_v21  ;;  %v389_v36 = vpop.f32.mrb[3].mxu0  ;;  %v405_v37 = vpop.f32.mrb[3].mxu1  ;;  %v735_v30 = vld [vmem:[%s975_s30 + $0x20] sm:$0xf] }
 0x10a   : > { %v417_v38 = vmax.f32 %v387_v28, 0.0  ;;  %v421_v39 = vmax.f32 %v403_v29, 0.0  ;;  %v390_v40 = vadd.f32 %v706_v21, %v389_v36  ;;  %v406_v41 = vadd.f32 %v706_v21, %v405_v37  ;;  %v737_v31 = vld [vmem:[%s975_s30 + $0x24] sm:$0x1] }
 0x10b   : > { %v765_v42 = vpack.c.bf16 %v419_v32, %v419_v32  ;;  %v769_v43 = vpack.c.bf16 %v423_v33, %v423_v33  ;;  %v420_v44 = vmax.f32 %v398_v34, 0.0  ;;  %v424_v45 = vmax.f32 %v414_v35, 0.0  ;;  %v751_v32 = vld [vmem:[%s975_s30 + $0x40] sm:$0xf]  ;;  %v753_v33 = vld [vmem:[%s975_s30 + $0x44] sm:$0x1] }
 0x10c   : > { %v763_v46 = vpack.c.bf16 %v417_v38, %v417_v38  ;;  %v767_v47 = vpack.c.bf16 %v421_v39, %v421_v39  ;;  %v418_v48 = vmax.f32 %v390_v40, 0.0  ;;  %v422_v49 = vmax.f32 %v406_v41, 0.0  ;;  %v727_v40 = vld [vmem:[%s975_s30 + $0x10] sm:$0xf] }
 0x10d   : > { %v466_v50 = vshrl.u32 %v765_v42, 16  ;;  %v469_v51 = vshll.u32 %v765_v42, 16  ;;  %v498_v52 = vshrl.u32 %v769_v43, 16  ;;  %v501_v53 = vshll.u32 %v769_v43, 16  ;;  %v729_v43 = vld [vmem:[%s975_s30 + $0x14] sm:$0x1] }
 0x10e   : > { %v450_v56 = vshrl.u32 %v763_v46, 16  ;;  %v453_v57 = vshll.u32 %v763_v46, 16  ;;  %v482_v58 = vshrl.u32 %v767_v47, 16  ;;  %v485_v59 = vshll.u32 %v767_v47, 16 }
 0x10f   : > { %v468_v60 = vrot.slane %v466_v50, 7  ;;  %v500_v62 = vrot.slane %v498_v52, 7  ;;  %v766_v1 = vpack.c.bf16 %v420_v44, %v420_v44  ;;  %v770_v2 = vpack.c.bf16 %v424_v45, %v424_v45  ;;  %v743_v50 = vld [vmem:[%s975_s30 + $0x30] sm:$0xf] }
 0x110   : > { %v452_v4 = vrot.slane %v450_v56, 7  ;;  %v484_v7 = vrot.slane %v482_v58, 7  ;;  %v764_v8 = vpack.c.bf16 %v418_v48, %v418_v48  ;;  %v768_v9 = vpack.c.bf16 %v422_v49, %v422_v49 }
 0x111   : > { %v471_v10 = vor.u32 %v469_v51, %v468_v60  ;;  %v472_v11 = vrot.slane %v468_v60, 4  ;;  %v503_v12 = vor.u32 %v501_v53, %v500_v62  ;;  %v504_v13 = vrot.slane %v500_v62, 4  ;;  %v745_v51 = vld [vmem:[%s975_s30 + $0x34] sm:$0x1] }
 0x112   : > { %v455_v16 = vor.u32 %v453_v57, %v452_v4  ;;  %v456_v17 = vrot.slane %v452_v4, 4  ;;  %v487_v18 = vor.u32 %v485_v59, %v484_v7  ;;  %v488_v19 = vrot.slane %v484_v7, 4 }
 0x113   : > { %v549_v20 = vsel %vm1045_vm4, %v471_v10, %v731_v54  ;;  %v552_v21 = vsel %vm1053_vm5, %v472_v11, %v733_v55  ;;  %v573_v22 = vsel %vm1045_vm4, %v503_v12, %v747_v63  ;;  %v576_v23 = vsel %vm1053_vm5, %v504_v13, %v749_v0 }
 0x114   : > { %732 = vst [vmem:[%s975_s30 + $0x18] sm:$0xf] %v549_v20  ;;  %734 = vst [vmem:[%s975_s30 + $0x1c] sm:$0x1] %v552_v21  ;;  %v534_v24 = vsel %vm1045_vm4, %v455_v16, %v723_v5  ;;  %v540_v25 = vsel %vm1053_vm5, %v456_v17, %v725_v6  ;;  %v561_v26 = vsel %vm1045_vm4, %v487_v18, %v739_v14  ;;  %v474_v28 = vshrl.u32 %v766_v1, 16 }
 0x115   : > { %748 = vst [vmem:[%s975_s30 + $0x38] sm:$0xf] %v573_v22  ;;  %750 = vst [vmem:[%s975_s30 + $0x3c] sm:$0x1] %v576_v23  ;;  %v564_v27 = vsel %vm1053_vm5, %v488_v19, %v741_v15  ;;  %v506_v29 = vshrl.u32 %v770_v2, 16  ;;  %v458_v34 = vshrl.u32 %v764_v8, 16 }
 0x116   : > { %724 = vst [vmem:[%s975_s30 + $0x8] sm:$0xf] %v534_v24  ;;  %726 = vst [vmem:[%s975_s30 + $0xc] sm:$0x1] %v540_v25  ;;  %v490_v35 = vshrl.u32 %v768_v9, 16  ;;  %v476_v36 = vrot.slane %v474_v28, 7 }
 0x117   : > { %740 = vst [vmem:[%s975_s30 + $0x28] sm:$0xf] %v561_v26  ;;  %742 = vst [vmem:[%s975_s30 + $0x2c] sm:$0x1] %v564_v27  ;;  %v477_v37 = vshll.u32 %v766_v1, 16  ;;  %v508_v38 = vrot.slane %v506_v29, 7 }
 0x118   : > { %v509_v39 = vshll.u32 %v770_v2, 16  ;;  %v460_v41 = vrot.slane %v458_v34, 7  ;;  %v461_v42 = vshll.u32 %v764_v8, 16  ;;  %v492_v44 = vrot.slane %v490_v35, 7 }
 0x119   : > { %v493_v45 = vshll.u32 %v768_v9, 16  ;;  %v479_v46 = vor.u32 %v477_v37, %v476_v36  ;;  %v480_v47 = vrot.slane %v476_v36, 4  ;;  %v512_v49 = vrot.slane %v508_v38, 4 }
 0x11a   : > { %v511_v48 = vor.u32 %v509_v39, %v508_v38  ;;  %v463_v52 = vor.u32 %v461_v42, %v460_v41  ;;  %v464_v53 = vrot.slane %v460_v41, 4  ;;  %v496_v55 = vrot.slane %v492_v44, 4 }
 0x11b   : > { %v495_v54 = vor.u32 %v493_v45, %v492_v44  ;;  %v555_v56 = vsel %vm1045_vm4, %v479_v46, %v735_v30  ;;  %v558_v57 = vsel %vm1053_vm5, %v480_v47, %v737_v31  ;;  %v582_v59 = vsel %vm1053_vm5, %v512_v49, %v753_v33 }
 0x11c   : > { %v579_v58 = vsel %vm1045_vm4, %v511_v48, %v751_v32  ;;  %736 = vst [vmem:[%s975_s30 + $0x20] sm:$0xf] %v555_v56  ;;  %738 = vst [vmem:[%s975_s30 + $0x24] sm:$0x1] %v558_v57  ;;  %v543_v60 = vsel %vm1045_vm4, %v463_v52, %v727_v40  ;;  %v546_v62 = vsel %vm1053_vm5, %v464_v53, %v729_v43 }
 0x11d   : > { %752 = vst [vmem:[%s975_s30 + $0x40] sm:$0xf] %v579_v58  ;;  %754 = vst [vmem:[%s975_s30 + $0x44] sm:$0x1] %v582_v59  ;;  %v567_v63 = vsel %vm1045_vm4, %v495_v54, %v743_v50  ;;  %v570_v0 = vsel %vm1053_vm5, %v496_v55, %v745_v51 }
 0x11e   : > { %728 = vst [vmem:[%s975_s30 + $0x10] sm:$0xf] %v543_v60  ;;  %730 = vst [vmem:[%s975_s30 + $0x14] sm:$0x1] %v546_v62 }
 0x11f   : > { %744 = vst [vmem:[%s975_s30 + $0x30] sm:$0xf] %v567_v63  ;;  %746 = vst [vmem:[%s975_s30 + $0x34] sm:$0x1] %v570_v0 }
 0x120 PF: > { %s13_s16 = sadd.s32 1, %s912_s16   ;;  %s1140_s12 = smov %s904_s14 }
 0x121   : > { %p10_p13 = scmp.ge.s32.totalorder %s13_s16, 22   ;;  %s1141_s13 = smov %s908_s15 }
 0x122   : > { %s1142_s14 = smov %s1145_s17  ;;  %s1143_s15 = smov %s1149_s18 }
 0x123   :  { %12 = sbr.rel (!%p10_p13) target bundleno = 3 (0x3), region = 67 }

// kernel: bottleneck_forward.3
= control target key start
LH: loop header
LB: loop body
LE: loop exit
PB: predicated region body
PF: predicated region fallthrough
CT: control target
= control target key end

     0   :  { %s7812_s27 = smov 0   ;;  %s7814_s28 = smov 0   ;;  %s9433_s0 = inlined_call_operand.vmem [shape: bf16[2,10,10,10,128], index: 0, kind: input, shape index: {}, may-alias: {0,1,2}]   ;;  %s9434_s1 = inlined_call_operand.vmem [shape: bf16[2,10,10,10,128], index: 1, kind: input, shape index: {}, may-alias: {0,1,2}]   ;;  %s9435_s2 = inlined_call_operand.vmem [shape: bf16[2,10,10,10,128], index: 2, kind: input, shape index: {}, may-alias: {0,1,2}]   ;;  %s9436_s3 = inlined_call_operand.vmem [shape: f32[2,8,8,8,128], index: 3, kind: input, shape index: {}]   ;;  %s9437_s4 = inlined_call_operand.vmem [shape: bf16[3,3,3,128,128], index: 4, kind: input, shape index: {}]   ;;  %s9438_s5 = inlined_call_operand.vmem [shape: f32[1,128], index: 5, kind: input, shape index: {}]   ;;  %s9439_s6 = inlined_call_operand.vmem [shape: bf16[128,128], index: 6, kind: input, shape index: {}]   ;;  %s9440_s7 = inlined_call_operand.vmem [shape: f32[1,128], index: 7, kind: input, shape index: {}]   ;;  %s9441_s8 = inlined_call_operand.vmem [shape: f32[2,8,8,8,128], index: 8, kind: output, shape index: {}]  }
   0x1   :  { %s7816_s29 = smov 0   ;;  %s7818_s30 = smov 0  }
   0x2   :  { %s7820_s9 = smov 0  }
   0x3 LB: > { %s27_s10 = sadd.s32 1, %s7757_s29  ;;  %s30_s11 = sadd.s32 1, %s7761_s30  ;;  %s7765_s9 = sphi %s7820_s9, %s18_s9   ;;  %s7761_s30 = sphi %s7818_s30, %s9475_s30   ;;  %s7757_s29 = sphi %s7816_s29, %s9474_s29   ;;  %s7753_s28 = sphi %s7814_s28, %s9473_s28   ;;  %s7749_s27 = sphi %s7812_s27, %s9472_s27  }
   0x4   : > { %p28_p0 = scmp.ge.s32.totalorder %s27_s10, 8  ;;  %p5443_p1 = scmp.ge.s32.totalorder %s7765_s9, 1 }
   0x5   : > { %p338_p2 = scmp.lt.s32.totalorder %s7765_s9, 17 }
   0x6   : > { %s9477_s10 = smov (%p28_p0, %s27_s10), 0  ;;  %s9479_s11 = smov (!%p28_p0, %s30_s11), %s7761_s30 }
   0x7   : > { %p339_p3 = pnand %p5443_p1, %p338_p2  ;;  %p32_p4 = scmp.ge.s32.totalorder %s9479_s11, 2 }
   0x9   : > { %s9481_s11 = smov (%p32_p4, %s9479_s11), 0  ;;  %342 = sbr.rel (%p339_p3) target bundleno = 928 (0x3a0), region = 52 }
  0x10   : > { %v7468_v0 = vld [vmem:[%s9437_s4 + $0x40] sm:$0xff]   ;;  %p409_p5 = scmp.lt.s32.totalorder %s7753_s28, 1  ;;  %p411_p6 = scmp.lt.s32.totalorder %s7749_s27, 9  ;;  %v7470_v2 = vld [vmem:[%s9437_s4 + $0x48] sm:$0xff]   ;;  %v7472_v4 = vld [vmem:[%s9437_s4 + $0x50] sm:$0xff]   ;;  %vm901_vm3 = vcmask 1042432  }
  0x11   : > { %v7469_v1 = vld [vmem:[%s9437_s4 + $0x340] sm:$0xff]   ;;  %6544 = vmatprep.subr.bf16.mxu1 %v7468_v0  ;;  %v7471_v3 = vld [vmem:[%s9437_s4 + $0x348] sm:$0xff]   ;;  %v7473_v5 = vld [vmem:[%s9437_s4 + $0x350] sm:$0xff]   ;;  %s418_s12 = sadd.s32 1, %s7749_s27  ;;  %vm495_vm0 = vsmask.f32 3328 }
  0x12   : > { %s9483_s28 = smov (!%p409_p5, %s7753_s28), 1  ;;  %6856 = vmatprep.subr.bf16.mxu0 %v7469_v1  ;;  %6545 = vmatpush3.bf16.msra.mxu1 %v7468_v0  ;;  %p421_p7 = scmp.lt.s32.totalorder %s418_s12, 9  ;;  %v7474_v6 = vld [vmem:[%s9437_s4 + $0x58] sm:$0xff]   ;;  %v7476_v8 = vld [vmem:[%s9437_s4 + $0x60] sm:$0xff]   ;;  %v7478_v10 = vld [vmem:[%s9437_s4 + $0x68] sm:$0xff]   ;;  %vm902_vm4 = vcmask 1046532  }
  0x13   : > { %s412_s20 = scalar_select %p411_p6, %s7749_s27, 9  ;;  %6857 = vmatpush3.bf16.msra.mxu0 %v7469_v1  ;;  %6546 = vmatprep.subr.bf16.mxu1 %v7470_v2  ;;  %v7475_v7 = vld [vmem:[%s9437_s4 + $0x358] sm:$0xff]   ;;  %v7477_v9 = vld [vmem:[%s9437_s4 + $0x360] sm:$0xff]   ;;  %v7479_v11 = vld [vmem:[%s9437_s4 + $0x368] sm:$0xff]   ;;  %vm496_vm1 = vsmask.f32 7440 }
  0x14   : > { %s7864_s23 = smul.u32 200, %s9483_s28  ;;  %6858 = vmatprep.subr.bf16.mxu0 %v7471_v3  ;;  %s9485_s12 = smov (!%p421_p7, %s418_s12), 9  ;;  %v7480_v18 = vld [vmem:[%s9437_s4 + $0x70] sm:$0xff]   ;;  %vm7940_vm2 = vmor %vm495_vm0, %vm496_vm1  ;;  %v7482_v40 = vld [vmem:[%s9437_s4 + $0x78] sm:$0xff]  }
  0x15   : > { %s7424_s26 = smul.u32 20, %s412_s20  ;;  %v7481_v29 = vld [vmem:[%s9437_s4 + $0x370] sm:$0xff]   ;;  %v7483_v46 = vld [vmem:[%s9437_s4 + $0x378] sm:$0xff]   ;;  %v7979_v57 = vld [vmem:[%s9437_s4] sm:$0xff]   ;;  %s429_s17 = sadd.s32 2, %s7749_s27 }
  0x16   : > { %6547 = vmatpush3.bf16.msra.mxu1 %v7470_v2  ;;  %s7426_s21 = smul.u32 20, %s9485_s12  ;;  %v7991_v63 = vld [vmem:[%s9437_s4 + $0x380] sm:$0xff]   ;;  %vm8191_vm5 = vmor %vm901_vm3, %vm902_vm4  ;;  %p432_p8 = scmp.lt.s32.totalorder %s429_s17, 9 }
  0x17   : > { %s415_s13 = sadd.s32 %s7864_s23, %s7424_s26  ;;  %6859 = vmatpush3.bf16.msra.mxu0 %v7471_v3  ;;  %6548 = vmatprep.subr.bf16.mxu1 %v7472_v4  ;;  %v7707_v37 = vld [vmem:[%s9437_s4 + $0x6a0] sm:$0xff]   ;;  %p442_p9 = scmp.lt.s32.totalorder %s7749_s27, 7 }
  0x18   : > { %6860 = vmatprep.subr.bf16.mxu0 %v7473_v5  ;;  %s5444_s18 = sshll.u32 %s415_s13, 2  ;;  %s7892_s12 = sadd.s32 %s7426_s21, %s7864_s23 }
  0x19   : > { %s7886_s14 = scalar_lea.vmem %s9433_s0, %s5444_s18  ;;  %s5445_s18 = sshll.u32 %s7892_s12, 2 }
  0x1a   : > { %6549 = vmatpush3.bf16.msra.mxu1 %v7472_v4  ;;  %v7899_v12 = vld [vmem:[%s7886_s14] sm:$0xf]  ;;  %v7902_v13 = vld [vmem:[%s7886_s14 + $0x4] sm:$0x1]  ;;  %v7905_v14 = vld [vmem:[%s7886_s14 + $0x8] sm:$0xf]  ;;  %s7935_s26 = scalar_lea.vmem %s9434_s1, %s5445_s18 }
  0x1b   : > { %6861 = vmatpush3.bf16.msra.mxu0 %v7473_v5  ;;  %6550 = vmatprep.subr.bf16.mxu1 %v7474_v6  ;;  %v7908_v15 = vld [vmem:[%s7886_s14 + $0xc] sm:$0x1]  ;;  %v7911_v16 = vld [vmem:[%s7886_s14 + $0x10] sm:$0xf]  ;;  %v7914_v17 = vld [vmem:[%s7886_s14 + $0x14] sm:$0x1] }
  0x1c   : > { %6862 = vmatprep.subr.bf16.mxu0 %v7475_v7  ;;  %v499_v19 = vshrl.u32 %v7899_v12, 16  ;;  %v502_v20 = vshll.u32 %v7899_v12, 16  ;;  %v508_v21 = vshll.u32 %v7902_v13, 16  ;;  %v513_v22 = vshrl.u32 %v7905_v14, 16  ;;  %v7948_v44 = vld [vmem:[%s7935_s26 + $0x8] sm:$0xf] }
  0x1d   : > { %v516_v23 = vshll.u32 %v7905_v14, 16  ;;  %v522_v24 = vshll.u32 %v7908_v15, 16  ;;  %v527_v27 = vshrl.u32 %v7911_v16, 16  ;;  %v530_v28 = vshll.u32 %v7911_v16, 16  ;;  %v7958_v50 = vld [vmem:[%s7935_s26 + $0xc] sm:$0x1] }
  0x1e   : > { %6551 = vmatpush3.bf16.msra.mxu1 %v7474_v6  ;;  %v501_v25 = vrot.slane %v499_v19, 4  ;;  %v504_v26 = vrot.slane %v502_v20, 5  ;;  %v510_v30 = vrot.slane %v508_v21, 5  ;;  %v515_v31 = vrot.slane %v513_v22, 4  ;;  %v7961_v51 = vld [vmem:[%s7935_s26 + $0x10] sm:$0xf] }
  0x1f   : > { %6863 = vmatpush3.bf16.msra.mxu0 %v7475_v7  ;;  %6552 = vmatprep.subr.bf16.mxu1 %v7476_v8  ;;  %v518_v32 = vrot.slane %v516_v23, 5  ;;  %v529_v34 = vrot.slane %v527_v27, 4  ;;  %v532_v35 = vrot.slane %v530_v28, 5  ;;  %v536_v36 = vshll.u32 %v7914_v17, 16  ;;  %v7968_v53 = vld [vmem:[%s7935_s26 + $0x14] sm:$0x1] }
  0x20   : > { %6864 = vmatprep.subr.bf16.mxu0 %v7477_v9  ;;  %v505_v33 = vor.u32 %v504_v26, %v501_v25  ;;  %v524_v39 = vrot.slane %v522_v24, 5  ;;  %v2191_v54 = vshrl.u32 %v7948_v44, 16  ;;  %v7982_v58 = vld [vmem:[%s7935_s26 + $0x18] sm:$0xf]  ;;  %v2194_v59 = vshll.u32 %v7948_v44, 16  ;;  %s9487_s17 = smov (!%p432_p8, %s429_s17), 9 }
  0x21   : > { %v519_v38 = vor.u32 %v518_v32, %v515_v31  ;;  %v533_v42 = vor.u32 %v532_v35, %v529_v34  ;;  %v538_v43 = vrot.slane %v536_v36, 5  ;;  %v2200_v62 = vshll.u32 %v7958_v50, 16  ;;  %v7994_v0 = vld [vmem:[%s7935_s26 + $0x1c] sm:$0x1]  ;;  %v8002_v7 = vld [vmem:[%s7886_s14 + $0x18] sm:$0xf] }
  0x22   : > { %6553 = vmatpush3.bf16.msra.mxu1 %v7476_v8  ;;  %v506_v41 = vrot.slane %v505_v33, 4  ;;  %v2193_v61 = vrot.slane %v2191_v54, 4  ;;  %v2196_v1 = vrot.slane %v2194_v59, 5  ;;  %v2205_v2 = vshrl.u32 %v7961_v51, 16  ;;  %v8012_v28 = vld [vmem:[%s7935_s26 + $0x20] sm:$0xf] }
  0x23   : > { %6865 = vmatpush3.bf16.msra.mxu0 %v7477_v9  ;;  %6554 = vmatprep.subr.bf16.mxu1 %v7478_v10  ;;  %v520_v47 = vrot.slane %v519_v38, 4  ;;  %v534_v49 = vrot.slane %v533_v42, 4  ;;  %v2208_v3 = vshll.u32 %v7961_v51, 16  ;;  %v2214_v4 = vshll.u32 %v7968_v53, 16  ;;  %v8022_v35 = vld [vmem:[%s7935_s26 + $0x24] sm:$0x1] }
  0x24   : > { %6866 = vmatprep.subr.bf16.mxu0 %v7479_v11  ;;  %v511_v48 = vsel %vm7940_vm2, %v506_v41, %v510_v30  ;;  %v2219_v5 = vshrl.u32 %v7982_v58, 16  ;;  %v2222_v6 = vshll.u32 %v7982_v58, 16  ;;  %v2197_v8 = vor.u32 %v2196_v1, %v2193_v61  ;;  %s7427_s19 = smul.u32 20, %s9487_s17  ;;  %s9489_s27 = smov (!%p442_p9, %s7749_s27), 7 }
  0x25   : > { %v7965_v52 = vsel %vm7940_vm2, %v520_v47, %v524_v39  ;;  %v7973_v55 = vsel %vm7940_vm2, %v534_v49, %v538_v43  ;;  %v2202_v9 = vrot.slane %v2200_v62, 5  ;;  %v2228_v21 = vshll.u32 %v7994_v0, 16  ;;  %s5447_s13 = sshll.u32 %s9489_s27, 3 }
  0x26   : > { %6555 = vmatpush3.bf16.msra.mxu1 %v7478_v10  ;;  %v5469_v56 = vcombine.low %v511_v48, %v7965_v52  ;;  %v2207_v10 = vrot.slane %v2205_v2, 4  ;;  %v2221_v19 = vrot.slane %v2219_v5, 4  ;;  %v2224_v20 = vrot.slane %v2222_v6, 5  ;;  %v7486_v2 = vld [vmem:[%s9437_s4 + $0x8] sm:$0xff]   ;;  %v8046_v5 = vld [vmem:[%s7886_s14 + $0x24] sm:$0x1]  ;;  %s436_s22 = sadd.s32 %s7427_s19, %s7864_s23 }
  0x27   : > { %6867 = vmatpush3.bf16.msra.mxu0 %v7479_v11  ;;  %6556 = vmatprep.subr.bf16.mxu1 %v7480_v18  ;;  %v2210_v11 = vrot.slane %v2208_v3, 5  ;;  %v2198_v22 = vrot.slane %v2197_v8, 4  ;;  %v2216_v24 = vrot.slane %v2214_v4, 5  ;;  %v2230_v27 = vrot.slane %v2228_v21, 5  ;;  %v8043_v4 = vld [vmem:[%s7886_s14 + $0x20] sm:$0xf] }
  0x28   : > { %6868 = vmatprep.subr.bf16.mxu0 %v7481_v29  ;;  %6560 = vmatprep.mubr.bf16.mxu1 %v5469_v56  ;;  %v2225_v26 = vor.u32 %v2224_v20, %v2221_v19  ;;  %v541_v31 = vshrl.u32 %v8002_v7, 16  ;;  %v544_v32 = vshll.u32 %v8002_v7, 16  ;;  %v2242_v54 = vshll.u32 %v8022_v35, 16  ;;  %v8155_v19 = vld [vmem:[%s7935_s26 + $0x44] sm:$0x1]  ;;  %s5446_s15 = sshll.u32 %s436_s22, 2 }
  0x29   : > { %v2211_v23 = vor.u32 %v2210_v11, %v2207_v10  ;;  %v8056_v10 = vld [vmem:[%s7886_s14 + $0x2c] sm:$0x1]  ;;  %v555_v11 = vshrl.u32 %v8043_v4, 16  ;;  %v558_v20 = vshll.u32 %v8043_v4, 16  ;;  %v564_v21 = vshll.u32 %v8046_v5, 16  ;;  %s8515_s21 = scalar_lea.vmem %s9435_s2, %s5446_s15  ;;  %s5448_s15 = sshll.u32 %s9483_s28, 6 }
  0x2a   : > { %6557 = vmatpush3.bf16.msra.mxu1 %v7480_v18  ;;  %v8006_v18 = vld [vmem:[%s7886_s14 + $0x1c] sm:$0x1]  ;;  %v2226_v33 = vrot.slane %v2225_v26, 4  ;;  %v543_v38 = vrot.slane %v541_v31, 4  ;;  %v546_v39 = vrot.slane %v544_v32, 5  ;;  %v2244_v62 = vrot.slane %v2242_v54, 5  ;;  %s446_s12 = sadd.s32 %s5448_s15, %s5447_s13 }
  0x2b   : > { %6869 = vmatpush3.bf16.msra.mxu0 %v7481_v29  ;;  %6558 = vmatprep.subr.bf16.mxu1 %v7482_v40  ;;  %v8016_v29 = vsel %vm7940_vm2, %v2198_v22, %v2202_v9  ;;  %v2212_v30 = vrot.slane %v2211_v23, 4  ;;  %v550_v34 = vshll.u32 %v8006_v18, 16  ;;  %v8053_v9 = vld [vmem:[%s7886_s14 + $0x28] sm:$0xf]  ;;  %v578_v31 = vshll.u32 %v8056_v10, 16  ;;  %s5449_s16 = sshll.u32 %s446_s12, 3 }
  0x2c   : > { %6870 = vmatprep.subr.bf16.mxu0 %v7483_v46  ;;  %9448 = vst [vmem:[#allocation2_spill] sm:$0xff] %v8016_v29  ;;  %v2231_v41 = vsel %vm7940_vm2, %v2226_v33, %v2230_v27  ;;  %v547_v48 = vor.u32 %v546_v39, %v543_v38  ;;  %v569_v22 = vshrl.u32 %v8053_v9, 16  ;;  %v572_v23 = vshll.u32 %v8053_v9, 16  ;;  %v7487_v27 = vld [vmem:[%s9437_s4 + $0x388] sm:$0xff]   ;;  %v7488_v33 = vld [vmem:[%s9437_s4 + $0x10] sm:$0xff]   ;;  %s9392_s18 = scalar_lea.vmem %s9436_s3, %s5449_s16  ;;  %s9404_s20 = scalar_lea.vmem %s9441_s8, %s5449_s16 }
  0x2d   : > { %v2217_v36 = vsel %vm7940_vm2, %v2212_v30, %v2216_v24  ;;  %v552_v43 = vrot.slane %v550_v34, 5  ;;  %v557_v30 = vrot.slane %v555_v11, 4  ;;  %v560_v34 = vrot.slane %v558_v20, 5  ;;  %v8081_v39 = vld [vmem:[%s7935_s26 + $0x28] sm:$0xf] }
  0x2e   : > { %6559 = vmatpush3.bf16.msra.mxu1 %v7482_v40  ;;  %v2233_v40 = vshrl.u32 %v8012_v28, 16  ;;  %v5826_v42 = vcombine.low %v8016_v29, %v2217_v36  ;;  %v8031_v47 = vcombine.low %v2217_v36, %v2231_v41  ;;  %v548_v61 = vrot.slane %v547_v48, 4  ;;  %v8093_v48 = vld [vmem:[%s7935_s26 + $0x34] sm:$0x1] }
  0x2f   : > { %6871 = vmatpush3.bf16.msra.mxu0 %v7483_v46  ;;  %6568 = vmatprep.subr.bf16.mxu1 %v7979_v57  ;;  %v2236_v46 = vshll.u32 %v8012_v28, 16  ;;  %v566_v36 = vrot.slane %v564_v21, 5  ;;  %v571_v38 = vrot.slane %v569_v22, 4  ;;  %v2250_v54 = vshll.u32 %v8081_v39, 16 }
  0x30   : > { %6880 = vmatprep.subr.bf16.mxu0 %v7991_v63  ;;  %v2235_v49 = vrot.slane %v2233_v40, 4  ;;  %6872 = vmatprep.mubr.bf16.mxu0 %v5826_v42  ;;  %v8040_v3 = vsel %vm7940_vm2, %v548_v61, %v552_v43  ;;  %v574_v40 = vrot.slane %v572_v23, 5  ;;  %v580_v42 = vrot.slane %v578_v31, 5  ;;  %v8084_v43 = vld [vmem:[%s7935_s26 + $0x2c] sm:$0x1]  ;;  %v7490_v61 = vld [vmem:[%s9437_s4 + $0x18] sm:$0xff]  }
  0x31   : > { %v2238_v59 = vrot.slane %v2236_v46, 5  ;;  %v8050_v6 = vcombine.low %v7973_v55, %v8040_v3  ;;  %v8087_v46 = vld [vmem:[%s7935_s26 + $0x30] sm:$0xf]  ;;  %v2270_v11 = vshll.u32 %v8093_v48, 16  ;;  %v2252_v22 = vrot.slane %v2250_v54, 5 }
  0x33   : > { %v2239_v1 = vor.u32 %v2238_v59, %v2235_v49  ;;  %9449 = vst [vmem:[#allocation3_spill] sm:$0xff] %v8050_v6  ;;  %6561 = vmatmul.mubr.bf16.vlgmr.msra.gmra.mrb[0].mxu1 %v8050_v6  ;;  %v2247_v49 = vshrl.u32 %v8081_v39, 16  ;;  %v2256_v59 = vshll.u32 %v8084_v43, 16 }
  0x34   : > { %6569 = vmatpush3.bf16.msra.mxu1 %v7979_v57  ;;  %v7489_v57 = vld [vmem:[%s9437_s4 + $0x390] sm:$0xff]  }
  0x35   : > { %v2240_v8 = vrot.slane %v2239_v1, 4  ;;  %6570 = vmatprep.subr.bf16.mxu1 %v7486_v2  ;;  %v2261_v1 = vshrl.u32 %v8087_v46, 16 }
  0x37   : > { %v8069_v26 = vsel %vm7940_vm2, %v2240_v8, %v2244_v62  ;;  %v575_v62 = vor.u32 %v574_v40, %v571_v38  ;;  %v2264_v8 = vshll.u32 %v8087_v46, 16  ;;  %v2263_v31 = vrot.slane %v2261_v1, 4 }
  0x38   : > { %v5827_v32 = vcombine.low %v2231_v41, %v8069_v26  ;;  %v561_v41 = vor.u32 %v560_v34, %v557_v30  ;;  %6571 = vmatpush3.bf16.msra.mxu1 %v7486_v2  ;;  %v2258_v30 = vrot.slane %v2256_v59, 5  ;;  %v8107_v34 = vld [vmem:[%s7886_s14 + $0x30] sm:$0xf]  ;;  %v2272_v40 = vrot.slane %v2270_v11, 5  ;;  %v7491_v59 = vld [vmem:[%s9437_s4 + $0x398] sm:$0xff]  }
  0x39   : > { %6572 = vmatprep.subr.bf16.mxu1 %v7488_v33  ;;  %v576_v23 = vrot.slane %v575_v62, 4  ;;  %v583_v11 = vshrl.u32 %v8107_v34, 16 }
  0x3a   : > { %6873 = vmatmul.mubr.bf16.vlgmr.msra.gmra.mrb[0].mxu0 %v5827_v32  ;;  %v562_v21 = vrot.slane %v561_v41, 4  ;;  %v2266_v32 = vrot.slane %v2264_v8, 5  ;;  %v8114_v41 = vld [vmem:[%s7886_s14 + $0x34] sm:$0x1]  ;;  %v8131_v8 = vld [vmem:[%s7886_s14 + $0x3c] sm:$0x1] }
  0x3b   : > { %6881 = vmatpush3.bf16.msra.mxu0 %v7991_v63  ;;  %v2249_v63 = vrot.slane %v2247_v49, 4  ;;  %v8117_v49 = vld [vmem:[%s7886_s14 + $0x38] sm:$0xf] }
  0x3c   : > { %6882 = vmatprep.subr.bf16.mxu0 %v7487_v27  ;;  %v8111_v38 = vsel %vm7940_vm2, %v562_v21, %v566_v36  ;;  %v8126_v36 = vsel %vm7940_vm2, %v576_v23, %v580_v42  ;;  %v2267_v1 = vor.u32 %v2266_v32, %v2263_v31  ;;  %v8135_v21 = vld [vmem:[%s7935_s26 + $0x38] sm:$0xf]  ;;  %6573 = vmatpush3.bf16.msra.mxu1 %v7488_v33  ;;  %v592_v23 = vshll.u32 %v8114_v41, 16  ;;  %v8147_v31 = vld [vmem:[%s7935_s26 + $0x3c] sm:$0x1] }
  0x3d   : > { %9450 = vst [vmem:[#allocation4_spill] sm:$0xff] %v8111_v38  ;;  %v2253_v2 = vor.u32 %v2252_v22, %v2249_v63  ;;  %v8142_v42 = vcombine.low %v8111_v38, %v8126_v36  ;;  %v586_v22 = vshll.u32 %v8107_v34, 16  ;;  %v8150_v32 = vld [vmem:[%s7935_s26 + $0x40] sm:$0xf]  ;;  %6574 = vmatprep.subr.bf16.mxu1 %v7490_v61  ;;  %v585_v33 = vrot.slane %v583_v11, 4 }
  0x3e   : > { %v2268_v62 = vrot.slane %v2267_v1, 4  ;;  %v597_v60 = vshrl.u32 %v8117_v49, 16  ;;  %v600_v54 = vshll.u32 %v8117_v49, 16  ;;  %v594_v20 = vrot.slane %v592_v23, 5 }
  0x3f   : > { %6883 = vmatpush3.bf16.msra.mxu0 %v7487_v27  ;;  %v7492_v27 = vld [vmem:[%s9437_s4 + $0x20] sm:$0xff]   ;;  %9451 = vst [vmem:[#allocation5_spill] sm:$0xff] %v8142_v42  ;;  %v2254_v63 = vrot.slane %v2253_v2, 4  ;;  %6564 = vmatprep.mubr.bf16.mxu1 %v8142_v42  ;;  %v588_v25 = vrot.slane %v586_v22, 5  ;;  %v606_v1 = vshll.u32 %v8131_v8, 16  ;;  %v2468_v22 = vrot.slane %v8022_v35, 5 }
  0x40   : > { %6884 = vmatprep.subr.bf16.mxu0 %v7489_v57  ;;  %v7493_v2 = vld [vmem:[%s9437_s4 + $0x3a0] sm:$0xff]   ;;  %v2273_v11 = vsel %vm7940_vm2, %v2268_v62, %v2272_v40  ;;  %v599_v56 = vrot.slane %v597_v60, 4  ;;  %v602_v29 = vrot.slane %v600_v54, 5  ;;  %6575 = vmatpush3.bf16.msra.mxu1 %v7490_v61  ;;  %v2278_v40 = vshll.u32 %v8135_v21, 16  ;;  %v7714_v35 = vld [vmem:[%s9439_s6 + $0x18] sm:$0xff]  }
  0x41   : > { %v2259_v45 = vsel %vm7940_vm2, %v2254_v63, %v2258_v30  ;;  %v589_v42 = vor.u32 %v588_v25, %v585_v33  ;;  %v608_v38 = vrot.slane %v606_v1, 5  ;;  %v2275_v30 = vshrl.u32 %v8135_v21, 16  ;;  %6576 = vmatprep.subr.bf16.mxu1 %v7492_v27  ;;  %v7496_v33 = vld [vmem:[%s9437_s4 + $0x30] sm:$0xff]  }
  0x42   : > { %v8167_v24 = vcombine.low %v8069_v26, %v2259_v45  ;;  %v5828_v6 = vcombine.low %v2259_v45, %v2273_v11  ;;  %v603_v63 = vor.u32 %v602_v29, %v599_v56  ;;  %v2284_v26 = vshll.u32 %v8147_v31, 16  ;;  %v7495_v45 = vld [vmem:[%s9437_s4 + $0x3a8] sm:$0xff]  }
  0x43   : > { %6885 = vmatpush3.bf16.msra.mxu0 %v7489_v57  ;;  %v7494_v57 = vld [vmem:[%s9437_s4 + $0x28] sm:$0xff]   ;;  %v2785_v60 = vshrl.u32 %v8150_v32, 16  ;;  %v590_v25 = vrot.slane %v589_v42, 4  ;;  %v2277_v61 = vrot.slane %v2275_v30, 4  ;;  %v2788_v54 = vshll.u32 %v8150_v32, 16 }
  0x44   : > { %6886 = vmatprep.subr.bf16.mxu0 %v7491_v59  ;;  %6876 = vmatprep.mubr.bf16.mxu0 %v5828_v6  ;;  %v2794_v62 = vshll.u32 %v8155_v19, 16  ;;  %v604_v29 = vrot.slane %v603_v63, 4  ;;  %v2280_v56 = vrot.slane %v2278_v40, 5  ;;  %v2286_v42 = vrot.slane %v2284_v26, 5  ;;  %v7497_v40 = vld [vmem:[%s9437_s4 + $0x3b0] sm:$0xff]  }
  0x45   : > { %v2787_v23 = vrot.slane %v2785_v60, 4  ;;  %6577 = vmatpush3.bf16.msra.mxu1 %v7492_v27  ;;  %v8187_v6 = vsel %vm7940_vm2, %v590_v25, %v594_v20  ;;  %v2790_v1 = vrot.slane %v2788_v54, 5  ;;  %v5748_v63 = vrot.slane %v7961_v51, 9 }
  0x46   : > { %6578 = vmatprep.subr.bf16.mxu1 %v7494_v57  ;;  %v8198_v27 = vsel %vm7940_vm2, %v604_v29, %v608_v38  ;;  %v2281_v30 = vor.u32 %v2280_v56, %v2277_v61  ;;  %v5749_v20 = vrot.slane %v7982_v58, 9  ;;  %v5481_v25 = vcombine.low %v7899_v12, %v7905_v14  ;;  %v7498_v61 = vld [vmem:[%s9437_s4 + $0x38] sm:$0xff]  }
  0x47   : > { %6887 = vmatpush3.bf16.msra.mxu0 %v7491_v59  ;;  %v5747_v59 = vrot.slane %v7948_v44, 9  ;;  %v8207_v26 = vcombine.low %v8187_v6, %v8198_v27  ;;  %v2791_v60 = vor.u32 %v2790_v1, %v2787_v23  ;;  %v2796_v44 = vrot.slane %v2794_v62, 5 }
  0x48   : > { %6888 = vmatprep.subr.bf16.mxu0 %v7493_v2  ;;  %v2282_v38 = vrot.slane %v2281_v30, 4  ;;  %v9454_v54 = vrot.slane %v7958_v50, 5  ;;  %v9455_v56 = vrot.slane %v7968_v53, 5  ;;  %v5750_v50 = vrot.slane %v8012_v28, 9 }
  0x49   : > { %6579 = vmatpush3.bf16.msra.mxu1 %v7494_v57  ;;  %v2792_v23 = vrot.slane %v2791_v60, 4  ;;  %v5751_v60 = vrot.slane %v8081_v39, 9 }
  0x4a   : > { %v8218_v29 = vsel %vm8191_vm5, %v5747_v59, %v9454_v54  ;;  %v2461_v62 = vsel %vm8191_vm5, %v5748_v63, %v9455_v56  ;;  %6580 = vmatprep.subr.bf16.mxu1 %v7496_v33  ;;  %6565 = vmatmul.mubr.bf16.gmra.mrb[4].mxu1 %v8207_v26  ;;  %v2287_v53 = vsel %vm7940_vm2, %v2282_v38, %v2286_v42  ;;  %v910_v63 = vrot.slane %v7908_v15, 5  ;;  %v7501_v15 = vld [vmem:[%s9437_s4 + $0x80] sm:$0xff]  }
  0x4b   : > { %6889 = vmatpush3.bf16.msra.mxu0 %v7493_v2  ;;  %v9456_v2 = vrot.slane %v7994_v0, 5  ;;  %v8239_v57 = vsel %vm7940_vm2, %v2792_v23, %v2796_v44  ;;  %6584 = vmatprep.mubr.bf16.mxu1 %v5481_v25  ;;  %v5855_v0 = vcombine.low %v8218_v29, %v2461_v62  ;;  %v8242_v30 = vcombine.low %v2273_v11, %v2287_v53  ;;  %v7499_v44 = vld [vmem:[%s9437_s4 + $0x3b8] sm:$0xff]  }
  0x4c   : > { %6890 = vmatprep.subr.bf16.mxu0 %v7495_v45  ;;  %v5575_v42 = vcombine.low %v8126_v36, %v8187_v6  ;;  %v2472_v25 = vrot.slane %v8084_v43, 5  ;;  %v5752_v11 = vrot.slane %v8087_v46, 9  ;;  %v2476_v54 = vrot.slane %v8093_v48, 5 }
  0x4d   : > { %v8228_v1 = vsel %vm8191_vm5, %v5749_v20, %v9456_v2  ;;  %v5829_v20 = vcombine.low %v2287_v53, %v8239_v57  ;;  %6581 = vmatpush3.bf16.msra.mxu1 %v7496_v33  ;;  %v2469_v33 = vsel %vm8191_vm5, %v5750_v50, %v2468_v22  ;;  %v8265_v43 = vcombine.low %v7911_v16, %v8002_v7  ;;  %v7502_v22 = vld [vmem:[%s9437_s4 + $0x3c0] sm:$0xff]  }
  0x4e   : > { %v8235_v59 = vcombine.low %v2461_v62, %v8228_v1  ;;  %6582 = vmatprep.subr.bf16.mxu1 %v7498_v61  ;;  %v2473_v38 = vsel %vm8191_vm5, %v5751_v60, %v2472_v25  ;;  %v5753_v62 = vrot.slane %v8135_v21, 9  ;;  %v918_v23 = vrot.slane %v8006_v18, 5 }
  0x4f   : > { %6891 = vmatpush3.bf16.msra.mxu0 %v7495_v45  ;;  %v914_v45 = vrot.slane %v7914_v17, 5  ;;  %v8267_v56 = vcombine.low %v2469_v33, %v2473_v38  ;;  %v2480_v17 = vrot.slane %v8147_v31, 5  ;;  %v2477_v48 = vsel %vm8191_vm5, %v5752_v11, %v2476_v54 }
  0x50   : > { %6892 = vmatprep.subr.bf16.mxu0 %v7497_v40  ;;  %6877 = vmatmul.mubr.bf16.gmra.mrb[4].mxu0 %v5829_v20  ;;  %v8282_v2 = vcombine.low %v8043_v4, %v8053_v9  ;;  %v5493_v31 = vrot.slane %v7899_v12, 9  ;;  %v5838_v50 = vrot.slane %v8150_v32, 9  ;;  %v5494_v53 = vrot.slane %v7905_v14, 9 }
  0x51   : > { %6896 = vmatprep.mubr.bf16.mxu0 %v5855_v0  ;;  %6583 = vmatpush3.bf16.msra.mxu1 %v7498_v61  ;;  %v2481_v18 = vsel %vm8191_vm5, %v5753_v62, %v2480_v17  ;;  %v5856_v61 = vcombine.low %v8228_v1, %v2469_v33  ;;  %v5857_v20 = vcombine.low %v2473_v38, %v2477_v48  ;;  %v2948_v60 = vrot.slane %v8155_v19, 5  ;;  %v7505_v1 = vld [vmem:[%s9437_s4 + $0x3c8] sm:$0xff]  }
  0x52   : > { %6592 = vmatprep.subr.bf16.mxu1 %v7501_v15  ;;  %v8290_v0 = vcombine.low %v2477_v48, %v2481_v18  ;;  %v9457_v25 = vrot.slane %v7902_v13, 5  ;;  %v5495_v12 = vrot.slane %v7911_v16, 9  ;;  %v5496_v33 = vrot.slane %v8002_v7, 9  ;;  %v7506_v13 = vld [vmem:[%s9437_s4 + $0x90] sm:$0xff]  }
  0x53   : > { %6893 = vmatpush3.bf16.msra.mxu0 %v7497_v40  ;;  %v7504_v40 = vld [vmem:[%s9437_s4 + $0x88] sm:$0xff]   ;;  %v5497_v38 = vrot.slane %v8043_v4, 9  ;;  %v922_v54 = vrot.slane %v8046_v5, 5  ;;  %v8326_v17 = vcombine.low %v8107_v34, %v8117_v49  ;;  %v7507_v5 = vld [vmem:[%s9437_s4 + $0x3d0] sm:$0xff]  }
  0x54   : > { %6894 = vmatprep.subr.bf16.mxu0 %v7499_v44  ;;  %6585 = vmatmul.mubr.bf16.vlgmr.msra.gmra.mrb[0].mxu1 %v8265_v43  ;;  %v907_v11 = vsel %vm8191_vm5, %v5493_v31, %v9457_v25  ;;  %v926_v25 = vrot.slane %v8056_v10, 5 }
  0x55   : > { %6593 = vmatpush3.bf16.msra.mxu1 %v7501_v15  ;;  %6588 = vmatprep.mubr.bf16.mxu1 %v8282_v2  ;;  %v8314_v15 = vsel %vm8191_vm5, %v5495_v12, %v914_v45  ;;  %v8330_v45 = vsel %vm8191_vm5, %v5838_v50, %v2948_v60  ;;  %v7509_v50 = vld [vmem:[%s9437_s4 + $0x3d8] sm:$0xff]   ;;  %v5498_v60 = vrot.slane %v8053_v9, 9  ;;  %v930_v12 = vrot.slane %v8114_v41, 5 }
  0x56   : > { %6594 = vmatprep.subr.bf16.mxu1 %v7504_v40 }
  0x57   : > { %6895 = vmatpush3.bf16.msra.mxu0 %v7499_v44  ;;  %v8304_v44 = vsel %vm8191_vm5, %v5494_v53, %v910_v63  ;;  %v8319_v63 = vsel %vm8191_vm5, %v5496_v33, %v918_v23  ;;  %v8341_v23 = vsel %vm8191_vm5, %v5497_v38, %v922_v54  ;;  %v7510_v53 = vld [vmem:[%s9437_s4 + $0xa0] sm:$0xff]   ;;  %v7518_v33 = vld [vmem:[%s9437_s4 + $0xb8] sm:$0xff]  }
  0x58   : > { %6904 = vmatprep.subr.bf16.mxu0 %v7502_v22  ;;  %v5517_v19 = vcombine.low %v907_v11, %v8304_v44  ;;  %v5602_v62 = vcombine.low %v8304_v44, %v8314_v15  ;;  %v8334_v48 = vcombine.low %v8314_v15, %v8319_v63  ;;  %v5603_v31 = vcombine.low %v8319_v63, %v8341_v23  ;;  %v7520_v38 = vld [vmem:[%s9437_s4 + $0xc0] sm:$0xff]   ;;  %v7570_v44 = vld [vmem:[%s9437_s4 + $0x168] sm:$0xff]   ;;  %v8764_v63 = vld [vmem:[%s8515_s21 + $0x38] sm:$0xf] }
  0x59   : > { %6595 = vmatpush3.bf16.msra.mxu1 %v7504_v40  ;;  %v8352_v40 = vcombine.low %v7961_v51, %v7982_v58  ;;  %v7511_v51 = vld [vmem:[%s9437_s4 + $0x3e0] sm:$0xff]   ;;  %v7512_v58 = vld [vmem:[%s9437_s4 + $0xa8] sm:$0xff]   ;;  %v5499_v11 = vrot.slane %v8107_v34, 9 }
  0x5a   : > { %6897 = vmatmul.mubr.bf16.vlgmr.msra.gmra.mrb[0].mxu0 %v5856_v61  ;;  %6596 = vmatprep.subr.bf16.mxu1 %v7506_v13  ;;  %v5858_v61 = vcombine.low %v2481_v18, %v8330_v45  ;;  %v7513_v18 = vld [vmem:[%s9437_s4 + $0x3e8] sm:$0xff]   ;;  %v7522_v54 = vld [vmem:[%s9437_s4 + $0x400] sm:$0xff]  }
  0x5b   : > { %6905 = vmatpush3.bf16.msra.mxu0 %v7502_v22  ;;  %6900 = vmatprep.mubr.bf16.mxu0 %v5857_v20  ;;  %v7508_v22 = vld [vmem:[%s9437_s4 + $0x98] sm:$0xff]   ;;  %v7515_v20 = vld [vmem:[%s9437_s4 + $0xb0] sm:$0xff]   ;;  %v8389_v10 = vsel %vm8191_vm5, %v5499_v11, %v930_v12  ;;  %v9458_v11 = vcombine.low %v7905_v14, %v7911_v16  ;;  %v7532_v12 = vld [vmem:[%s9437_s4 + $0xe8] sm:$0xff]  }
  0x5c   : > { %6906 = vmatprep.subr.bf16.mxu0 %v7505_v1  ;;  %6589 = vmatmul.mubr.bf16.gmra.mrb[4].mxu1 %v8326_v17  ;;  %v7533_v14 = vld [vmem:[%s9437_s4 + $0x428] sm:$0xff]   ;;  %v7534_v16 = vld [vmem:[%s9437_s4 + $0xf0] sm:$0xff]  }
  0x5d   : > { %6597 = vmatpush3.bf16.msra.mxu1 %v7506_v13  ;;  %6608 = vmatprep.mubr.bf16.mxu1 %v5517_v19  ;;  %v8385_v13 = vsel %vm8191_vm5, %v5498_v60, %v926_v25  ;;  %v7519_v19 = vld [vmem:[%s9437_s4 + $0x3f8] sm:$0xff]   ;;  %v7530_v25 = vld [vmem:[%s9437_s4 + $0xe0] sm:$0xff]  }
  0x5e   : > { %6598 = vmatprep.subr.bf16.mxu1 %v7508_v22  ;;  %v5604_v41 = vcombine.low %v8385_v13, %v8389_v10  ;;  %v7529_v60 = vld [vmem:[%s9437_s4 + $0x418] sm:$0xff]  }
  0x5f   : > { %6907 = vmatpush3.bf16.msra.mxu0 %v7505_v1  ;;  %v7516_v1 = vld [vmem:[%s9437_s4 + $0x3f0] sm:$0xff]  }
  0x60   : > { %6908 = vmatprep.subr.bf16.mxu0 %v7507_v5 }
  0x61   : > { %6599 = vmatpush3.bf16.msra.mxu1 %v7508_v22  ;;  %v934_v22 = vrot.slane %v8131_v8, 5  ;;  %v8418_v8 = vcombine.low %v8087_v46, %v8135_v21  ;;  %v8438_v46 = vld [vmem:[%s7935_s26 + $0x48] sm:$0xf]  ;;  %v7527_v21 = vld [vmem:[%s9437_s4 + $0x410] sm:$0xff]  }
  0x62   : > { %6901 = vmatmul.mubr.bf16.gmra.mrb[4].mxu0 %v5858_v61  ;;  %6600 = vmatprep.subr.bf16.mxu1 %v7510_v53  ;;  %v7524_v61 = vld [vmem:[%s9437_s4 + $0xc8] sm:$0xff]  }
  0x63   : > { %6909 = vmatpush3.bf16.msra.mxu0 %v7507_v5  ;;  %6920 = vmatprep.mubr.bf16.mxu0 %v8352_v40  ;;  %v5500_v5 = vrot.slane %v8117_v49, 9 }
  0x64   : > { %6910 = vmatprep.subr.bf16.mxu0 %v7509_v50 }
  0x65   : > { %6601 = vmatpush3.bf16.msra.mxu1 %v7510_v53  ;;  %v8413_v53 = vcombine.low %v8012_v28, %v8081_v39  ;;  %v7526_v28 = vld [vmem:[%s9437_s4 + $0xd0] sm:$0xff]  }
  0x66   : > { %6602 = vmatprep.subr.bf16.mxu1 %v7512_v58 }
  0x67   : > { %6911 = vmatpush3.bf16.msra.mxu0 %v7509_v50  ;;  %v8409_v50 = vcombine.low %v8341_v23, %v8385_v13  ;;  %v7583_v23 = vld [vmem:[%s9437_s4 + $0x4d0] sm:$0xff]  }
  0x68   : > { %6912 = vmatprep.subr.bf16.mxu0 %v7511_v51 }
  0x69   : > { %6603 = vmatpush3.bf16.msra.mxu1 %v7512_v58  ;;  %v8425_v58 = vsel %vm8191_vm5, %v5500_v5, %v934_v22 }
  0x6a   : > { %6604 = vmatprep.subr.bf16.mxu1 %v7515_v20  ;;  %v8435_v39 = vcombine.low %v8389_v10, %v8425_v58 }
  0x6b   : > { %6913 = vmatpush3.bf16.msra.mxu0 %v7511_v51  ;;  %v7525_v51 = vld [vmem:[%s9437_s4 + $0x408] sm:$0xff]  }
  0x6c   : > { %6914 = vmatprep.subr.bf16.mxu0 %v7513_v18 }
  0x6d   : > { %6605 = vmatpush3.bf16.msra.mxu1 %v7515_v20  ;;  %v5883_v20 = vcombine.low %v8150_v32, %v8438_v46  ;;  %v7531_v32 = vld [vmem:[%s9437_s4 + $0x420] sm:$0xff]  }
  0x6e   : > { %6606 = vmatprep.subr.bf16.mxu1 %v7518_v33 }
  0x6f   : > { %6915 = vmatpush3.bf16.msra.mxu0 %v7513_v18  ;;  %v7528_v18 = vld [vmem:[%s9437_s4 + $0xd8] sm:$0xff]  }
  0x70   : > { %6916 = vmatprep.subr.bf16.mxu0 %v7516_v1 }
  0x71   : > { %6607 = vmatpush3.bf16.msra.mxu1 %v7518_v33  ;;  %v3243_v33 = vshll.u32 %v8438_v46, 16 }
  0x72   : > { %6616 = vmatprep.subr.bf16.mxu1 %v7520_v38 }
  0x73   : > { %6917 = vmatpush3.bf16.msra.mxu0 %v7516_v1  ;;  %v3240_v1 = vshrl.u32 %v8438_v46, 16  ;;  %v3245_v22 = vrot.slane %v3243_v33, 5 }
  0x74   : > { %6918 = vmatprep.subr.bf16.mxu0 %v7519_v19  ;;  %6609 = vmatmul.mubr.bf16.vlgmr.msra.gmra.mrb[0].mxu1 %v8334_v48 }
  0x75   : > { %6617 = vmatpush3.bf16.msra.mxu1 %v7520_v38  ;;  %6612 = vmatprep.mubr.bf16.mxu1 %v8409_v50  ;;  %v7538_v38 = vld [vmem:[%s9437_s4 + $0xf8] sm:$0xff]   ;;  %v3242_v5 = vrot.slane %v3240_v1, 4 }
  0x76   : > { %6618 = vmatprep.subr.bf16.mxu1 %v7524_v61  ;;  %v7548_v1 = vld [vmem:[%s9437_s4 + $0x118] sm:$0xff]  }
  0x77   : > { %6919 = vmatpush3.bf16.msra.mxu0 %v7519_v19  ;;  %v7536_v19 = vld [vmem:[%s9437_s4 + $0x430] sm:$0xff]  }
  0x78   : > { %6928 = vmatprep.subr.bf16.mxu0 %v7522_v54 }
  0x79   : > { %6619 = vmatpush3.bf16.msra.mxu1 %v7524_v61  ;;  %v8484_v61 = vld [vmem:[%s7935_s26 + $0x4c] sm:$0x1] }
  0x7a   : > { %6921 = vmatmul.mubr.bf16.vlgmr.msra.gmra.mrb[0].mxu0 %v8413_v53  ;;  %6620 = vmatprep.subr.bf16.mxu1 %v7526_v28 }
  0x7b   : > { %6929 = vmatpush3.bf16.msra.mxu0 %v7522_v54  ;;  %6924 = vmatprep.mubr.bf16.mxu0 %v8418_v8  ;;  %v7539_v54 = vld [vmem:[%s9437_s4 + $0x438] sm:$0xff]  }
  0x7c   : > { %6930 = vmatprep.subr.bf16.mxu0 %v7525_v51  ;;  %6613 = vmatmul.mubr.bf16.gmra.mrb[4].mxu1 %v8435_v39 }
  0x7d   : > { %6621 = vmatpush3.bf16.msra.mxu1 %v7526_v28  ;;  %6632 = vmatprep.mubr.bf16.mxu1 %v9458_v11  ;;  %v3246_v28 = vor.u32 %v3245_v22, %v3242_v5  ;;  %v7550_v5 = vld [vmem:[%s9437_s4 + $0x120] sm:$0xff]  }
  0x7e   : > { %6622 = vmatprep.subr.bf16.mxu1 %v7528_v18 }
  0x7f   : > { %6931 = vmatpush3.bf16.msra.mxu0 %v7525_v51  ;;  %v7541_v51 = vld [vmem:[%s9437_s4 + $0x100] sm:$0xff]   ;;  %v3247_v11 = vrot.slane %v3246_v28, 4 }
  0x80   : > { %6932 = vmatprep.subr.bf16.mxu0 %v7527_v21 }
  0x81   : > { %6623 = vmatpush3.bf16.msra.mxu1 %v7528_v18  ;;  %v7542_v18 = vld [vmem:[%s9437_s4 + $0x440] sm:$0xff]  }
  0x82   : > { %6925 = vmatmul.mubr.bf16.gmra.mrb[4].mxu0 %v5883_v20  ;;  %6624 = vmatprep.subr.bf16.mxu1 %v7530_v25  ;;  %v7544_v20 = vld [vmem:[%s9437_s4 + $0x108] sm:$0xff]  }
  0x83   : > { %6933 = vmatpush3.bf16.msra.mxu0 %v7527_v21  ;;  %6944 = vmatprep.mubr.bf16.mxu0 %v8031_v47  ;;  %v3249_v21 = vshll.u32 %v8484_v61, 16 }
  0x84   : > { %6934 = vmatprep.subr.bf16.mxu0 %v7529_v60 }
  0x85   : > { %6625 = vmatpush3.bf16.msra.mxu1 %v7530_v25  ;;  %v7545_v25 = vld [vmem:[%s9437_s4 + $0x448] sm:$0xff]  }
  0x86   : > { %6626 = vmatprep.subr.bf16.mxu1 %v7532_v12 }
  0x87   : > { %6935 = vmatpush3.bf16.msra.mxu0 %v7529_v60  ;;  %v9459_v60 = vcombine.low %v8002_v7, %v8043_v4  ;;  %v7547_v7 = vld [vmem:[%s9437_s4 + $0x450] sm:$0xff]  }
  0x88   : > { %6936 = vmatprep.subr.bf16.mxu0 %v7531_v32 }
  0x89   : > { %6627 = vmatpush3.bf16.msra.mxu1 %v7532_v12  ;;  %v8504_v12 = vld [vmem:[%s7886_s14 + $0x40] sm:$0xf] }
  0x8a   : > { %6628 = vmatprep.subr.bf16.mxu1 %v7534_v16  ;;  %v5548_v4 = vcombine.low %v8117_v49, %v8504_v12  ;;  %v8536_v49 = vld [vmem:[%s8515_s21 + $0x20] sm:$0xf]  ;;  %v5585_v15 = vrot.slane %v8504_v12, 9 }
  0x8b   : > { %6937 = vmatpush3.bf16.msra.mxu0 %v7531_v32  ;;  %v3251_v32 = vrot.slane %v3249_v21, 5  ;;  %v3779_v22 = vshrl.u32 %v8536_v49, 16  ;;  %v7551_v21 = vld [vmem:[%s9437_s4 + $0x460] sm:$0xff]  }
  0x8c   : > { %6938 = vmatprep.subr.bf16.mxu0 %v7533_v14 }
  0x8d   : > { %6629 = vmatpush3.bf16.msra.mxu1 %v7534_v16  ;;  %v9460_v16 = vcombine.low %v8053_v9, %v8107_v34  ;;  %v3252_v9 = vsel %vm7940_vm2, %v3247_v11, %v3251_v32  ;;  %v8527_v34 = vld [vmem:[%s8515_s21 + $0x18] sm:$0xf]  ;;  %v1239_v32 = vshrl.u32 %v8504_v12, 16 }
  0x8e   : > { %6630 = vmatprep.subr.bf16.mxu1 %v7538_v38  ;;  %v3765_v33 = vshrl.u32 %v8527_v34, 16 }
  0x8f   : > { %6939 = vmatpush3.bf16.msra.mxu0 %v7533_v14  ;;  %v7546_v14 = vld [vmem:[%s9437_s4 + $0x110] sm:$0xff]  }
  0x90   : > { %6940 = vmatprep.subr.bf16.mxu0 %v7536_v19 }
  0x91   : > { %6631 = vmatpush3.bf16.msra.mxu1 %v7538_v38  ;;  %v5908_v38 = vcombine.low %v8239_v57, %v3252_v9  ;;  %v9461_v57 = vcombine.low %v7965_v52, %v7973_v55  ;;  %v7552_v52 = vld [vmem:[%s9437_s4 + $0x128] sm:$0xff]   ;;  %v3549_v9 = vld [vmem:[%s8515_s21 + $0x24] sm:$0x1] }
  0x92   : > { %6640 = vmatprep.subr.bf16.mxu1 %v7541_v51 }
  0x93   : > { %6941 = vmatpush3.bf16.msra.mxu0 %v7536_v19  ;;  %v3768_v19 = vshll.u32 %v8527_v34, 16 }
  0x94   : > { %6942 = vmatprep.subr.bf16.mxu0 %v7539_v54  ;;  %6633 = vmatmul.mubr.bf16.vlgmr.msra.gmra.mrb[0].mxu1 %v9459_v60  ;;  %v3782_v60 = vshll.u32 %v8536_v49, 16 }
  0x95   : > { %6641 = vmatpush3.bf16.msra.mxu1 %v7541_v51  ;;  %6636 = vmatprep.mubr.bf16.mxu1 %v9460_v16  ;;  %v3767_v51 = vrot.slane %v3765_v33, 4  ;;  %v3770_v28 = vrot.slane %v3768_v19, 5  ;;  %v7553_v16 = vld [vmem:[%s9437_s4 + $0x468] sm:$0xff]  }
  0x96   : > { %6642 = vmatprep.subr.bf16.mxu1 %v7544_v20  ;;  %v3784_v11 = vrot.slane %v3782_v60, 5 }
  0x97   : > { %6943 = vmatpush3.bf16.msra.mxu0 %v7539_v54  ;;  %v7549_v54 = vld [vmem:[%s9437_s4 + $0x458] sm:$0xff]   ;;  %v3771_v55 = vor.u32 %v3770_v28, %v3767_v51 }
  0x98   : > { %6952 = vmatprep.subr.bf16.mxu0 %v7542_v18  ;;  %v7558_v28 = vld [vmem:[%s9437_s4 + $0x138] sm:$0xff]  }
  0x99   : > { %6643 = vmatpush3.bf16.msra.mxu1 %v7544_v20  ;;  %v3781_v20 = vrot.slane %v3779_v22, 4 }
  0x9a   : > { %6945 = vmatmul.mubr.bf16.vlgmr.msra.gmra.mrb[0].mxu0 %v8167_v24  ;;  %6644 = vmatprep.subr.bf16.mxu1 %v7546_v14 }
  0x9b   : > { %6953 = vmatpush3.bf16.msra.mxu0 %v7542_v18  ;;  %6948 = vmatprep.mubr.bf16.mxu0 %v8242_v30  ;;  %v8553_v18 = vld [vmem:[%s8515_s21 + $0x1c] sm:$0x1] }
  0x9c   : > { %6954 = vmatprep.subr.bf16.mxu0 %v7545_v25  ;;  %6637 = vmatmul.mubr.bf16.gmra.mrb[4].mxu1 %v5548_v4  ;;  %v7555_v4 = vld [vmem:[%s9437_s4 + $0x130] sm:$0xff]  }
  0x9d   : > { %6645 = vmatpush3.bf16.msra.mxu1 %v7546_v14  ;;  %6656 = vmatprep.mubr.bf16.mxu1 %v9461_v57  ;;  %v1242_v14 = vshll.u32 %v8504_v12, 16  ;;  %v8573_v57 = vld [vmem:[%s7886_s14 + $0x44] sm:$0x1] }
  0x9e   : > { %6646 = vmatprep.subr.bf16.mxu1 %v7548_v1 }
  0x9f   : > { %6955 = vmatpush3.bf16.msra.mxu0 %v7545_v25  ;;  %v3774_v25 = vshll.u32 %v8553_v18, 16  ;;  %v1244_v22 = vrot.slane %v1242_v14, 5  ;;  %v7562_v14 = vld [vmem:[%s9437_s4 + $0x148] sm:$0xff]  }
  0xa0   : > { %6956 = vmatprep.subr.bf16.mxu0 %v7547_v7 }
  0xa1   : > { %6647 = vmatpush3.bf16.msra.mxu1 %v7548_v1  ;;  %v3772_v1 = vrot.slane %v3771_v55, 4  ;;  %v3776_v33 = vrot.slane %v3774_v25, 5  ;;  %v7559_v25 = vld [vmem:[%s9437_s4 + $0x478] sm:$0xff]  }
  0xa2   : > { %6949 = vmatmul.mubr.bf16.gmra.mrb[4].mxu0 %v5908_v38  ;;  %6648 = vmatprep.subr.bf16.mxu1 %v7550_v5  ;;  %v3788_v38 = vshll.u32 %v3549_v9, 16 }
  0xa3   : > { %6957 = vmatpush3.bf16.msra.mxu0 %v7547_v7  ;;  %6968 = vmatprep.mubr.bf16.mxu0 %v8235_v59  ;;  %v3785_v7 = vor.u32 %v3784_v11, %v3781_v20  ;;  %v8580_v20 = vsel %vm7940_vm2, %v3772_v1, %v3776_v33  ;;  %v7560_v11 = vld [vmem:[%s9437_s4 + $0x140] sm:$0xff]   ;;  %v8605_v1 = vld [vmem:[%s8515_s21 + $0x10] sm:$0xf]  ;;  %v6002_v33 = vrot.slane %v8527_v34, 9 }
  0xa4   : > { %6958 = vmatprep.subr.bf16.mxu0 %v7549_v54  ;;  %v3790_v51 = vrot.slane %v3788_v38, 5  ;;  %v5917_v38 = vrot.slane %v8438_v46, 9 }
  0xa5   : > { %6649 = vmatpush3.bf16.msra.mxu1 %v7550_v5  ;;  %v3786_v19 = vrot.slane %v3785_v7, 4  ;;  %v7556_v5 = vld [vmem:[%s9437_s4 + $0x470] sm:$0xff]  }
  0xa6   : > { %6650 = vmatprep.subr.bf16.mxu1 %v7552_v52 }
  0xa7   : > { %6959 = vmatpush3.bf16.msra.mxu0 %v7549_v54  ;;  %v1241_v54 = vrot.slane %v1239_v32, 4  ;;  %v7561_v32 = vld [vmem:[%s9437_s4 + $0x480] sm:$0xff]  }
  0xa8   : > { %6960 = vmatprep.subr.bf16.mxu0 %v7551_v21 }
  0xa9   : > { %6651 = vmatpush3.bf16.msra.mxu1 %v7552_v52  ;;  %v1245_v60 = vor.u32 %v1244_v22, %v1241_v54  ;;  %v1248_v52 = vshll.u32 %v8573_v57, 16  ;;  %v6003_v54 = vrot.slane %v8536_v49, 9  ;;  %v9462_v22 = vld [vmem:[#allocation4_spill] sm:$0xff] }
  0xaa   : > { %6652 = vmatprep.subr.bf16.mxu1 %v7555_v4 }
  0xab   : > { %6961 = vmatpush3.bf16.msra.mxu0 %v7551_v21  ;;  %v8584_v21 = vsel %vm7940_vm2, %v3786_v19, %v3790_v51  ;;  %v1250_v7 = vrot.slane %v1248_v52, 5  ;;  %v4010_v19 = vrot.slane %v8553_v18, 5  ;;  %v3397_v51 = vrot.slane %v8484_v61, 5  ;;  %v7563_v18 = vld [vmem:[%s9437_s4 + $0x488] sm:$0xff]   ;;  %v7564_v61 = vld [vmem:[%s9437_s4 + $0x150] sm:$0xff]  }
  0xac   : > { %6962 = vmatprep.subr.bf16.mxu0 %v7553_v16 }
  0xad   : > { %6653 = vmatpush3.bf16.msra.mxu1 %v7555_v4  ;;  %v8602_v4 = vld [vmem:[%s8515_s21 + $0x8] sm:$0xf]  ;;  %v3398_v6 = vsel %vm8191_vm5, %v5917_v38, %v3397_v51  ;;  %v3751_v38 = vshrl.u32 %v8605_v1, 16 }
  0xae   : > { %6654 = vmatprep.subr.bf16.mxu1 %v7558_v28 }
  0xaf   : > { %6963 = vmatpush3.bf16.msra.mxu0 %v7553_v16  ;;  %v1246_v16 = vrot.slane %v1245_v60, 4  ;;  %v6051_v60 = vcombine.low %v8602_v4, %v8605_v1 }
  0xb0   : > { %6964 = vmatprep.subr.bf16.mxu0 %v7556_v5 }
  0xb1   : > { %6655 = vmatpush3.bf16.msra.mxu1 %v7558_v28  ;;  %v4014_v28 = vrot.slane %v3549_v9, 5  ;;  %v8622_v46 = vsel %vm7940_vm2, %v1246_v16, %v1250_v7  ;;  %v8634_v9 = vsel %vm8191_vm5, %v6002_v33, %v4010_v19  ;;  %v5934_v16 = vcombine.low %v8330_v45, %v3398_v6  ;;  %v7569_v45 = vld [vmem:[%s9437_s4 + $0x4a0] sm:$0xff]   ;;  %v8692_v6 = vld [vmem:[%s8515_s21 + $0x14] sm:$0x1] }
  0xb2   : > { %6664 = vmatprep.subr.bf16.mxu1 %v7560_v11  ;;  %v5576_v36 = vcombine.low %v8198_v27, %v8622_v46  ;;  %v7567_v27 = vld [vmem:[%s9437_s4 + $0x498] sm:$0xff]   ;;  %v3737_v33 = vshrl.u32 %v8602_v4, 16  ;;  %v3740_v19 = vshll.u32 %v8602_v4, 16 }
  0xb3   : > { %6965 = vmatpush3.bf16.msra.mxu0 %v7556_v5  ;;  %v9463_v5 = vcombine.low %v8040_v3, %v9462_v22  ;;  %v8638_v52 = vsel %vm8191_vm5, %v6003_v54, %v4014_v28  ;;  %v3754_v54 = vshll.u32 %v8605_v1, 16  ;;  %v7580_v3 = vld [vmem:[%s9437_s4 + $0x188] sm:$0xff]  }
  0xb4   : > { %6966 = vmatprep.subr.bf16.mxu0 %v7559_v25  ;;  %v3739_v51 = vrot.slane %v3737_v33, 4  ;;  %v3742_v28 = vrot.slane %v3740_v19, 5 }
  0xb5   : > { %6657 = vmatmul.mubr.bf16.vlgmr.msra.gmra.mrb[0].mxu1 %v9463_v5  ;;  %v7571_v5 = vld [vmem:[%s9437_s4 + $0x4a8] sm:$0xff]  }
  0xb6   : > { %6665 = vmatpush3.bf16.msra.mxu1 %v7560_v11  ;;  %6660 = vmatprep.mubr.bf16.mxu1 %v5575_v42  ;;  %v7565_v11 = vld [vmem:[%s9437_s4 + $0x490] sm:$0xff]   ;;  %v8652_v42 = vld [vmem:[%s8515_s21] sm:$0xf]  ;;  %v3743_v33 = vor.u32 %v3742_v28, %v3739_v51 }
  0xb7   : > { %6967 = vmatpush3.bf16.msra.mxu0 %v7559_v25  ;;  %6666 = vmatprep.subr.bf16.mxu1 %v7562_v14  ;;  %v5959_v7 = vcombine.low %v8652_v42, %v8602_v4  ;;  %v3726_v22 = vshll.u32 %v8652_v42, 16  ;;  %v8704_v25 = vld [vmem:[%s8515_s21 + $0x28] sm:$0xf] }
  0xb8   : > { %6976 = vmatprep.subr.bf16.mxu0 %v7561_v32  ;;  %v3744_v28 = vrot.slane %v3743_v33, 4  ;;  %v7581_v33 = vld [vmem:[%s9437_s4 + $0x4c8] sm:$0xff]  }
  0xba   : > { %6969 = vmatmul.mubr.bf16.vlgmr.msra.gmra.mrb[0].mxu0 %v8267_v56  ;;  %6667 = vmatpush3.bf16.msra.mxu1 %v7562_v14  ;;  %v7568_v14 = vld [vmem:[%s9437_s4 + $0x160] sm:$0xff]  }
  0xbb   : > { %6977 = vmatpush3.bf16.msra.mxu0 %v7561_v32  ;;  %6972 = vmatprep.mubr.bf16.mxu0 %v8290_v0  ;;  %v7566_v32 = vld [vmem:[%s9437_s4 + $0x158] sm:$0xff]  }
  0xbc   : > { %6978 = vmatprep.subr.bf16.mxu0 %v7563_v18  ;;  %6668 = vmatprep.subr.bf16.mxu1 %v7564_v61 }
  0xbd   : > { %6661 = vmatmul.mubr.bf16.gmra.mrb[4].mxu1 %v5576_v36  ;;  %v8689_v36 = vld [vmem:[%s8515_s21 + $0xc] sm:$0x1] }
  0xbe   : > { %6669 = vmatpush3.bf16.msra.mxu1 %v7564_v61  ;;  %6680 = vmatprep.mubr.bf16.mxu1 %v5602_v62  ;;  %v3723_v62 = vshrl.u32 %v8652_v42, 16  ;;  %v3753_v61 = vrot.slane %v3751_v38, 4  ;;  %v3746_v19 = vshll.u32 %v8689_v36, 16 }
  0xbf   : > { %6979 = vmatpush3.bf16.msra.mxu0 %v7563_v18  ;;  %6670 = vmatprep.subr.bf16.mxu1 %v7566_v32  ;;  %v7572_v18 = vld [vmem:[%s9437_s4 + $0x170] sm:$0xff]  }
  0xc0   : > { %6980 = vmatprep.subr.bf16.mxu0 %v7565_v11 }
  0xc2   : > { %6973 = vmatmul.mubr.bf16.gmra.mrb[4].mxu0 %v5934_v16  ;;  %6671 = vmatpush3.bf16.msra.mxu1 %v7566_v32  ;;  %v7573_v32 = vld [vmem:[%s9437_s4 + $0x4b0] sm:$0xff]   ;;  %v1402_v16 = vrot.slane %v8573_v57, 5  ;;  %v7575_v57 = vld [vmem:[%s9437_s4 + $0x4b8] sm:$0xff]  }
  0xc3   : > { %6981 = vmatpush3.bf16.msra.mxu0 %v7565_v11  ;;  %6992 = vmatprep.mubr.bf16.mxu0 %v5959_v7  ;;  %v3756_v11 = vrot.slane %v3754_v54, 5  ;;  %v7574_v7 = vld [vmem:[%s9437_s4 + $0x178] sm:$0xff]   ;;  %v3760_v54 = vshll.u32 %v8692_v6, 16 }
  0xc4   : > { %6982 = vmatprep.subr.bf16.mxu0 %v7567_v27  ;;  %6672 = vmatprep.subr.bf16.mxu1 %v7568_v14 }
  0xc5   : > { %v3757_v38 = vor.u32 %v3756_v11, %v3753_v61  ;;  %v3748_v61 = vrot.slane %v3746_v19, 5  ;;  %v3762_v55 = vrot.slane %v3760_v54, 5  ;;  %v8740_v19 = vcombine.low %v8536_v49, %v8704_v25 }
  0xc6   : > { %6673 = vmatpush3.bf16.msra.mxu1 %v7568_v14  ;;  %v3728_v14 = vrot.slane %v3726_v22, 5  ;;  %v3793_v54 = vshrl.u32 %v8704_v25, 16 }
  0xc7   : > { %6983 = vmatpush3.bf16.msra.mxu0 %v7567_v27  ;;  %6674 = vmatprep.subr.bf16.mxu1 %v7570_v44  ;;  %v3725_v27 = vrot.slane %v3723_v62, 4  ;;  %v8716_v62 = vld [vmem:[%s8515_s21 + $0x4] sm:$0x1]  ;;  %v3758_v11 = vrot.slane %v3757_v38, 4 }
  0xc8   : > { %6984 = vmatprep.subr.bf16.mxu0 %v7569_v45  ;;  %v3795_v13 = vrot.slane %v3793_v54, 4  ;;  %v7588_v54 = vld [vmem:[%s9437_s4 + $0x1a8] sm:$0xff]  }
  0xc9   : > { %v3729_v22 = vor.u32 %v3728_v14, %v3725_v27  ;;  %v3732_v14 = vshll.u32 %v8716_v62, 16 }
  0xca   : > { %6675 = vmatpush3.bf16.msra.mxu1 %v7570_v44  ;;  %v7576_v44 = vld [vmem:[%s9437_s4 + $0x180] sm:$0xff]  }
  0xcb   : > { %6985 = vmatpush3.bf16.msra.mxu0 %v7569_v45  ;;  %6676 = vmatprep.subr.bf16.mxu1 %v7572_v18  ;;  %v8710_v45 = vld [vmem:[%s8515_s21 + $0x30] sm:$0xf]  ;;  %v3730_v27 = vrot.slane %v3729_v22, 4  ;;  %v3734_v38 = vrot.slane %v3732_v14, 5  ;;  %v3796_v22 = vshll.u32 %v8704_v25, 16 }
  0xcc   : > { %6986 = vmatprep.subr.bf16.mxu0 %v7571_v5  ;;  %v6053_v51 = vcombine.low %v8704_v25, %v8710_v45 }
  0xcd   : > { %v3798_v10 = vrot.slane %v3796_v22, 5 }
  0xce   : > { %6677 = vmatpush3.bf16.msra.mxu1 %v7572_v18  ;;  %v8729_v18 = vsel %vm8191_vm5, %v5585_v15, %v1402_v16  ;;  %v8748_v15 = vsel %vm7940_vm2, %v3758_v11, %v3762_v55  ;;  %v7582_v16 = vld [vmem:[%s9437_s4 + $0x190] sm:$0xff]   ;;  %v7584_v55 = vld [vmem:[%s9437_s4 + $0x198] sm:$0xff]   ;;  %v8788_v11 = vld [vmem:[%s8515_s21 + $0x2c] sm:$0x1] }
  0xcf   : > { %6987 = vmatpush3.bf16.msra.mxu0 %v7571_v5  ;;  %6678 = vmatprep.subr.bf16.mxu1 %v7574_v7  ;;  %v7578_v5 = vld [vmem:[%s9437_s4 + $0x4c0] sm:$0xff]   ;;  %v3802_v22 = vshll.u32 %v8788_v11, 16 }
  0xd0   : > { %6988 = vmatprep.subr.bf16.mxu0 %v7573_v32 }
  0xd2   : > { %6679 = vmatpush3.bf16.msra.mxu1 %v7574_v7  ;;  %v8744_v7 = vsel %vm7940_vm2, %v3744_v28, %v3748_v61  ;;  %v8785_v61 = vcombine.low %v8710_v45, %v8764_v63 }
  0xd3   : > { %6989 = vmatpush3.bf16.msra.mxu0 %v7573_v32  ;;  %6688 = vmatprep.subr.bf16.mxu1 %v7576_v44  ;;  %v8733_v32 = vcombine.low %v8605_v1, %v8527_v34 }
  0xd4   : > { %6990 = vmatprep.subr.bf16.mxu0 %v7575_v57 }
  0xd5   : > { %6681 = vmatmul.mubr.bf16.vlgmr.msra.gmra.mrb[0].mxu1 %v5603_v31  ;;  %v5605_v31 = vcombine.low %v8425_v58, %v8729_v18  ;;  %v7585_v58 = vld [vmem:[%s9437_s4 + $0x4d8] sm:$0xff]  }
  0xd6   : > { %6689 = vmatpush3.bf16.msra.mxu1 %v7576_v44  ;;  %6684 = vmatprep.mubr.bf16.mxu1 %v5604_v41  ;;  %v3807_v41 = vshrl.u32 %v8710_v45, 16  ;;  %v3735_v44 = vsel %vm7940_vm2, %v3730_v27, %v3734_v38  ;;  %v8795_v27 = vld [vmem:[%s8515_s21 + $0x34] sm:$0x1] }
  0xd7   : > { %6991 = vmatpush3.bf16.msra.mxu0 %v7575_v57  ;;  %6690 = vmatprep.subr.bf16.mxu1 %v7580_v3  ;;  %v3810_v57 = vshll.u32 %v8710_v45, 16 }
  0xd8   : > { %7000 = vmatprep.subr.bf16.mxu0 %v7578_v5  ;;  %v3809_v14 = vrot.slane %v3807_v41, 4  ;;  %v7590_v41 = vld [vmem:[%s9437_s4 + $0x1b0] sm:$0xff]  }
  0xd9   : > { %v3812_v38 = vrot.slane %v3810_v57, 5 }
  0xda   : > { %6993 = vmatmul.mubr.bf16.vlgmr.msra.gmra.mrb[0].mxu0 %v8733_v32  ;;  %6691 = vmatpush3.bf16.msra.mxu1 %v7580_v3  ;;  %v5987_v3 = vcombine.low %v3735_v44, %v8744_v7  ;;  %v3804_v44 = vrot.slane %v3802_v22, 5 }
  0xdb   : > { %7001 = vmatpush3.bf16.msra.mxu0 %v7578_v5  ;;  %6996 = vmatprep.mubr.bf16.mxu0 %v8740_v19  ;;  %v7586_v5 = vld [vmem:[%s9437_s4 + $0x1a0] sm:$0xff]  }
  0xdc   : > { %7002 = vmatprep.subr.bf16.mxu0 %v7581_v33  ;;  %6692 = vmatprep.subr.bf16.mxu1 %v7582_v16 }
  0xdd   : > { %6685 = vmatmul.mubr.bf16.gmra.mrb[4].mxu1 %v5605_v31  ;;  %v3816_v31 = vshll.u32 %v8795_v27, 16 }
  0xde   : > { %6693 = vmatpush3.bf16.msra.mxu1 %v7582_v16  ;;  %6704 = vmatprep.mubr.bf16.mxu1 %v8265_v43  ;;  %v3799_v16 = vor.u32 %v3798_v10, %v3795_v13  ;;  %v3813_v43 = vor.u32 %v3812_v38, %v3809_v14  ;;  %v7592_v13 = vld [vmem:[%s9437_s4 + $0x4f0] sm:$0xff]   ;;  %v7594_v10 = vld [vmem:[%s9437_s4 + $0x1b8] sm:$0xff]   ;;  %v3824_v14 = vshll.u32 %v8764_v63, 16 }
  0xdf   : > { %7003 = vmatpush3.bf16.msra.mxu0 %v7581_v33  ;;  %6694 = vmatprep.subr.bf16.mxu1 %v7584_v55  ;;  %v7587_v33 = vld [vmem:[%s9437_s4 + $0x4e0] sm:$0xff]   ;;  %v7595_v38 = vld [vmem:[%s9437_s4 + $0x4f8] sm:$0xff]  }
  0xe0   : > { %7004 = vmatprep.subr.bf16.mxu0 %v7583_v23  ;;  %v3800_v57 = vrot.slane %v3799_v16, 4  ;;  %v3826_v16 = vrot.slane %v3824_v14, 5  ;;  %v8860_v14 = vld [vmem:[%s7886_s14 + $0x48] sm:$0xf] }
  0xe2   : > { %6997 = vmatmul.mubr.bf16.gmra.mrb[4].mxu0 %v8785_v61  ;;  %6695 = vmatpush3.bf16.msra.mxu1 %v7584_v55  ;;  %v3818_v55 = vrot.slane %v3816_v31, 5 }
  0xe3   : > { %7005 = vmatpush3.bf16.msra.mxu0 %v7583_v23  ;;  %7016 = vmatprep.mubr.bf16.mxu0 %v5987_v3  ;;  %v7589_v23 = vld [vmem:[%s9437_s4 + $0x4e8] sm:$0xff]   ;;  %v3814_v3 = vrot.slane %v3813_v43, 4 }
  0xe4   : > { %7006 = vmatprep.subr.bf16.mxu0 %v7585_v58  ;;  %6696 = vmatprep.subr.bf16.mxu1 %v7586_v5 }
  0xe5   : > { %v8833_v22 = vsel %vm7940_vm2, %v3814_v3, %v3818_v55  ;;  %v5999_v55 = vrot.slane %v8652_v42, 9  ;;  %v7600_v42 = vld [vmem:[%s9437_s4 + $0x1d0] sm:$0xff]  }
  0xe6   : > { %6697 = vmatpush3.bf16.msra.mxu1 %v7586_v5  ;;  %v8822_v5 = vld [vmem:[%s8515_s21 + $0x3c] sm:$0x1] }
  0xe7   : > { %7007 = vmatpush3.bf16.msra.mxu0 %v7585_v58  ;;  %6698 = vmatprep.subr.bf16.mxu1 %v7588_v54  ;;  %v3821_v58 = vshrl.u32 %v8764_v63, 16  ;;  %v3830_v43 = vshll.u32 %v8822_v5, 16 }
  0xe8   : > { %7008 = vmatprep.subr.bf16.mxu0 %v7587_v33 }
  0xe9   : > { %v3823_v31 = vrot.slane %v3821_v58, 4  ;;  %v3832_v3 = vrot.slane %v3830_v43, 5  ;;  %v4002_v43 = vrot.slane %v8689_v36, 5  ;;  %v5630_v36 = vcombine.low %v8504_v12, %v8860_v14  ;;  %v7603_v12 = vld [vmem:[%s9437_s4 + $0x518] sm:$0xff]  }
  0xea   : > { %6699 = vmatpush3.bf16.msra.mxu1 %v7588_v54  ;;  %v7596_v54 = vld [vmem:[%s9437_s4 + $0x1c0] sm:$0xff]  }
  0xeb   : > { %7009 = vmatpush3.bf16.msra.mxu0 %v7587_v33  ;;  %6700 = vmatprep.subr.bf16.mxu1 %v7590_v41  ;;  %v8829_v33 = vsel %vm7940_vm2, %v3800_v57, %v3804_v44  ;;  %v7598_v57 = vld [vmem:[%s9437_s4 + $0x1c8] sm:$0xff]   ;;  %v3827_v44 = vor.u32 %v3826_v16, %v3823_v31  ;;  %v3998_v31 = vrot.slane %v8716_v62, 5  ;;  %v6000_v16 = vrot.slane %v8602_v4, 9  ;;  %v7602_v62 = vld [vmem:[%s9437_s4 + $0x1d8] sm:$0xff]   ;;  %v7625_v4 = vld [vmem:[%s9437_s4 + $0x230] sm:$0xff]  }
  0xec   : > { %7010 = vmatprep.subr.bf16.mxu0 %v7589_v23  ;;  %v8857_v58 = vcombine.low %v8584_v21, %v8829_v33 }
  0xee   : > { %6701 = vmatpush3.bf16.msra.mxu1 %v7590_v41  ;;  %v8850_v41 = vcombine.low %v8748_v15, %v8580_v20 }
  0xef   : > { %7011 = vmatpush3.bf16.msra.mxu0 %v7589_v23  ;;  %6702 = vmatprep.subr.bf16.mxu1 %v7594_v10  ;;  %v7597_v23 = vld [vmem:[%s9437_s4 + $0x500] sm:$0xff]  }
  0xf0   : > { %7012 = vmatprep.subr.bf16.mxu0 %v7592_v13 }
  0xf2   : > { %6703 = vmatpush3.bf16.msra.mxu1 %v7594_v10  ;;  %v3828_v10 = vrot.slane %v3827_v44, 4 }
  0xf3   : > { %7013 = vmatpush3.bf16.msra.mxu0 %v7592_v13  ;;  %6712 = vmatprep.subr.bf16.mxu1 %v7596_v54  ;;  %v7599_v13 = vld [vmem:[%s9437_s4 + $0x508] sm:$0xff]  }
  0xf4   : > { %7014 = vmatprep.subr.bf16.mxu0 %v7595_v38 }
  0xf5   : > { %6705 = vmatmul.mubr.bf16.vlgmr.msra.gmra.mrb[0].mxu1 %v8282_v2  ;;  %v7601_v2 = vld [vmem:[%s9437_s4 + $0x510] sm:$0xff]  }
  0xf6   : > { %6713 = vmatpush3.bf16.msra.mxu1 %v7596_v54  ;;  %6708 = vmatprep.mubr.bf16.mxu1 %v8326_v17  ;;  %v3999_v17 = vsel %vm8191_vm5, %v5999_v55, %v3998_v31  ;;  %v8888_v54 = vsel %vm8191_vm5, %v6000_v16, %v4002_v43  ;;  %v7605_v55 = vld [vmem:[%s9437_s4 + $0x520] sm:$0xff]   ;;  %v1697_v31 = vshll.u32 %v8860_v14, 16  ;;  %v7608_v16 = vld [vmem:[%s9437_s4 + $0x1f0] sm:$0xff]  }
  0xf7   : > { %7015 = vmatpush3.bf16.msra.mxu0 %v7595_v38  ;;  %6714 = vmatprep.subr.bf16.mxu1 %v7598_v57  ;;  %v8882_v38 = vsel %vm7940_vm2, %v3828_v10, %v3832_v3  ;;  %v6023_v44 = vcombine.low %v3999_v17, %v8888_v54  ;;  %v9464_v3 = vld [vmem:[#allocation3_spill] sm:$0xff]  ;;  %v1694_v10 = vshrl.u32 %v8860_v14, 16  ;;  %v7609_v43 = vld [vmem:[%s9437_s4 + $0x530] sm:$0xff]  }
  0xf8   : > { %7024 = vmatprep.subr.bf16.mxu0 %v7597_v23  ;;  %v8924_v17 = vld [vmem:[%s7886_s14 + $0x4c] sm:$0x1] }
  0xfa   : > { %7017 = vmatmul.mubr.bf16.vlgmr.msra.gmra.mrb[0].mxu0 %v8850_v41  ;;  %6715 = vmatpush3.bf16.msra.mxu1 %v7598_v57  ;;  %v7604_v57 = vld [vmem:[%s9437_s4 + $0x1e0] sm:$0xff]  }
  0xfb   : > { %7025 = vmatpush3.bf16.msra.mxu0 %v7597_v23  ;;  %7020 = vmatprep.mubr.bf16.mxu0 %v8857_v58  ;;  %v8892_v23 = vcombine.low %v8833_v22, %v8882_v38 }
  0xfc   : > { %7026 = vmatprep.subr.bf16.mxu0 %v7599_v13  ;;  %6716 = vmatprep.subr.bf16.mxu1 %v7600_v42 }
  0xfd   : > { %6709 = vmatmul.mubr.bf16.gmra.mrb[4].mxu1 %v5630_v36  ;;  %v7611_v36 = vld [vmem:[%s9437_s4 + $0x1f8] sm:$0xff]  }
  0xfe   : > { %6717 = vmatpush3.bf16.msra.mxu1 %v7600_v42  ;;  %6728 = vmatprep.mubr.bf16.mxu1 %v9464_v3  ;;  %v7607_v42 = vld [vmem:[%s9437_s4 + $0x528] sm:$0xff]   ;;  %v4018_v3 = vrot.slane %v8788_v11, 5 }
  0xff   : > { %7027 = vmatpush3.bf16.msra.mxu0 %v7599_v13  ;;  %6718 = vmatprep.subr.bf16.mxu1 %v7602_v62  ;;  %v7606_v13 = vld [vmem:[%s9437_s4 + $0x1e8] sm:$0xff]  }
 0x100   : > { %7028 = vmatprep.subr.bf16.mxu0 %v7601_v2 }
 0x102   : > { %7021 = vmatmul.mubr.bf16.gmra.mrb[4].mxu0 %v8892_v23  ;;  %6719 = vmatpush3.bf16.msra.mxu1 %v7602_v62  ;;  %v1699_v62 = vrot.slane %v1697_v31, 5  ;;  %v7614_v31 = vld [vmem:[%s9437_s4 + $0x540] sm:$0xff]  }
 0x103   : > { %7029 = vmatpush3.bf16.msra.mxu0 %v7601_v2  ;;  %7040 = vmatprep.mubr.bf16.mxu0 %v6023_v44  ;;  %v1696_v2 = vrot.slane %v1694_v10, 4  ;;  %v6004_v44 = vrot.slane %v8704_v25, 9  ;;  %v1703_v10 = vshll.u32 %v8924_v17, 16 }
 0x104   : > { %7030 = vmatprep.subr.bf16.mxu0 %v7603_v12  ;;  %6720 = vmatprep.subr.bf16.mxu1 %v7604_v57 }
 0x105   : > { %v8943_v11 = vsel %vm8191_vm5, %v6004_v44, %v4018_v3  ;;  %v4022_v44 = vrot.slane %v8795_v27, 5  ;;  %v6006_v3 = vrot.slane %v8764_v63, 9 }
 0x106   : > { %6721 = vmatpush3.bf16.msra.mxu1 %v7604_v57  ;;  %v4006_v57 = vrot.slane %v8692_v6, 5 }
 0x107   : > { %7031 = vmatpush3.bf16.msra.mxu0 %v7603_v12  ;;  %6722 = vmatprep.subr.bf16.mxu1 %v7606_v13  ;;  %v6001_v12 = vrot.slane %v8605_v1, 9  ;;  %v7626_v1 = vld [vmem:[%s9437_s4 + $0x570] sm:$0xff]  }
 0x108   : > { %7032 = vmatprep.subr.bf16.mxu0 %v7605_v55 }
 0x109   : > { %v8939_v6 = vsel %vm8191_vm5, %v6001_v12, %v4006_v57  ;;  %v8957_v12 = vcombine.low %v8638_v52, %v8943_v11  ;;  %v6005_v57 = vrot.slane %v8710_v45, 9 }
 0x10a   : > { %6723 = vmatpush3.bf16.msra.mxu1 %v7606_v13  ;;  %v1700_v13 = vor.u32 %v1699_v62, %v1696_v2  ;;  %v1705_v2 = vrot.slane %v1703_v10, 5  ;;  %v8953_v62 = vcombine.low %v8939_v6, %v8634_v9  ;;  %v7616_v10 = vld [vmem:[%s9437_s4 + $0x548] sm:$0xff]  }
 0x10b   : > { %7033 = vmatpush3.bf16.msra.mxu0 %v7605_v55  ;;  %6724 = vmatprep.subr.bf16.mxu1 %v7608_v16  ;;  %v7612_v55 = vld [vmem:[%s9437_s4 + $0x538] sm:$0xff]  }
 0x10c   : > { %7034 = vmatprep.subr.bf16.mxu0 %v7607_v42 }
 0x10e   : > { %6725 = vmatpush3.bf16.msra.mxu1 %v7608_v16  ;;  %v1701_v16 = vrot.slane %v1700_v13, 4  ;;  %v4026_v13 = vrot.slane %v8822_v5, 5  ;;  %v8978_v5 = vsel %vm8191_vm5, %v6005_v57, %v4022_v44  ;;  %v7629_v57 = vld [vmem:[%s9437_s4 + $0x240] sm:$0xff]  }
 0x10f   : > { %7035 = vmatpush3.bf16.msra.mxu0 %v7607_v42  ;;  %6726 = vmatprep.subr.bf16.mxu1 %v7611_v36  ;;  %v7613_v42 = vld [vmem:[%s9437_s4 + $0x200] sm:$0xff]  }
 0x110   : > { %7036 = vmatprep.subr.bf16.mxu0 %v7609_v43  ;;  %v1706_v28 = vsel %vm7940_vm2, %v1701_v16, %v1705_v2  ;;  %v7621_v16 = vld [vmem:[%s9437_s4 + $0x220] sm:$0xff]  }
 0x111   : > { %v5655_v27 = vcombine.low %v8622_v46, %v1706_v28  ;;  %v7620_v28 = vld [vmem:[%s9437_s4 + $0x558] sm:$0xff]   ;;  %v7622_v2 = vld [vmem:[%s9437_s4 + $0x560] sm:$0xff]  }
 0x112   : > { %6727 = vmatpush3.bf16.msra.mxu1 %v7611_v36  ;;  %v9465_v36 = vld [vmem:[#allocation5_spill] sm:$0xff]  ;;  %v7631_v44 = vld [vmem:[%s9437_s4 + $0x580] sm:$0xff]  }
 0x113   : > { %7037 = vmatpush3.bf16.msra.mxu0 %v7609_v43  ;;  %6736 = vmatprep.subr.bf16.mxu1 %v7613_v42  ;;  %v7615_v43 = vld [vmem:[%s9437_s4 + $0x208] sm:$0xff]  }
 0x114   : > { %7038 = vmatprep.subr.bf16.mxu0 %v7612_v55 }
 0x115   : > { %6729 = vmatmul.mubr.bf16.vlgmr.msra.gmra.mrb[0].mxu1 %v9465_v36  ;;  %v7628_v36 = vld [vmem:[%s9437_s4 + $0x578] sm:$0xff]  }
 0x116   : > { %6737 = vmatpush3.bf16.msra.mxu1 %v7613_v42  ;;  %6732 = vmatprep.mubr.bf16.mxu1 %v8207_v26  ;;  %v8982_v42 = vsel %vm8191_vm5, %v6006_v3, %v4026_v13  ;;  %v7618_v26 = vld [vmem:[%s9437_s4 + $0x550] sm:$0xff]   ;;  %v5664_v3 = vrot.slane %v8860_v14, 9  ;;  %v1851_v13 = vrot.slane %v8924_v17, 5 }
 0x117   : > { %7039 = vmatpush3.bf16.msra.mxu0 %v7612_v55  ;;  %6738 = vmatprep.subr.bf16.mxu1 %v7615_v43  ;;  %v7617_v55 = vld [vmem:[%s9437_s4 + $0x210] sm:$0xff]   ;;  %v8992_v46 = vcombine.low %v8978_v5, %v8982_v42 }
 0x118   : > { %7048 = vmatprep.subr.bf16.mxu0 %v7614_v31  ;;  %v1852_v14 = vsel %vm8191_vm5, %v5664_v3, %v1851_v13  ;;  %v7635_v17 = vld [vmem:[%s9437_s4 + $0x250] sm:$0xff]  }
 0x11a   : > { %7041 = vmatmul.mubr.bf16.vlgmr.msra.gmra.mrb[0].mxu0 %v8953_v62  ;;  %6739 = vmatpush3.bf16.msra.mxu1 %v7615_v43  ;;  %v7623_v43 = vld [vmem:[%s9437_s4 + $0x228] sm:$0xff]  }
 0x11b   : > { %7049 = vmatpush3.bf16.msra.mxu0 %v7614_v31  ;;  %7044 = vmatprep.mubr.bf16.mxu0 %v8957_v12  ;;  %v7619_v31 = vld [vmem:[%s9437_s4 + $0x218] sm:$0xff]  }
 0x11c   : > { %7050 = vmatprep.subr.bf16.mxu0 %v7616_v10  ;;  %6740 = vmatprep.subr.bf16.mxu1 %v7617_v55 }
 0x11d   : > { %6733 = vmatmul.mubr.bf16.gmra.mrb[4].mxu1 %v5655_v27  ;;  %v9048_v27 = vld [vmem:[%s7935_s26] sm:$0xf] }
 0x11e   : > { %6741 = vmatpush3.bf16.msra.mxu1 %v7617_v55  ;;  %6752 = vmatprep.mubr.bf16.mxu1 %v8334_v48  ;;  %v7624_v48 = vld [vmem:[%s9437_s4 + $0x568] sm:$0xff]  }
 0x11f   : > { %7051 = vmatpush3.bf16.msra.mxu0 %v7616_v10  ;;  %6742 = vmatprep.subr.bf16.mxu1 %v7619_v31  ;;  %v7633_v10 = vld [vmem:[%s9437_s4 + $0x248] sm:$0xff]  }
 0x120   : > { %7052 = vmatprep.subr.bf16.mxu0 %v7618_v26  ;;  %v7634_v55 = vld [vmem:[%s9437_s4 + $0x588] sm:$0xff]  }
 0x122   : > { %7045 = vmatmul.mubr.bf16.gmra.mrb[4].mxu0 %v8992_v46  ;;  %6743 = vmatpush3.bf16.msra.mxu1 %v7619_v31  ;;  %v9058_v31 = vld [vmem:[%s8515_s21 + $0x40] sm:$0xf] }
 0x123   : > { %7053 = vmatpush3.bf16.msra.mxu0 %v7618_v26  ;;  %7064 = vmatprep.mubr.bf16.mxu0 %v6051_v60  ;;  %v7627_v60 = vld [vmem:[%s9437_s4 + $0x238] sm:$0xff]   ;;  %v5681_v26 = vcombine.low %v8729_v18, %v1852_v14  ;;  %v6054_v45 = vcombine.low %v8764_v63, %v9058_v31  ;;  %v7639_v18 = vld [vmem:[%s9437_s4 + $0x260] sm:$0xff]  }
 0x124   : > { %7054 = vmatprep.subr.bf16.mxu0 %v7620_v28  ;;  %6744 = vmatprep.subr.bf16.mxu1 %v7621_v16  ;;  %v7640_v63 = vld [vmem:[%s9437_s4 + $0x5a0] sm:$0xff]  }
 0x125   : > { %v7650_v14 = vld [vmem:[%s9437_s4 + $0x280] sm:$0xff]  }
 0x126   : > { %6745 = vmatpush3.bf16.msra.mxu1 %v7621_v16  ;;  %v7641_v16 = vld [vmem:[%s9437_s4 + $0x268] sm:$0xff]  }
 0x127   : > { %7055 = vmatpush3.bf16.msra.mxu0 %v7620_v28  ;;  %6746 = vmatprep.subr.bf16.mxu1 %v7623_v43  ;;  %v9467_v28 = vcombine.low %v8744_v7, %v8748_v15  ;;  %v7642_v7 = vld [vmem:[%s9437_s4 + $0x5a8] sm:$0xff]   ;;  %v7643_v15 = vld [vmem:[%s9437_s4 + $0x270] sm:$0xff]  }
 0x128   : > { %7056 = vmatprep.subr.bf16.mxu0 %v7622_v2 }
 0x12a   : > { %6747 = vmatpush3.bf16.msra.mxu1 %v7623_v43  ;;  %v2180_v43 = vshll.u32 %v9048_v27, 16 }
 0x12b   : > { %7057 = vmatpush3.bf16.msra.mxu0 %v7622_v2  ;;  %6748 = vmatprep.subr.bf16.mxu1 %v7625_v4  ;;  %v2177_v2 = vshrl.u32 %v9048_v27, 16 }
 0x12c   : > { %7058 = vmatprep.subr.bf16.mxu0 %v7624_v48 }
 0x12e   : > { %6749 = vmatpush3.bf16.msra.mxu1 %v7625_v4  ;;  %v4334_v4 = vshll.u32 %v9058_v31, 16 }
 0x12f   : > { %7059 = vmatpush3.bf16.msra.mxu0 %v7624_v48  ;;  %6750 = vmatprep.subr.bf16.mxu1 %v7627_v60  ;;  %v4331_v48 = vshrl.u32 %v9058_v31, 16 }
 0x130   : > { %7060 = vmatprep.subr.bf16.mxu0 %v7626_v1  ;;  %v4336_v13 = vrot.slane %v4334_v4, 5  ;;  %v7658_v4 = vld [vmem:[%s9437_s4 + $0x2a0] sm:$0xff]  }
 0x131   : > { %v4333_v3 = vrot.slane %v4331_v48, 4 }
 0x132   : > { %6751 = vmatpush3.bf16.msra.mxu1 %v7627_v60  ;;  %v7647_v60 = vld [vmem:[%s9437_s4 + $0x278] sm:$0xff]  }
 0x133   : > { %7061 = vmatpush3.bf16.msra.mxu0 %v7626_v1  ;;  %6760 = vmatprep.subr.bf16.mxu1 %v7629_v57  ;;  %v7645_v1 = vld [vmem:[%s9437_s4 + $0x5b0] sm:$0xff]  }
 0x134   : > { %7062 = vmatprep.subr.bf16.mxu0 %v7628_v36 }
 0x135   : > { %6753 = vmatmul.mubr.bf16.vlgmr.msra.gmra.mrb[0].mxu1 %v8409_v50  ;;  %v9466_v50 = vcombine.low %v8527_v34, %v8536_v49  ;;  %v7637_v34 = vld [vmem:[%s9437_s4 + $0x258] sm:$0xff]   ;;  %v9067_v49 = vld [vmem:[%s7935_s26 + $0x8] sm:$0xf] }
 0x136   : > { %6761 = vmatpush3.bf16.msra.mxu1 %v7629_v57  ;;  %6756 = vmatprep.mubr.bf16.mxu1 %v8435_v39  ;;  %v7636_v39 = vld [vmem:[%s9437_s4 + $0x590] sm:$0xff]   ;;  %v5706_v25 = vcombine.low %v9048_v27, %v9067_v49  ;;  %v2182_v57 = vrot.slane %v2180_v43, 5  ;;  %v9470_v43 = vld [vmem:[#allocation2_spill] sm:$0xff] }
 0x137   : > { %7063 = vmatpush3.bf16.msra.mxu0 %v7628_v36  ;;  %6762 = vmatprep.subr.bf16.mxu1 %v7633_v10  ;;  %v2179_v36 = vrot.slane %v2177_v2, 4 }
 0x138   : > { %7072 = vmatprep.subr.bf16.mxu0 %v7631_v44 }
 0x13a   : > { %7065 = vmatmul.mubr.bf16.vlgmr.msra.gmra.mrb[0].mxu0 %v9466_v50  ;;  %6763 = vmatpush3.bf16.msra.mxu1 %v7633_v10  ;;  %v7648_v10 = vld [vmem:[%s9437_s4 + $0x5b8] sm:$0xff]  }
 0x13b   : > { %7073 = vmatpush3.bf16.msra.mxu0 %v7631_v44  ;;  %7068 = vmatprep.mubr.bf16.mxu0 %v6053_v51  ;;  %v7638_v51 = vld [vmem:[%s9437_s4 + $0x598] sm:$0xff]   ;;  %v9105_v44 = vld [vmem:[%s7935_s26 + $0x4] sm:$0x1] }
 0x13c   : > { %7074 = vmatprep.subr.bf16.mxu0 %v7634_v55  ;;  %6764 = vmatprep.subr.bf16.mxu1 %v7635_v17  ;;  %v2186_v50 = vshll.u32 %v9105_v44, 16 }
 0x13d   : > { %6757 = vmatmul.mubr.bf16.gmra.mrb[4].mxu1 %v5681_v26  ;;  %v4337_v26 = vor.u32 %v4336_v13, %v4333_v3  ;;  %v7667_v3 = vld [vmem:[%s9437_s4 + $0x600] sm:$0xff]   ;;  %v7668_v13 = vld [vmem:[%s9437_s4 + $0x2c8] sm:$0xff]  }
 0x13e   : > { %6765 = vmatpush3.bf16.msra.mxu1 %v7635_v17  ;;  %6776 = vmatprep.mubr.bf16.mxu1 %v5706_v25  ;;  %v2183_v17 = vor.u32 %v2182_v57, %v2179_v36  ;;  %v7652_v25 = vld [vmem:[%s9437_s4 + $0x288] sm:$0xff]   ;;  %v7665_v36 = vld [vmem:[%s9437_s4 + $0x5f8] sm:$0xff]   ;;  %v7666_v57 = vld [vmem:[%s9437_s4 + $0x2c0] sm:$0xff]  }
 0x13f   : > { %7075 = vmatpush3.bf16.msra.mxu0 %v7634_v55  ;;  %6766 = vmatprep.subr.bf16.mxu1 %v7637_v34  ;;  %v9111_v55 = vld [vmem:[%s8515_s21 + $0x44] sm:$0x1] }
 0x140   : > { %7076 = vmatprep.subr.bf16.mxu0 %v7636_v39 }
 0x142   : > { %7069 = vmatmul.mubr.bf16.gmra.mrb[4].mxu0 %v6054_v45  ;;  %6767 = vmatpush3.bf16.msra.mxu1 %v7637_v34  ;;  %v7651_v34 = vld [vmem:[%s9437_s4 + $0x5c0] sm:$0xff]   ;;  %v2184_v45 = vrot.slane %v2183_v17, 4  ;;  %v6110_v17 = vcombine.low %v8943_v11, %v8978_v5 }
 0x143   : > { %7077 = vmatpush3.bf16.msra.mxu0 %v7636_v39  ;;  %7088 = vmatprep.mubr.bf16.mxu0 %v9467_v28  ;;  %v4340_v39 = vshll.u32 %v9111_v55, 16 }
 0x144   : > { %7078 = vmatprep.subr.bf16.mxu0 %v7638_v51  ;;  %6768 = vmatprep.subr.bf16.mxu1 %v7639_v18 }
 0x145   : > { %v4342_v28 = vrot.slane %v4340_v39, 5  ;;  %v7669_v39 = vld [vmem:[%s9437_s4 + $0x608] sm:$0xff]  }
 0x146   : > { %6769 = vmatpush3.bf16.msra.mxu1 %v7639_v18  ;;  %v4338_v18 = vrot.slane %v4337_v26, 4  ;;  %v4494_v26 = vrot.slane %v9111_v55, 5  ;;  %v7673_v55 = vld [vmem:[%s9437_s4 + $0x618] sm:$0xff]  }
 0x147   : > { %7079 = vmatpush3.bf16.msra.mxu0 %v7638_v51  ;;  %6770 = vmatprep.subr.bf16.mxu1 %v7641_v16  ;;  %v2188_v51 = vrot.slane %v2186_v50, 5  ;;  %v6091_v50 = vrot.slane %v9058_v31, 9 }
 0x148   : > { %7080 = vmatprep.subr.bf16.mxu0 %v7640_v63  ;;  %v9142_v2 = vsel %vm7940_vm2, %v4338_v18, %v4342_v28  ;;  %v7682_v18 = vld [vmem:[%s9437_s4 + $0x300] sm:$0xff]  }
 0x149   : > { %v9213_v5 = vsel %vm8191_vm5, %v6091_v50, %v4494_v26  ;;  %v7683_v28 = vld [vmem:[%s9437_s4 + $0x640] sm:$0xff]   ;;  %v7702_v50 = vld [vmem:[%s9437_s4 + $0x688] sm:$0xff]   ;;  %v7725_v26 = vld [vmem:[%s7935_s26 + $0x38] sm:$0xf] }
 0x14a   : > { %6771 = vmatpush3.bf16.msra.mxu1 %v7641_v16  ;;  %v7654_v16 = vld [vmem:[%s9437_s4 + $0x290] sm:$0xff]  }
 0x14b   : > { %7081 = vmatpush3.bf16.msra.mxu0 %v7640_v63  ;;  %6772 = vmatprep.subr.bf16.mxu1 %v7643_v15  ;;  %v7653_v63 = vld [vmem:[%s9437_s4 + $0x5c8] sm:$0xff]  }
 0x14c   : > { %7082 = vmatprep.subr.bf16.mxu0 %v7642_v7 }
 0x14e   : > { %6773 = vmatpush3.bf16.msra.mxu1 %v7643_v15  ;;  %v9469_v15 = vcombine.low %v8829_v33, %v8833_v22  ;;  %v6108_v33 = vcombine.low %v8888_v54, %v8939_v6  ;;  %v7657_v22 = vld [vmem:[%s9437_s4 + $0x5d8] sm:$0xff]   ;;  %v7661_v54 = vld [vmem:[%s9437_s4 + $0x5e8] sm:$0xff]   ;;  %v7662_v6 = vld [vmem:[%s9437_s4 + $0x2b0] sm:$0xff]  }
 0x14f   : > { %7083 = vmatpush3.bf16.msra.mxu0 %v7642_v7  ;;  %6774 = vmatprep.subr.bf16.mxu1 %v7647_v60  ;;  %v2189_v7 = vsel %vm7940_vm2, %v2184_v45, %v2188_v51  ;;  %v7680_v45 = vld [vmem:[%s9437_s4 + $0x2f8] sm:$0xff]  }
 0x150   : > { %7084 = vmatprep.subr.bf16.mxu0 %v7645_v1  ;;  %v5734_v48 = vcombine.low %v2189_v7, %v9470_v43  ;;  %v7681_v51 = vld [vmem:[%s9437_s4 + $0x638] sm:$0xff]   ;;  %v7686_v7 = vld [vmem:[%s9437_s4 + $0x310] sm:$0xff]   ;;  %v7690_v43 = vld [vmem:[%s9437_s4 + $0x320] sm:$0xff]  }
 0x152   : > { %6775 = vmatpush3.bf16.msra.mxu1 %v7647_v60  ;;  %v7664_v60 = vld [vmem:[%s9437_s4 + $0x2b8] sm:$0xff]  }
 0x153   : > { %7085 = vmatpush3.bf16.msra.mxu0 %v7645_v1  ;;  %6784 = vmatprep.subr.bf16.mxu1 %v7650_v14  ;;  %v7663_v1 = vld [vmem:[%s9437_s4 + $0x5f0] sm:$0xff]  }
 0x154   : > { %7086 = vmatprep.subr.bf16.mxu0 %v7648_v10 }
 0x155   : > { %6777 = vmatmul.mubr.bf16.vlgmr.msra.gmra.mrb[0].mxu1 %v8352_v40  ;;  %v9468_v40 = vcombine.low %v8580_v20, %v8584_v21  ;;  %v7656_v20 = vld [vmem:[%s9437_s4 + $0x298] sm:$0xff]   ;;  %v6082_v21 = vcombine.low %v8882_v38, %v9142_v2  ;;  %v7660_v38 = vld [vmem:[%s9437_s4 + $0x2a8] sm:$0xff]  }
 0x156   : > { %6785 = vmatpush3.bf16.msra.mxu1 %v7650_v14  ;;  %6780 = vmatprep.mubr.bf16.mxu1 %v8413_v53  ;;  %v7655_v53 = vld [vmem:[%s9437_s4 + $0x5d0] sm:$0xff]   ;;  %v2452_v14 = vrot.slane %v9105_v44, 5 }
 0x157   : > { %7087 = vmatpush3.bf16.msra.mxu0 %v7648_v10  ;;  %6786 = vmatprep.subr.bf16.mxu1 %v7652_v25  ;;  %v5746_v10 = vrot.slane %v9048_v27, 9  ;;  %v7670_v27 = vld [vmem:[%s9437_s4 + $0x2d0] sm:$0xff]  }
 0x158   : > { %7096 = vmatprep.subr.bf16.mxu0 %v7651_v34  ;;  %v7671_v44 = vld [vmem:[%s9437_s4 + $0x610] sm:$0xff]  }
 0x159   : > { %v2453_v11 = vsel %vm8191_vm5, %v5746_v10, %v2452_v14 }
 0x15a   : > { %7089 = vmatmul.mubr.bf16.vlgmr.msra.gmra.mrb[0].mxu0 %v9468_v40  ;;  %6787 = vmatpush3.bf16.msra.mxu1 %v7652_v25  ;;  %v7679_v25 = vld [vmem:[%s9437_s4 + $0x630] sm:$0xff]  }
 0x15b   : > { %7097 = vmatpush3.bf16.msra.mxu0 %v7651_v34  ;;  %7092 = vmatprep.mubr.bf16.mxu0 %v9469_v15  ;;  %v7674_v34 = vld [vmem:[%s9437_s4 + $0x2e0] sm:$0xff]   ;;  %v7687_v40 = vld [vmem:[%s9437_s4 + $0x650] sm:$0xff]   ;;  %v7688_v15 = vld [vmem:[%s9437_s4 + $0x318] sm:$0xff]  }
 0x15c   : > { %7098 = vmatprep.subr.bf16.mxu0 %v7653_v63  ;;  %6788 = vmatprep.subr.bf16.mxu1 %v7654_v16 }
 0x15d   : > { %6781 = vmatmul.mubr.bf16.gmra.mrb[4].mxu1 %v8418_v8  ;;  %v7659_v8 = vld [vmem:[%s9437_s4 + $0x5e0] sm:$0xff]  }
 0x15e   : > { %6789 = vmatpush3.bf16.msra.mxu1 %v7654_v16  ;;  %6800 = vmatprep.mubr.bf16.mxu1 %v5734_v48  ;;  %v7685_v16 = vld [vmem:[%s9437_s4 + $0x648] sm:$0xff]  }
 0x15f   : > { %7099 = vmatpush3.bf16.msra.mxu0 %v7653_v63  ;;  %6790 = vmatprep.subr.bf16.mxu1 %v7656_v20  ;;  %v7684_v63 = vld [vmem:[%s9437_s4 + $0x308] sm:$0xff]  }
 0x160   : > { %7100 = vmatprep.subr.bf16.mxu0 %v7655_v53 }
 0x162   : > { %7093 = vmatmul.mubr.bf16.gmra.mrb[4].mxu0 %v6082_v21  ;;  %6791 = vmatpush3.bf16.msra.mxu1 %v7656_v20  ;;  %v7695_v21 = vld [vmem:[%s9437_s4 + $0x670] sm:$0xff]  }
 0x163   : > { %7101 = vmatpush3.bf16.msra.mxu0 %v7655_v53  ;;  %7112 = vmatprep.mubr.bf16.mxu0 %v6108_v33  ;;  %v7720_v53 = vld [vmem:[%s7935_s26 + $0x10] sm:$0xf]  ;;  %v7697_v33 = vld [vmem:[%s9437_s4 + $0x338] sm:$0xff]  }
 0x164   : > { %7102 = vmatprep.subr.bf16.mxu0 %v7657_v22  ;;  %6792 = vmatprep.subr.bf16.mxu1 %v7658_v4 }
 0x166   : > { %6793 = vmatpush3.bf16.msra.mxu1 %v7658_v4 }
 0x167   : > { %7103 = vmatpush3.bf16.msra.mxu0 %v7657_v22  ;;  %6794 = vmatprep.subr.bf16.mxu1 %v7660_v38 }
 0x168   : > { %7104 = vmatprep.subr.bf16.mxu0 %v7659_v8 }
 0x16a   : > { %6795 = vmatpush3.bf16.msra.mxu1 %v7660_v38  ;;  %v3559_v38 = vld [vmem:[%s8515_s21 + $0x4c] sm:$0x1] }
 0x16b   : > { %7105 = vmatpush3.bf16.msra.mxu0 %v7659_v8  ;;  %6796 = vmatprep.subr.bf16.mxu1 %v7662_v6  ;;  %v7698_v8 = vld [vmem:[%s9437_s4 + $0x678] sm:$0xff]  }
 0x16c   : > { %7106 = vmatprep.subr.bf16.mxu0 %v7661_v54 }
 0x16e   : > { %6797 = vmatpush3.bf16.msra.mxu1 %v7662_v6  ;;  %v7722_v6 = vld [vmem:[%s7935_s26 + $0x20] sm:$0xf] }
 0x16f   : > { %7107 = vmatpush3.bf16.msra.mxu0 %v7661_v54  ;;  %6798 = vmatprep.subr.bf16.mxu1 %v7664_v60  ;;  %v7721_v54 = vld [vmem:[%s7935_s26 + $0x18] sm:$0xf] }
 0x170   : > { %7108 = vmatprep.subr.bf16.mxu0 %v7663_v1 }
 0x172   : > { %6799 = vmatpush3.bf16.msra.mxu1 %v7664_v60 }
 0x173   : > { %7109 = vmatpush3.bf16.msra.mxu0 %v7663_v1  ;;  %6808 = vmatprep.subr.bf16.mxu1 %v7666_v57  ;;  %v5799_v1 = vcombine.low %v7721_v54, %v7722_v6 }
 0x174   : > { %7110 = vmatprep.subr.bf16.mxu0 %v7665_v36 }
 0x175   : > { %6801 = vmatmul.mubr.bf16.vlgmr.msra.gmra.mrb[0].mxu1 %v8031_v47  ;;  %v9471_v47 = vcombine.low %v8634_v9, %v8638_v52  ;;  %v5770_v9 = vcombine.low %v2453_v11, %v8218_v29  ;;  %v6111_v52 = vcombine.low %v8982_v42, %v9213_v5  ;;  %v7675_v29 = vld [vmem:[%s9437_s4 + $0x620] sm:$0xff]   ;;  %v7677_v42 = vld [vmem:[%s9437_s4 + $0x628] sm:$0xff]   ;;  %v7705_v11 = vld [vmem:[%s9437_s4 + $0x690] sm:$0xff]  }
 0x176   : > { %6809 = vmatpush3.bf16.msra.mxu1 %v7666_v57  ;;  %6804 = vmatprep.mubr.bf16.mxu1 %v8167_v24  ;;  %v7672_v24 = vld [vmem:[%s9437_s4 + $0x2d8] sm:$0xff]   ;;  %v7701_v57 = vld [vmem:[%s9437_s4 + $0x680] sm:$0xff]  }
 0x177   : > { %7111 = vmatpush3.bf16.msra.mxu0 %v7665_v36  ;;  %6810 = vmatprep.subr.bf16.mxu1 %v7668_v13  ;;  %v4795_v36 = vshll.u32 %v3559_v38, 16 }
 0x178   : > { %7120 = vmatprep.subr.bf16.mxu0 %v7667_v3 }
 0x17a   : > { %7113 = vmatmul.mubr.bf16.vlgmr.msra.gmra.mrb[0].mxu0 %v9471_v47  ;;  %6811 = vmatpush3.bf16.msra.mxu1 %v7668_v13  ;;  %v7724_v13 = vld [vmem:[%s7935_s26 + $0x30] sm:$0xf] }
 0x17b   : > { %7121 = vmatpush3.bf16.msra.mxu0 %v7667_v3  ;;  %7116 = vmatprep.mubr.bf16.mxu0 %v6110_v17  ;;  %v7723_v3 = vld [vmem:[%s7935_s26 + $0x28] sm:$0xf]  ;;  %v4797_v17 = vrot.slane %v4795_v36, 5 }
 0x17c   : > { %7122 = vmatprep.subr.bf16.mxu0 %v7669_v39  ;;  %6812 = vmatprep.subr.bf16.mxu1 %v7670_v27  ;;  %v5800_v10 = vcombine.low %v7723_v3, %v7724_v13 }
 0x17d   : > { %6805 = vmatmul.mubr.bf16.gmra.mrb[4].mxu1 %v8242_v30  ;;  %v7676_v30 = vld [vmem:[%s9437_s4 + $0x2e8] sm:$0xff]  }
 0x17e   : > { %6813 = vmatpush3.bf16.msra.mxu1 %v7670_v27  ;;  %6824 = vmatprep.mubr.bf16.mxu1 %v5770_v9  ;;  %v4943_v9 = vrot.slane %v3559_v38, 5 }
 0x17f   : > { %7123 = vmatpush3.bf16.msra.mxu0 %v7669_v39  ;;  %6814 = vmatprep.subr.bf16.mxu1 %v7672_v24  ;;  %v7726_v39 = vld [vmem:[%s7935_s26 + $0x40] sm:$0xf] }
 0x180   : > { %7124 = vmatprep.subr.bf16.mxu0 %v7671_v44  ;;  %v5801_v27 = vcombine.low %v7725_v26, %v7726_v39 }
 0x182   : > { %7117 = vmatmul.mubr.bf16.gmra.mrb[4].mxu0 %v6111_v52  ;;  %6815 = vmatpush3.bf16.msra.mxu1 %v7672_v24 }
 0x183   : > { %7125 = vmatpush3.bf16.msra.mxu0 %v7671_v44  ;;  %7136 = vmatprep.mubr.bf16.mxu0 %v8733_v32  ;;  %v7678_v32 = vld [vmem:[%s9437_s4 + $0x2f0] sm:$0xff]  }
 0x184   : > { %7126 = vmatprep.subr.bf16.mxu0 %v7673_v55  ;;  %6816 = vmatprep.subr.bf16.mxu1 %v7674_v34 }
 0x186   : > { %6817 = vmatpush3.bf16.msra.mxu1 %v7674_v34  ;;  %v7711_v34 = vld [vmem:[%s9439_s6] sm:$0xff]  }
 0x187   : > { %7127 = vmatpush3.bf16.msra.mxu0 %v7673_v55  ;;  %6818 = vmatprep.subr.bf16.mxu1 %v7676_v30 }
 0x188   : > { %7128 = vmatprep.subr.bf16.mxu0 %v7675_v29 }
 0x18a   : > { %6819 = vmatpush3.bf16.msra.mxu1 %v7676_v30  ;;  %v7717_v30 = vld [vmem:[%s9439_s6 + $0x30] sm:$0xff]  }
 0x18b   : > { %7129 = vmatpush3.bf16.msra.mxu0 %v7675_v29  ;;  %6820 = vmatprep.subr.bf16.mxu1 %v7678_v32  ;;  %v7712_v29 = vld [vmem:[%s9439_s6 + $0x8] sm:$0xff]  }
 0x18c   : > { %7130 = vmatprep.subr.bf16.mxu0 %v7677_v42 }
 0x18e   : > { %6821 = vmatpush3.bf16.msra.mxu1 %v7678_v32 }
 0x18f   : > { %7131 = vmatpush3.bf16.msra.mxu0 %v7677_v42  ;;  %6822 = vmatprep.subr.bf16.mxu1 %v7680_v45  ;;  %v7718_v42 = vld [vmem:[%s9439_s6 + $0x38] sm:$0xff]  }
 0x190   : > { %7132 = vmatprep.subr.bf16.mxu0 %v7679_v25 }
 0x192   : > { %6823 = vmatpush3.bf16.msra.mxu1 %v7680_v45 }
 0x193   : > { %7133 = vmatpush3.bf16.msra.mxu0 %v7679_v25  ;;  %6832 = vmatprep.subr.bf16.mxu1 %v7682_v18 }
 0x194   : > { %7134 = vmatprep.subr.bf16.mxu0 %v7681_v51 }
 0x195   : > { %6825 = vmatmul.mubr.bf16.vlgmr.msra.gmra.mrb[0].mxu1 %v8235_v59  ;;  %v9273_v59 = vld [vmem:[%s8515_s21 + $0x48] sm:$0xf] }
 0x196   : > { %6833 = vmatpush3.bf16.msra.mxu1 %v7682_v18  ;;  %6828 = vmatprep.mubr.bf16.mxu1 %v8267_v56  ;;  %v5798_v56 = vcombine.low %v9067_v49, %v7720_v53  ;;  %v7693_v49 = vld [vmem:[%s9437_s4 + $0x668] sm:$0xff]   ;;  %v4786_v48 = vshrl.u32 %v9273_v59, 16  ;;  %v4789_v20 = vshll.u32 %v9273_v59, 16  ;;  %v6170_v24 = vrot.slane %v9273_v59, 9 }
 0x197   : > { %7135 = vmatpush3.bf16.msra.mxu0 %v7681_v51  ;;  %6834 = vmatprep.subr.bf16.mxu1 %v7684_v63 }
 0x198   : > { %7144 = vmatprep.subr.bf16.mxu0 %v7683_v28  ;;  %v4788_v22 = vrot.slane %v4786_v48, 4  ;;  %v4791_v4 = vrot.slane %v4789_v20, 5  ;;  %v4944_v52 = vsel %vm8191_vm5, %v6170_v24, %v4943_v9  ;;  %v5252_v9 = vld [vmem:[%s9392_s18 + $0x18] sm:$0xff] }
 0x199   : > { %v6187_v55 = vcombine.low %v9213_v5, %v4944_v52  ;;  %v7716_v5 = vld [vmem:[%s9439_s6 + $0x28] sm:$0xff]  }
 0x19a   : > { %7137 = vmatmul.mubr.bf16.vlgmr.msra.gmra.mrb[0].mxu0 %v8740_v19  ;;  %6835 = vmatpush3.bf16.msra.mxu1 %v7684_v63  ;;  %v6136_v19 = vcombine.low %v9058_v31, %v9273_v59  ;;  %v7692_v31 = vld [vmem:[%s9437_s4 + $0x328] sm:$0xff]   ;;  %v4792_v60 = vor.u32 %v4791_v4, %v4788_v22  ;;  %v6196_v59 = vld [vmem:[%s9438_s5] ss:$0 sm:$0xff] }
 0x19b   : > { %7145 = vmatpush3.bf16.msra.mxu0 %v7683_v28  ;;  %7140 = vmatprep.mubr.bf16.mxu0 %v8785_v61  ;;  %v7689_v61 = vld [vmem:[%s9437_s4 + $0x658] sm:$0xff]  }
 0x19c   : > { %7146 = vmatprep.subr.bf16.mxu0 %v7685_v16  ;;  %6836 = vmatprep.subr.bf16.mxu1 %v7686_v7  ;;  %v4793_v14 = vrot.slane %v4792_v60, 4 }
 0x19d   : > { %6829 = vmatmul.mubr.bf16.gmra.mrb[4].mxu1 %v8290_v0  ;;  %v7691_v0 = vld [vmem:[%s9437_s4 + $0x660] sm:$0xff]  }
 0x19e   : > { %6837 = vmatpush3.bf16.msra.mxu1 %v7686_v7  ;;  %6848 = vmatprep.mubr.bf16.mxu1 %v5798_v56  ;;  %v4798_v47 = vsel %vm7940_vm2, %v4793_v14, %v4797_v17 }
 0x19f   : > { %7147 = vmatpush3.bf16.msra.mxu0 %v7685_v16  ;;  %6838 = vmatprep.subr.bf16.mxu1 %v7688_v15  ;;  %v6161_v44 = vcombine.low %v9142_v2, %v4798_v47  ;;  %v7709_v2 = vld [vmem:[%s9437_s4 + $0x6b0] sm:$0xff]  }
 0x1a0   : > { %7148 = vmatprep.subr.bf16.mxu0 %v7687_v40 }
 0x1a2   : > { %7141 = vmatmul.mubr.bf16.gmra.mrb[4].mxu0 %v6136_v19  ;;  %6839 = vmatpush3.bf16.msra.mxu1 %v7688_v15 }
 0x1a3   : > { %7149 = vmatpush3.bf16.msra.mxu0 %v7687_v40  ;;  %7160 = vmatprep.mubr.bf16.mxu0 %v8850_v41  ;;  %v7694_v41 = vld [vmem:[%s9437_s4 + $0x330] sm:$0xff]  }
 0x1a4   : > { %7150 = vmatprep.subr.bf16.mxu0 %v7689_v61  ;;  %6840 = vmatprep.subr.bf16.mxu1 %v7690_v43 }
 0x1a6   : > { %6841 = vmatpush3.bf16.msra.mxu1 %v7690_v43 }
 0x1a7   : > { %7151 = vmatpush3.bf16.msra.mxu0 %v7689_v61  ;;  %6842 = vmatprep.subr.bf16.mxu1 %v7692_v31 }
 0x1a8   : > { %7152 = vmatprep.subr.bf16.mxu0 %v7691_v0 }
 0x1aa   : > { %6843 = vmatpush3.bf16.msra.mxu1 %v7692_v31 }
 0x1ab   : > { %7153 = vmatpush3.bf16.msra.mxu0 %v7691_v0  ;;  %6844 = vmatprep.subr.bf16.mxu1 %v7694_v41 }
 0x1ac   : > { %7154 = vmatprep.subr.bf16.mxu0 %v7693_v49 }
 0x1ae   : > { %6845 = vmatpush3.bf16.msra.mxu1 %v7694_v41 }
 0x1af   : > { %7155 = vmatpush3.bf16.msra.mxu0 %v7693_v49  ;;  %6846 = vmatprep.subr.bf16.mxu1 %v7697_v33 }
 0x1b0   : > { %7156 = vmatprep.subr.bf16.mxu0 %v7695_v21 }
 0x1b2   : > { %6847 = vmatpush3.bf16.msra.mxu1 %v7697_v33 }
 0x1b3   : > { %7157 = vmatpush3.bf16.msra.mxu0 %v7695_v21  ;;  %7192 = vmatprep.subr.bf16.mxu1 %v7711_v34 }
 0x1b4   : > { %7158 = vmatprep.subr.bf16.mxu0 %v7698_v8 }
 0x1b5   : > { %6849 = vmatmul.mubr.bf16.vlgmr.msra.gmra.mrb[0].mxu1 %v5799_v1 }
 0x1b6   : > { %6852 = vmatprep.mubr.bf16.mxu1 %v5800_v10  ;;  %7193 = vmatpush3.bf16.msra.mxu1 %v7711_v34 }
 0x1b7   : > { %7159 = vmatpush3.bf16.msra.mxu0 %v7698_v8  ;;  %7194 = vmatprep.subr.bf16.mxu1 %v7712_v29 }
 0x1b8   : > { %7168 = vmatprep.subr.bf16.mxu0 %v7701_v57 }
 0x1ba   : > { %7161 = vmatmul.mubr.bf16.vlgmr.msra.gmra.mrb[0].mxu0 %v8857_v58  ;;  %v7706_v58 = vld [vmem:[%s9437_s4 + $0x698] sm:$0xff]   ;;  %7195 = vmatpush3.bf16.msra.mxu1 %v7712_v29  ;;  %v5250_v29 = vld [vmem:[%s9392_s18 + $0x8] sm:$0xff] }
 0x1bb   : > { %7169 = vmatpush3.bf16.msra.mxu0 %v7701_v57  ;;  %7164 = vmatprep.mubr.bf16.mxu0 %v8892_v23  ;;  %v7708_v23 = vld [vmem:[%s9437_s4 + $0x6a8] sm:$0xff]  }
 0x1bc   : > { %7170 = vmatprep.subr.bf16.mxu0 %v7702_v50 }
 0x1bd   : > { %6853 = vmatmul.mubr.bf16.gmra.mrb[4].mxu1 %v5801_v27 }
 0x1bf   : > { %7171 = vmatpush3.bf16.msra.mxu0 %v7702_v50 }
 0x1c0   : > { %7172 = vmatprep.subr.bf16.mxu0 %v7705_v11 }
 0x1c2   : > { %7165 = vmatmul.mubr.bf16.gmra.mrb[4].mxu0 %v6161_v44 }
 0x1c3   : > { %7173 = vmatpush3.bf16.msra.mxu0 %v7705_v11  ;;  %7184 = vmatprep.mubr.bf16.mxu0 %v8953_v62  ;;  %v7710_v62 = vld [vmem:[%s9437_s4 + $0x6b8] sm:$0xff]   ;;  %v6197_v11 = vld [vmem:[%s9440_s7] ss:$0 sm:$0xff] }
 0x1c4   : > { %7174 = vmatprep.subr.bf16.mxu0 %v7706_v58 }
 0x1c7   : > { %7175 = vmatpush3.bf16.msra.mxu0 %v7706_v58  ;;  %v5251_v58 = vld [vmem:[%s9392_s18 + $0x10] sm:$0xff] }
 0x1c8   : > { %7176 = vmatprep.subr.bf16.mxu0 %v7707_v37 }
 0x1cb   : > { %7177 = vmatpush3.bf16.msra.mxu0 %v7707_v37 }
 0x1cc   : > { %7178 = vmatprep.subr.bf16.mxu0 %v7708_v23 }
 0x1cf   : > { %7179 = vmatpush3.bf16.msra.mxu0 %v7708_v23 }
 0x1d0   : > { %7180 = vmatprep.subr.bf16.mxu0 %v7709_v2 }
 0x1d3   : > { %7181 = vmatpush3.bf16.msra.mxu0 %v7709_v2  ;;  %v5249_v2 = vld [vmem:[%s9392_s18] sm:$0xff] }
 0x1d4   : > { %7182 = vmatprep.subr.bf16.mxu0 %v7710_v62 }
 0x1d7   : > { %7183 = vmatpush3.bf16.msra.mxu0 %v7710_v62 }
 0x1da   : > { %7185 = vmatmul.mubr.bf16.vlgmr.msra.gmra.mrb[0].mxu0 %v8957_v12  ;;  %v7713_v12 = vld [vmem:[%s9439_s6 + $0x10] sm:$0xff]  }
 0x1db   : > { %7188 = vmatprep.mubr.bf16.mxu0 %v8992_v46  ;;  %7196 = vmatprep.subr.bf16.mxu1 %v7713_v12  ;;  %v7715_v46 = vld [vmem:[%s9439_s6 + $0x20] sm:$0xff]  }
 0x1dc   : > { %7197 = vmatpush3.bf16.msra.mxu1 %v7713_v12 }
 0x1dd   : > { %7198 = vmatprep.subr.bf16.mxu1 %v7714_v35 }
 0x1e0   : > { %7199 = vmatpush3.bf16.msra.mxu1 %v7714_v35 }
 0x1e1   : > { %7200 = vmatprep.subr.bf16.mxu1 %v7715_v46 }
 0x1e2   : > { %7189 = vmatmul.mubr.bf16.gmra.mrb[4].mxu0 %v6187_v55 }
 0x1e4   : > { %7201 = vmatpush3.bf16.msra.mxu1 %v7715_v46 }
 0x1e5   : > { %7202 = vmatprep.subr.bf16.mxu1 %v7716_v5 }
 0x1e8   : > { %7203 = vmatpush3.bf16.msra.mxu1 %v7716_v5 }
 0x1e9   : > { %7204 = vmatprep.subr.bf16.mxu1 %v7717_v30 }
 0x1ec   : > { %7205 = vmatpush3.bf16.msra.mxu1 %v7717_v30 }
 0x1ed   : > { %7206 = vmatprep.subr.bf16.mxu1 %v7718_v42 }
 0x1f0   : > { %7207 = vmatpush3.bf16.msra.mxu1 %v7718_v42 }
 0x288   : > { %v6850_v32 = vpop.f32.mrb[0].mxu1 }
 0x289   : > { %v2745_v25 = vpop.f32.mrb[1].mxu1 }
 0x28a   : > { %v6851_v45 = vpop.f32.mrb[2].mxu1 }
 0x28b   : > { %v2748_v51 = vpop.f32.mrb[3].mxu1 }
 0x290   : > { %v6854_v18 = vpop.f32.mrb[4].mxu1 }
 0x291   : > { %v2761_v28 = vpop.f32.mrb[5].mxu1 }
 0x292   : > { %v6855_v63 = vpop.f32.mrb[6].mxu1 }
 0x293   : > { %v2764_v16 = vpop.f32.mrb[7].mxu1 }
 0x2ad   : > { %v7186_v7 = vpop.f32.mrb[0].mxu0 }
 0x2ae   : > { %v7216_v40 = vadd.f32 %v7186_v7, %v6850_v32  ;;  %v5047_v15 = vpop.f32.mrb[1].mxu0 }
 0x2af   : > { %v7217_v53 = vadd.f32 %v5047_v15, %v2745_v25  ;;  %v7187_v56 = vpop.f32.mrb[2].mxu0 }
 0x2b0   : > { %v5095_v19 = vadd.f32 %v7216_v40, %v6196_v59  ;;  %v7218_v61 = vadd.f32 %v7187_v56, %v6851_v45  ;;  %v5050_v43 = vpop.f32.mrb[3].mxu0  ;;  %v5254_v56 = vld [vmem:[%s9392_s18 + $0x28] sm:$0xff] }
 0x2b1   : > { %v5093_v0 = vadd.f32 %v7217_v53, %v6196_v59  ;;  %v7219_v31 = vadd.f32 %v5050_v43, %v2748_v51  ;;  %v5255_v51 = vld [vmem:[%s9392_s18 + $0x30] sm:$0xff] }
 0x2b2   : > { %v5096_v49 = vadd.f32 %v7218_v61, %v6196_v59  ;;  %v5103_v48 = vmax.f32 %v5095_v19, 0.0 }
 0x2b3   : > { %v5094_v41 = vadd.f32 %v7219_v31, %v6196_v59  ;;  %v5101_v21 = vmax.f32 %v5093_v0, 0.0 }
 0x2b4   : > { %v5104_v20 = vmax.f32 %v5096_v49, 0.0 }
 0x2b5   : > { %v5102_v33 = vmax.f32 %v5094_v41, 0.0  ;;  %v7190_v22 = vpop.f32.mrb[4].mxu0 }
 0x2b6   : > { %v5110_v4 = vpack.c.bf16 %v5104_v20, %v5103_v48  ;;  %v7220_v8 = vadd.f32 %v7190_v22, %v6854_v18  ;;  %v5063_v38 = vpop.f32.mrb[5].mxu0 }
 0x2b7   : > { %v7221_v54 = vadd.f32 %v5063_v38, %v2761_v28  ;;  %v7191_v6 = vpop.f32.mrb[6].mxu0  ;;  %v5109_v1 = vpack.c.bf16 %v5102_v33, %v5101_v21 }
 0x2b8   : > { %v5099_v60 = vadd.f32 %v7220_v8, %v6196_v59  ;;  %v7222_v36 = vadd.f32 %v7191_v6, %v6855_v63  ;;  %v5066_v57 = vpop.f32.mrb[7].mxu0  ;;  %v5253_v63 = vld [vmem:[%s9392_s18 + $0x20] sm:$0xff] }
 0x2b9   : > { %v5097_v3 = vadd.f32 %v7221_v54, %v6196_v59  ;;  %v7223_v13 = vadd.f32 %v5066_v57, %v2764_v16  ;;  %7208 = vmatprep.mubr.bf16.mxu1 %v5109_v1 }
 0x2ba   : > { %v5100_v10 = vadd.f32 %v7222_v36, %v6196_v59  ;;  %7209 = vmatmul.mubr.bf16.vlgmr.msra.gmra.mrb[8].mxu1 %v5110_v4  ;;  %v5107_v17 = vmax.f32 %v5099_v60, 0.0 }
 0x2bb   : > { %v5098_v14 = vadd.f32 %v7223_v13, %v6196_v59  ;;  %v5105_v26 = vmax.f32 %v5097_v3, 0.0  ;;  %v5256_v59 = vld [vmem:[%s9392_s18 + $0x38] sm:$0xff] }
 0x2bc   : > { %v5108_v50 = vmax.f32 %v5100_v10, 0.0 }
 0x2bd   : > { %v5106_v39 = vmax.f32 %v5098_v14, 0.0 }
 0x2be   : > { %v5112_v27 = vpack.c.bf16 %v5108_v50, %v5107_v17 }
 0x2bf   : > { %v5111_v47 = vpack.c.bf16 %v5106_v39, %v5105_v26 }
 0x2c1   : > { %7212 = vmatprep.mubr.bf16.mxu1 %v5111_v47 }
 0x2c2   : > { %7213 = vmatmul.mubr.bf16.gmra.mrb[12].mxu1 %v5112_v27 }
 0x38d   : > { %v7210_v44 = vpop.f32.mrb[8].mxu1 }
 0x38e   : > { %v5227_v37 = vadd.f32 %v7210_v44, %v6197_v11  ;;  %v5218_v23 = vpop.f32.mrb[9].mxu1 }
 0x38f   : > { %v5219_v62 = vadd.f32 %v6197_v11, %v5218_v23  ;;  %v7211_v24 = vpop.f32.mrb[10].mxu1 }
 0x390   : > { %v5259_v52 = vadd.f32 %v5251_v58, %v5227_v37  ;;  %v5230_v55 = vadd.f32 %v7211_v24, %v6197_v11  ;;  %v5221_v34 = vpop.f32.mrb[11].mxu1 }
 0x391   : > { %v5257_v12 = vadd.f32 %v5249_v2, %v5219_v62  ;;  %v5222_v35 = vadd.f32 %v6197_v11, %v5221_v34 }
 0x392   : > { %v5267_v46 = vmax.f32 %v5259_v52, 0.0  ;;  %v5260_v5 = vadd.f32 %v5252_v9, %v5230_v55 }
 0x393   : > { %v5265_v30 = vmax.f32 %v5257_v12, 0.0  ;;  %v5258_v42 = vadd.f32 %v5250_v29, %v5222_v35 }
 0x394   : > { %5275 = vst [vmem:[%s9404_s20 + $0x10] sm:$0xff] %v5267_v46  ;;  %v5268_v32 = vmax.f32 %v5260_v5, 0.0 }
 0x395   : > { %5273 = vst [vmem:[%s9404_s20] sm:$0xff] %v5265_v30  ;;  %v5266_v25 = vmax.f32 %v5258_v42, 0.0  ;;  %v7214_v45 = vpop.f32.mrb[12].mxu1 }
 0x396   : > { %5276 = vst [vmem:[%s9404_s20 + $0x18] sm:$0xff] %v5268_v32  ;;  %v5243_v18 = vadd.f32 %v7214_v45, %v6197_v11  ;;  %v5234_v28 = vpop.f32.mrb[13].mxu1 }
 0x397   : > { %5274 = vst [vmem:[%s9404_s20 + $0x8] sm:$0xff] %v5266_v25  ;;  %v5235_v16 = vadd.f32 %v6197_v11, %v5234_v28  ;;  %v7215_v7 = vpop.f32.mrb[14].mxu1 }
 0x398   : > { %v5263_v40 = vadd.f32 %v5255_v51, %v5243_v18  ;;  %v5246_v15 = vadd.f32 %v7215_v7, %v6197_v11  ;;  %v5237_v53 = vpop.f32.mrb[15].mxu1 }
 0x399   : > { %v5261_v19 = vadd.f32 %v5253_v63, %v5235_v16  ;;  %v5238_v61 = vadd.f32 %v6197_v11, %v5237_v53 }
 0x39a   : > { %v5271_v43 = vmax.f32 %v5263_v40, 0.0  ;;  %v5264_v0 = vadd.f32 %v5256_v59, %v5246_v15 }
 0x39b   : > { %v5269_v31 = vmax.f32 %v5261_v19, 0.0  ;;  %v5262_v49 = vadd.f32 %v5254_v56, %v5238_v61 }
 0x39c   : > { %5279 = vst [vmem:[%s9404_s20 + $0x30] sm:$0xff] %v5271_v43  ;;  %v5272_v41 = vmax.f32 %v5264_v0, 0.0 }
 0x39d   : > { %5277 = vst [vmem:[%s9404_s20 + $0x20] sm:$0xff] %v5269_v31  ;;  %v5270_v48 = vmax.f32 %v5262_v49, 0.0 }
 0x39e   : > { %5280 = vst [vmem:[%s9404_s20 + $0x38] sm:$0xff] %v5272_v41 }
 0x39f   : > { %5278 = vst [vmem:[%s9404_s20 + $0x28] sm:$0xff] %v5270_v48 }
 0x3a0 PF: > { %s18_s9 = sadd.s32 1, %s7765_s9   ;;  %s9472_s27 = smov %s7757_s29 }
 0x3a1   : > { %p15_p10 = scmp.ge.s32.totalorder %s18_s9, 18   ;;  %s9473_s28 = smov %s7761_s30 }
 0x3a2   : > { %s9474_s29 = smov %s9477_s10  ;;  %s9475_s30 = smov %s9481_s11 }
 0x3a3   :  { %17 = sbr.rel (!%p15_p10) target bundleno = 3 (0x3), region = 117 }

</bundles_post_ra>
